<compile_context>
chip_gen: v5e
topology: v5e:2x2
jax: 0.10.0
libtpu: 0.0.40
codegen_flags: <defaults>
</compile_context>

<pallas_src>
import jax
import jax.numpy as jnp
import numpy as np
from jax.experimental import pallas as pl
from jax.experimental.pallas import tpu as pltpu

# contract over the leading (edge / node) row axis of both operands
_SCATTER_DNUMS = (((0,), (0,)), ((), ()))


# ----------------------------------------------------------------------------
# Fused kernel: grid = (n_chunks, n_prop_layers), ("parallel", "arbitrary").
#   l == 0      : run encoder, build one-hot gather/scatter masks in VMEM scratch
#   every l     : one propagation layer (gather -> msg MLPs -> scatter -> update)
#   l == last   : gated graph aggregation
# ----------------------------------------------------------------------------
def fused_gnn_kernel(
    # per-chunk inputs (selected by grid axis 0)
    nf_ref, ef_ref, eidx_ref, gidx_ref,
    # encoder weights (layer invariant)
    enc_wn_ref, enc_bn_ref, enc_we_ref, enc_be_ref,
    # per-layer weights (stacked [L, ...], selected by grid axis 1)
    w1f_ref, w1t_ref, w1e_ref, b1_ref, w2_ref, b2_ref,
    rw1t_ref, rw1f_ref, rw1e_ref, rb1_ref, rw2_ref, rb2_ref,
    wu1a_ref, wu1s_ref, wu1n_ref, bu1_ref, wu2_ref, bu2_ref,
    # aggregator weights (layer invariant, gate/value split)
    wg_gate_ref, bg_gate_ref, wg_val_ref, bg_val_ref,
    # outputs
    graph_out_ref, nodes_out_ref,
    # VMEM scratch (persists across the layer axis, re-initialized at l == 0)
    nfe_ref, efe_ref, from_oh_ref, to_oh_ref, graph_oh_ref,
):
    l = pl.program_id(1)
    f32 = jnp.float32
    bf16 = jnp.bfloat16

    @pl.when(l == 0)
    def _init():
        # --- encoder (run once per chunk) ---
        nfe = jnp.dot(nf_ref[...].astype(bf16), enc_wn_ref[...],
                      preferred_element_type=f32) + enc_bn_ref[...]
        efe = jnp.dot(ef_ref[...].astype(bf16), enc_we_ref[...],
                      preferred_element_type=f32) + enc_be_ref[...]
        nfe_ref[...] = nfe.astype(bf16)       # matmul-operand copy (skip input)
        efe_ref[...] = efe.astype(bf16)
        # node_states carry lives directly in the VMEM-resident output block
        nodes_out_ref[...] = nfe

        # --- one-hot gather/scatter masks (bf16: 0/1 exact) ---
        eidx = eidx_ref[...]                  # [E, 2] int32 (from, to)
        E, N = from_oh_ref.shape
        node_iota = jax.lax.broadcasted_iota(jnp.int32, (E, N), 1)
        # padded edges carry index == N_pad -> never matches -> all-zero row
        from_oh_ref[...] = jnp.where(eidx[:, 0:1] == node_iota, 1.0, 0.0).astype(bf16)
        to_oh_ref[...] = jnp.where(eidx[:, 1:2] == node_iota, 1.0, 0.0).astype(bf16)
        Gn = graph_oh_ref.shape[0]
        graph_iota = jax.lax.broadcasted_iota(jnp.int32, (Gn, N), 0)
        # padded nodes carry graph index == n_graphs -> excluded from aggregation
        graph_oh_ref[...] = jnp.where(graph_iota == gidx_ref[...], 1.0, 0.0).astype(bf16)

    # ---------------- one propagation layer ----------------
    ns = nodes_out_ref[...]                   # f32 carry
    ns_b = ns.astype(bf16)
    efe = efe_ref[...]
    from_oh = from_oh_ref[...]
    to_oh = to_oh_ref[...]

    # gather endpoint states (one-hot matmul on the MXU)
    from_states = jnp.dot(from_oh, ns_b, preferred_element_type=f32).astype(bf16)
    to_states = jnp.dot(to_oh, ns_b, preferred_element_type=f32).astype(bf16)

    # forward messages: Linear([from, to, edge]) as split partial matmuls
    h = (jnp.dot(from_states, w1f_ref[...], preferred_element_type=f32)
         + jnp.dot(to_states, w1t_ref[...], preferred_element_type=f32)
         + jnp.dot(efe, w1e_ref[...], preferred_element_type=f32)
         + b1_ref[...])
    h = jnp.maximum(h, 0.0).astype(bf16)
    msg = (jnp.dot(h, w2_ref[...], preferred_element_type=f32)
           + b2_ref[...]).astype(bf16)

    # reverse messages: Linear([to, from, edge]) (separate params)
    hr = (jnp.dot(to_states, rw1t_ref[...], preferred_element_type=f32)
          + jnp.dot(from_states, rw1f_ref[...], preferred_element_type=f32)
          + jnp.dot(efe, rw1e_ref[...], preferred_element_type=f32)
          + rb1_ref[...])
    hr = jnp.maximum(hr, 0.0).astype(bf16)
    msg_r = (jnp.dot(hr, rw2_ref[...], preferred_element_type=f32)
             + rb2_ref[...]).astype(bf16)

    # scatter-add = contraction over the edge axis of the [E, N] masks
    # (no transposed mask copies needed)
    agg = jax.lax.dot_general(to_oh, msg, _SCATTER_DNUMS,
                              preferred_element_type=f32)
    agg = agg + jax.lax.dot_general(from_oh, msg_r, _SCATTER_DNUMS,
                                    preferred_element_type=f32)

    # node update MLP on [agg, node_states, encoded node features] + residual
    hu = (jnp.dot(agg.astype(bf16), wu1a_ref[...], preferred_element_type=f32)
          + jnp.dot(ns_b, wu1s_ref[...], preferred_element_type=f32)
          + jnp.dot(nfe_ref[...], wu1n_ref[...], preferred_element_type=f32)
          + bu1_ref[...])
    hu = jnp.maximum(hu, 0.0).astype(bf16)
    upd = jnp.dot(hu, wu2_ref[...], preferred_element_type=f32) + bu2_ref[...]
    ns_new = ns + upd
    nodes_out_ref[...] = ns_new

    # ---------------- gated aggregator (last layer only) ----------------
    @pl.when(l == pl.num_programs(1) - 1)
    def _final():
        ns_fin = ns_new.astype(bf16)
        gates = jax.nn.sigmoid(
            jnp.dot(ns_fin, wg_gate_ref[...], preferred_element_type=f32)
            + bg_gate_ref[...])
        vals = (jnp.dot(ns_fin, wg_val_ref[...], preferred_element_type=f32)
                + bg_val_ref[...])
        gated = (gates * vals).astype(bf16)
        graph_out_ref[...] = jnp.dot(graph_oh_ref[...], gated,
                                     preferred_element_type=f32)


# ----------------------------------------------------------------------------
# BlockSpec helpers + VMEM budget
# ----------------------------------------------------------------------------
def _round_up(x, m):
    return ((x + m - 1) // m) * m


def _const_spec(shape):
    nd = len(shape)
    return pl.BlockSpec(tuple(shape), lambda b, l, _nd=nd: (0,) * _nd)


def _chunk_spec(shape):
    nd = len(shape)
    return pl.BlockSpec((None,) + tuple(shape),
                        lambda b, l, _nd=nd: (b,) + (0,) * _nd)


def _layer_spec(shape):
    nd = len(shape)
    return pl.BlockSpec((None,) + tuple(shape),
                        lambda b, l, _nd=nd: (l,) + (0,) * _nd)


def _vmem_budget_bytes(Np, Ep, Fn, Fe, D, De, M, H, G, Gn):
    """Explicit working-set estimate -> vmem_limit_bytes (never below the need)."""
    F32, BF16, I32 = 4, 2, 4
    # per-layer weight slab (bf16 weights, f32 biases) -- double-buffered
    layer_slab = (BF16 * (2 * (2 * D * M + De * M + M * M)
                          + (M + 2 * D) * H + H * D)
                  + F32 * (4 * M + H + D))
    # per-chunk inputs (double-buffered)
    chunk_in = F32 * (Np * Fn + Ep * Fe) + I32 * (2 * Ep + Np)
    # layer-invariant inputs (encoder + aggregator)
    const_in = BF16 * (Fn * D + Fe * De + 2 * D * G) + F32 * (D + De + 2 * G)
    # outputs (resident across the layer axis)
    outs = F32 * (Gn * G + Np * D)
    # VMEM scratch
    scratch = BF16 * (Np * D + Ep * De + 2 * Ep * Np + Gn * Np)
    need = 2 * (layer_slab + chunk_in + const_in + outs) + scratch
    budget = max(int(1.5 * need), 16 * 1024 * 1024)
    # stay well inside v7x's 64 MiB physical VMEM, but never clamp below the need
    return int(min(budget, max(56 * 1024 * 1024, need + (4 << 20))))


# ----------------------------------------------------------------------------
# Wrapper: pads rows to full MXU tiles, streams weights in bf16, launches the
# fused kernel over (chunks x layers).
# ----------------------------------------------------------------------------
def graph_embedding_net_pallas(params, node_features, edge_features,
                               from_idx, to_idx, graph_idx, n_graphs,
                               pad_rows_to=128):
    """Fused GraphEmbeddingNet forward.

    Inputs are batched into B independent "chunks" (disjoint sets of whole
    graphs, identical semantics to concatenating them); chunks map to a leading
    "parallel" grid axis so v7x megacore can split them across TensorCores.
    node_features [B,N,Fn], edge_features [B,E,Fe], from/to_idx [B,E],
    graph_idx [B,N]; n_graphs = graphs per chunk.
    """
    f32, bf16, i32 = jnp.float32, jnp.bfloat16, jnp.int32
    B, N, Fn = node_features.shape
    _, E, Fe = edge_features.shape
    L, D, M = params["w1f"].shape
    De = params["w1e"].shape[1]
    H = params["wu1a"].shape[2]
    G = params["wg_gate"].shape[1]
    Gn = int(n_graphs)

    # pad node / edge rows so the 256x256 MXU sees full tiles
    Np = _round_up(N, pad_rows_to)
    Ep = _round_up(E, pad_rows_to)

    nf = jnp.zeros((B, Np, Fn), f32).at[:, :N].set(node_features.astype(f32))
    ef = jnp.zeros((B, Ep, Fe), f32).at[:, :E].set(edge_features.astype(f32))
    # padded edges -> node index Np (out of range -> zero one-hot row)
    eidx = jnp.full((B, Ep, 2), Np, i32)
    eidx = eidx.at[:, :E, 0].set(from_idx.astype(i32))
    eidx = eidx.at[:, :E, 1].set(to_idx.astype(i32))
    # padded nodes -> graph index n_graphs (out of range -> excluded)
    gidx = jnp.full((B, 1, Np), Gn, i32)
    gidx = gidx.at[:, 0, :N].set(graph_idx.astype(i32))

    w = lambda k: params[k].astype(bf16)   # bf16 weight streaming
    fb = lambda k: params[k].astype(f32)   # biases stay f32 (added post-accum)

    in_specs = [
        _chunk_spec((Np, Fn)), _chunk_spec((Ep, Fe)),
        _chunk_spec((Ep, 2)), _chunk_spec((1, Np)),
        _const_spec((Fn, D)), _const_spec((1, D)),
        _const_spec((Fe, De)), _const_spec((1, De)),
        # forward message net
        _layer_spec((D, M)), _layer_spec((D, M)), _layer_spec((De, M)),
        _layer_spec((1, M)), _layer_spec((M, M)), _layer_spec((1, M)),
        # reverse message net
        _layer_spec((D, M)), _layer_spec((D, M)), _layer_spec((De, M)),
        _layer_spec((1, M)), _layer_spec((M, M)), _layer_spec((1, M)),
        # node update MLP
        _layer_spec((M, H)), _layer_spec((D, H)), _layer_spec((D, H)),
        _layer_spec((1, H)), _layer_spec((H, D)), _layer_spec((1, D)),
        # aggregator (gate / value split -> two lane-dense matmuls)
        _const_spec((D, G)), _const_spec((1, G)),
        _const_spec((D, G)), _const_spec((1, G)),
    ]

    graph_states, node_states = pl.pallas_call(
        fused_gnn_kernel,
        grid=(B, L),
        out_shape=(
            jax.ShapeDtypeStruct((B, Gn, G), f32),
            jax.ShapeDtypeStruct((B, Np, D), f32),
        ),
        in_specs=in_specs,
        out_specs=(
            pl.BlockSpec((None, Gn, G), lambda b, l: (b, 0, 0)),
            pl.BlockSpec((None, Np, D), lambda b, l: (b, 0, 0)),
        ),
        scratch_shapes=[
            pltpu.VMEM((Np, D), bf16),    # encoded node features (bf16 operand copy)
            pltpu.VMEM((Ep, De), bf16),   # encoded edge features
            pltpu.VMEM((Ep, Np), bf16),   # from one-hot  [E, N]
            pltpu.VMEM((Ep, Np), bf16),   # to   one-hot  [E, N]
            pltpu.VMEM((Gn, Np), bf16),   # graph one-hot [Gn, N]
        ],
        compiler_params=pltpu.CompilerParams(
            # chunk axis -> megacore sharding (v7x); layer axis carries state
            dimension_semantics=("parallel", "arbitrary"),
            vmem_limit_bytes=_vmem_budget_bytes(Np, Ep, Fn, Fe, D, De, M, H, G, Gn),
        ),
    )(
        nf, ef, eidx, gidx,
        w("enc_wn"), fb("enc_bn"), w("enc_we"), fb("enc_be"),
        w("w1f"), w("w1t"), w("w1e"), fb("b1"), w("w2"), fb("b2"),
        w("rw1t"), w("rw1f"), w("rw1e"), fb("rb1"), w("rw2"), fb("rb2"),
        w("wu1a"), w("wu1s"), w("wu1n"), fb("bu1"), w("wu2"), fb("bu2"),
        w("wg_gate"), fb("bg_gate"), w("wg_val"), fb("bg_val"),
    )
    return graph_states, node_states[:, :N]


# ----------------------------------------------------------------------------
# Pure-JAX f32 reference (original concat form; recombining the split weight
# matrices also validates the split boundaries).  Operates on one chunk.
# ----------------------------------------------------------------------------
def graph_embedding_net_ref(params, node_features, edge_features,
                            from_idx, to_idx, graph_idx, n_graphs):
    n_nodes = node_features.shape[0]
    nf_enc = node_features @ params["enc_wn"] + params["enc_bn"]
    ef_enc = edge_features @ params["enc_we"] + params["enc_be"]
    node_states = nf_enc
    L = params["w1f"].shape[0]
    for l in range(L):
        w1 = jnp.concatenate([params["w1f"][l], params["w1t"][l], params["w1e"][l]], axis=0)
        rw1 = jnp.concatenate([params["rw1t"][l], params["rw1f"][l], params["rw1e"][l]], axis=0)
        wu1 = jnp.concatenate([params["wu1a"][l], params["wu1s"][l], params["wu1n"][l]], axis=0)

        from_states = node_states[from_idx]
        to_states = node_states[to_idx]
        edge_in = jnp.concatenate([from_states, to_states, ef_enc], axis=-1)
        h = jax.nn.relu(edge_in @ w1 + params["b1"][l])
        msg = h @ params["w2"][l] + params["b2"][l]
        agg = jax.ops.segment_sum(msg, to_idx, num_segments=n_nodes)

        edge_in_r = jnp.concatenate([to_states, from_states, ef_enc], axis=-1)
        hr = jax.nn.relu(edge_in_r @ rw1 + params["rb1"][l])
        msg_r = hr @ params["rw2"][l] + params["rb2"][l]
        agg = agg + jax.ops.segment_sum(msg_r, from_idx, num_segments=n_nodes)

        node_in = jnp.concatenate([agg, node_states, nf_enc], axis=-1)
        hu = jax.nn.relu(node_in @ wu1 + params["bu1"][l])
        upd = hu @ params["wu2"][l] + params["bu2"][l]
        node_states = node_states + upd

    wg = jnp.concatenate([params["wg_gate"], params["wg_val"]], axis=1)
    bg = jnp.concatenate([params["bg_gate"], params["bg_val"]], axis=1)
    x = node_states @ wg + bg
    G = params["wg_gate"].shape[1]
    gated = jax.nn.sigmoid(x[:, :G]) * x[:, G:]
    graph_states = jax.ops.segment_sum(gated, graph_idx, num_segments=n_graphs)
    return graph_states, node_states


# ----------------------------------------------------------------------------
# Deterministic parameter construction + driver.
# ----------------------------------------------------------------------------
def _linear(key, fan_in, fan_out, scale=None):
    kw, kb = jax.random.split(key)
    s = scale if scale is not None else 1.0 / np.sqrt(fan_in)
    w = jax.random.normal(kw, (fan_in, fan_out), jnp.float32) * s
    b = jax.random.normal(kb, (1, fan_out), jnp.float32) * 0.01
    return w, b


def build_params(key, node_feat_dim, edge_feat_dim, D, De, M, H, G,
                 n_layers, edge_net_init_scale=0.1):
    keys = list(jax.random.split(key, 4 + 6 * n_layers))
    kit = iter(keys)
    p = {}
    p["enc_wn"], p["enc_bn"] = _linear(next(kit), node_feat_dim, D)
    p["enc_we"], p["enc_be"] = _linear(next(kit), edge_feat_dim, De)

    per = {k: [] for k in ["w1f", "w1t", "w1e", "b1", "w2", "b2",
                           "rw1t", "rw1f", "rw1e", "rb1", "rw2", "rb2",
                           "wu1a", "wu1s", "wu1n", "bu1", "wu2", "bu2"]}
    for _ in range(n_layers):
        w1, b1 = _linear(next(kit), 2 * D + De, M, edge_net_init_scale)
        w2, b2 = _linear(next(kit), M, M, edge_net_init_scale)
        rw1, rb1 = _linear(next(kit), 2 * D + De, M, edge_net_init_scale)
        rw2, rb2 = _linear(next(kit), M, M, edge_net_init_scale)
        wu1, bu1 = _linear(next(kit), M + 2 * D, H)
        wu2, bu2 = _linear(next(kit), H, D)
        # forward message net input order: [from_states, to_states, edge_features]
        per["w1f"].append(w1[:D]); per["w1t"].append(w1[D:2 * D]); per["w1e"].append(w1[2 * D:])
        per["b1"].append(b1); per["w2"].append(w2); per["b2"].append(b2)
        # reverse message net input order: [to_states, from_states, edge_features]
        per["rw1t"].append(rw1[:D]); per["rw1f"].append(rw1[D:2 * D]); per["rw1e"].append(rw1[2 * D:])
        per["rb1"].append(rb1); per["rw2"].append(rw2); per["rb2"].append(rb2)
        # node update input order: [aggregated_messages, node_states, encoded node feats]
        per["wu1a"].append(wu1[:M]); per["wu1s"].append(wu1[M:M + D]); per["wu1n"].append(wu1[M + D:])
        per["bu1"].append(bu1); per["wu2"].append(wu2); per["bu2"].append(bu2)
    for k, v in per.items():
        p[k] = jnp.stack(v, axis=0)

    wg, bg = _linear(next(kit), D, 2 * G)
    p["wg_gate"], p["wg_val"] = wg[:, :G], wg[:, G:]
    p["bg_gate"], p["bg_val"] = bg[:, :G], bg[:, G:]
    return p


def _assert_close(name, got, want, tol=3e-2):
    got = np.asarray(got, np.float32)
    want = np.asarray(want, np.float32)
    scale = max(1.0, float(np.max(np.abs(want))))
    err = float(np.max(np.abs(got - want))) / scale
    assert err < tol, f"{name}: normalized max error {err:.4f} >= {tol}"


if __name__ == "__main__":
    key = jax.random.PRNGKey(0)
    kp, kd = jax.random.split(key)

    # sizes: 2 independent graph chunks, lane-dense (128-multiple) feature dims
    B = 2
    n_nodes, n_edges, n_graphs_per = 16, 32, 2
    node_feat_dim, edge_feat_dim = 16, 8
    D = 128      # node_state_dim
    De = 128     # encoded edge feature dim (edge_state_dim)
    M = 128      # edge_hidden_sizes[-1] -> message dim
    H = 128      # node-update MLP hidden width
    G = 128      # graph representation dim
    n_prop_layers = 3

    params = build_params(kp, node_feat_dim, edge_feat_dim, D, De, M, H, G,
                          n_prop_layers)

    k1, k2, k3, k4 = jax.random.split(kd, 4)
    node_features = jax.random.normal(k1, (B, n_nodes, node_feat_dim), jnp.float32)
    edge_features = jax.random.normal(k2, (B, n_edges, edge_feat_dim), jnp.float32)
    from_idx = jax.random.randint(k3, (B, n_edges), 0, n_nodes, dtype=jnp.int32)
    to_idx = jax.random.randint(k4, (B, n_edges), 0, n_nodes, dtype=jnp.int32)
    graph_idx = jnp.tile(
        jnp.repeat(jnp.arange(n_graphs_per, dtype=jnp.int32),
                   n_nodes // n_graphs_per)[None, :], (B, 1))

    graph_states, final_states = graph_embedding_net_pallas(
        params, node_features, edge_features, from_idx, to_idx,
        graph_idx, n_graphs_per)
    graph_states = jax.block_until_ready(graph_states)
    final_states = jax.block_until_ready(final_states)

    assert graph_states.shape == (B, n_graphs_per, G)
    assert final_states.shape == (B, n_nodes, D)

    # kernel streams bf16 operands with f32 accumulation, so the tolerance is
    # normalized-max-error < 3e-2 against the pure-f32 reference.
    for b in range(B):
        ref_graph, ref_final = graph_embedding_net_ref(
            params, node_features[b], edge_features[b],
            from_idx[b], to_idx[b], graph_idx[b], n_graphs_per)
        _assert_close(f"graph_states[{b}]", graph_states[b], ref_graph)
        _assert_close(f"final_states[{b}]", final_states[b], ref_final)

    print("KERNEL_OK")
</pallas_src>

<mosaic_0001>
module attributes {stable_mosaic.version = 11 : i64} {
  func.func @fused_gnn_kernel(%arg0: i32, %arg1: i32, %arg2: memref<1x128x16xf32, #tpu.memory_space<vmem>>, %arg3: memref<1x128x8xf32, #tpu.memory_space<vmem>>, %arg4: memref<1x128x2xi32, #tpu.memory_space<vmem>>, %arg5: memref<1x1x128xi32, #tpu.memory_space<vmem>>, %arg6: memref<16x128xbf16, #tpu.memory_space<vmem>>, %arg7: memref<1x128xf32, #tpu.memory_space<vmem>>, %arg8: memref<8x128xbf16, #tpu.memory_space<vmem>>, %arg9: memref<1x128xf32, #tpu.memory_space<vmem>>, %arg10: memref<1x128x128xbf16, #tpu.memory_space<vmem>>, %arg11: memref<1x128x128xbf16, #tpu.memory_space<vmem>>, %arg12: memref<1x128x128xbf16, #tpu.memory_space<vmem>>, %arg13: memref<1x1x128xf32, #tpu.memory_space<vmem>>, %arg14: memref<1x128x128xbf16, #tpu.memory_space<vmem>>, %arg15: memref<1x1x128xf32, #tpu.memory_space<vmem>>, %arg16: memref<1x128x128xbf16, #tpu.memory_space<vmem>>, %arg17: memref<1x128x128xbf16, #tpu.memory_space<vmem>>, %arg18: memref<1x128x128xbf16, #tpu.memory_space<vmem>>, %arg19: memref<1x1x128xf32, #tpu.memory_space<vmem>>, %arg20: memref<1x128x128xbf16, #tpu.memory_space<vmem>>, %arg21: memref<1x1x128xf32, #tpu.memory_space<vmem>>, %arg22: memref<1x128x128xbf16, #tpu.memory_space<vmem>>, %arg23: memref<1x128x128xbf16, #tpu.memory_space<vmem>>, %arg24: memref<1x128x128xbf16, #tpu.memory_space<vmem>>, %arg25: memref<1x1x128xf32, #tpu.memory_space<vmem>>, %arg26: memref<1x128x128xbf16, #tpu.memory_space<vmem>>, %arg27: memref<1x1x128xf32, #tpu.memory_space<vmem>>, %arg28: memref<128x128xbf16, #tpu.memory_space<vmem>>, %arg29: memref<1x128xf32, #tpu.memory_space<vmem>>, %arg30: memref<128x128xbf16, #tpu.memory_space<vmem>>, %arg31: memref<1x128xf32, #tpu.memory_space<vmem>>, %arg32: memref<1x2x128xf32, #tpu.memory_space<vmem>>, %arg33: memref<1x128x128xf32, #tpu.memory_space<vmem>>, %arg34: memref<128x128xbf16, #tpu.memory_space<vmem>>, %arg35: memref<128x128xbf16, #tpu.memory_space<vmem>>, %arg36: memref<128x128xbf16, #tpu.memory_space<vmem>>, %arg37: memref<128x128xbf16, #tpu.memory_space<vmem>>, %arg38: memref<2x128xbf16, #tpu.memory_space<vmem>>) attributes {dimension_semantics = [#tpu.dimension_semantics<parallel>, #tpu.dimension_semantics<arbitrary>], iteration_bounds = array<i64: 2, 3>, scalar_prefetch = 0 : i64, scratch_operands = 5 : i64, tpu.core_type = #tpu.core_type<tc>, window_params = [{transform_indices = @transform_0, window_bounds = array<i64: 1, 128, 16>}, {transform_indices = @transform_1, window_bounds = array<i64: 1, 128, 8>}, {transform_indices = @transform_2, window_bounds = array<i64: 1, 128, 2>}, {transform_indices = @transform_3, window_bounds = array<i64: 1, 1, 128>}, {pipeline_mode = #tpu.pipeline_mode<synchronous>, transform_indices = @transform_4, window_bounds = array<i64: 16, 128>}, {pipeline_mode = #tpu.pipeline_mode<synchronous>, transform_indices = @transform_5, window_bounds = array<i64: 1, 128>}, {pipeline_mode = #tpu.pipeline_mode<synchronous>, transform_indices = @transform_6, window_bounds = array<i64: 8, 128>}, {pipeline_mode = #tpu.pipeline_mode<synchronous>, transform_indices = @transform_7, window_bounds = array<i64: 1, 128>}, {transform_indices = @transform_8, window_bounds = array<i64: 1, 128, 128>}, {transform_indices = @transform_9, window_bounds = array<i64: 1, 128, 128>}, {transform_indices = @transform_10, window_bounds = array<i64: 1, 128, 128>}, {transform_indices = @transform_11, window_bounds = array<i64: 1, 1, 128>}, {transform_indices = @transform_12, window_bounds = array<i64: 1, 128, 128>}, {transform_indices = @transform_13, window_bounds = array<i64: 1, 1, 128>}, {transform_indices = @transform_14, window_bounds = array<i64: 1, 128, 128>}, {transform_indices = @transform_15, window_bounds = array<i64: 1, 128, 128>}, {transform_indices = @transform_16, window_bounds = array<i64: 1, 128, 128>}, {transform_indices = @transform_17, window_bounds = array<i64: 1, 1, 128>}, {transform_indices = @transform_18, window_bounds = array<i64: 1, 128, 128>}, {transform_indices = @transform_19, window_bounds = array<i64: 1, 1, 128>}, {transform_indices = @transform_20, window_bounds = array<i64: 1, 128, 128>}, {transform_indices = @transform_21, window_bounds = array<i64: 1, 128, 128>}, {transform_indices = @transform_22, window_bounds = array<i64: 1, 128, 128>}, {transform_indices = @transform_23, window_bounds = array<i64: 1, 1, 128>}, {transform_indices = @transform_24, window_bounds = array<i64: 1, 128, 128>}, {transform_indices = @transform_25, window_bounds = array<i64: 1, 1, 128>}, {pipeline_mode = #tpu.pipeline_mode<synchronous>, transform_indices = @transform_26, window_bounds = array<i64: 128, 128>}, {pipeline_mode = #tpu.pipeline_mode<synchronous>, transform_indices = @transform_27, window_bounds = array<i64: 1, 128>}, {pipeline_mode = #tpu.pipeline_mode<synchronous>, transform_indices = @transform_28, window_bounds = array<i64: 128, 128>}, {pipeline_mode = #tpu.pipeline_mode<synchronous>, transform_indices = @transform_29, window_bounds = array<i64: 1, 128>}, {transform_indices = @transform_30, window_bounds = array<i64: 1, 2, 128>}, {transform_indices = @transform_31, window_bounds = array<i64: 1, 128, 128>}]} {
    %c0_i32 = arith.constant 0 : i32
    %0 = arith.cmpi eq, %arg1, %c0_i32 : i32
    %1 = arith.extui %0 : i1 to i32
    %c0_i32_0 = arith.constant 0 : i32
    %2 = arith.cmpi ne, %1, %c0_i32_0 : i32
    scf.if %2 {
      %c0_87 = arith.constant 0 : index
      %c0_88 = arith.constant 0 : index
      %c0_89 = arith.constant 0 : index
      %102 = vector.load %arg2[%c0_87, %c0_88, %c0_89] : memref<1x128x16xf32, #tpu.memory_space<vmem>>, vector<1x128x16xf32>
      %103 = vector.shape_cast %102 : vector<1x128x16xf32> to vector<128x16xf32>
      %104 = arith.truncf %103 : vector<128x16xf32> to vector<128x16xbf16>
      %c0_90 = arith.constant 0 : index
      %c0_91 = arith.constant 0 : index
      %105 = vector.load %arg6[%c0_90, %c0_91] : memref<16x128xbf16, #tpu.memory_space<vmem>>, vector<16x128xbf16>
      %cst_92 = arith.constant dense<0.000000e+00> : vector<128x128xf32>
      %106 = tpu.matmul %104, %105, %cst_92 {dimension_numbers = #tpu.dot_dimension_numbers<[1], [0], [0], [1], [0, 0, 1, 1], [], []>} : vector<128x16xbf16>, vector<16x128xbf16>, vector<128x128xf32> -> vector<128x128xf32>
      %c0_93 = arith.constant 0 : index
      %c0_94 = arith.constant 0 : index
      %107 = vector.load %arg7[%c0_93, %c0_94] : memref<1x128xf32, #tpu.memory_space<vmem>>, vector<1x128xf32>
      %108 = vector.broadcast %107 : vector<1x128xf32> to vector<128x128xf32>
      %109 = arith.addf %106, %108 : vector<128x128xf32>
      %c0_95 = arith.constant 0 : index
      %c0_96 = arith.constant 0 : index
      %c0_97 = arith.constant 0 : index
      %110 = vector.load %arg3[%c0_95, %c0_96, %c0_97] : memref<1x128x8xf32, #tpu.memory_space<vmem>>, vector<1x128x8xf32>
      %111 = vector.shape_cast %110 : vector<1x128x8xf32> to vector<128x8xf32>
      %112 = arith.truncf %111 : vector<128x8xf32> to vector<128x8xbf16>
      %c0_98 = arith.constant 0 : index
      %c0_99 = arith.constant 0 : index
      %113 = vector.load %arg8[%c0_98, %c0_99] : memref<8x128xbf16, #tpu.memory_space<vmem>>, vector<8x128xbf16>
      %cst_100 = arith.constant dense<0.000000e+00> : vector<128x128xf32>
      %114 = tpu.matmul %112, %113, %cst_100 {dimension_numbers = #tpu.dot_dimension_numbers<[1], [0], [0], [1], [0, 0, 1, 1], [], []>} : vector<128x8xbf16>, vector<8x128xbf16>, vector<128x128xf32> -> vector<128x128xf32>
      %c0_101 = arith.constant 0 : index
      %c0_102 = arith.constant 0 : index
      %115 = vector.load %arg9[%c0_101, %c0_102] : memref<1x128xf32, #tpu.memory_space<vmem>>, vector<1x128xf32>
      %116 = vector.broadcast %115 : vector<1x128xf32> to vector<128x128xf32>
      %117 = arith.addf %114, %116 : vector<128x128xf32>
      %118 = arith.truncf %109 : vector<128x128xf32> to vector<128x128xbf16>
      %c0_103 = arith.constant 0 : index
      %c0_104 = arith.constant 0 : index
      %119 = vector.load %arg34[%c0_103, %c0_104] : memref<128x128xbf16, #tpu.memory_space<vmem>>, vector<128x128xbf16>
      tpu.vector_store %arg34[%c0_103, %c0_104], %118 {strides = array<i32>} : memref<128x128xbf16, #tpu.memory_space<vmem>>, vector<128x128xbf16>,
      %120 = arith.truncf %117 : vector<128x128xf32> to vector<128x128xbf16>
      %c0_105 = arith.constant 0 : index
      %c0_106 = arith.constant 0 : index
      %121 = vector.load %arg35[%c0_105, %c0_106] : memref<128x128xbf16, #tpu.memory_space<vmem>>, vector<128x128xbf16>
      tpu.vector_store %arg35[%c0_105, %c0_106], %120 {strides = array<i32>} : memref<128x128xbf16, #tpu.memory_space<vmem>>, vector<128x128xbf16>,
      %c0_107 = arith.constant 0 : index
      %c0_108 = arith.constant 0 : index
      %c0_109 = arith.constant 0 : index
      %122 = vector.load %arg33[%c0_107, %c0_108, %c0_109] : memref<1x128x128xf32, #tpu.memory_space<vmem>>, vector<1x128x128xf32>
      %123 = vector.shape_cast %122 : vector<1x128x128xf32> to vector<128x128xf32>
      %124 = vector.shape_cast %109 : vector<128x128xf32> to vector<1x128x128xf32>
      tpu.vector_store %arg33[%c0_107, %c0_108, %c0_109], %124 {strides = array<i32>} : memref<1x128x128xf32, #tpu.memory_space<vmem>>, vector<1x128x128xf32>,
      %c0_110 = arith.constant 0 : index
      %c0_111 = arith.constant 0 : index
      %c0_112 = arith.constant 0 : index
      %125 = vector.load %arg4[%c0_110, %c0_111, %c0_112] : memref<1x128x2xi32, #tpu.memory_space<vmem>>, vector<1x128x2xi32>
      %126 = vector.shape_cast %125 : vector<1x128x2xi32> to vector<128x2xi32>
      %127 = tpu.iota {dimensions = array<i32: 1>} : vector<128x128xi32>
      %128 = vector.extract_strided_slice %126 {offsets = [0, 0], sizes = [128, 1], strides = [1, 1]} : vector<128x2xi32> to vector<128x1xi32>
      %129 = vector.broadcast %128 : vector<128x1xi32> to vector<128x128xi32>
      %130 = arith.cmpi eq, %129, %127 : vector<128x128xi32>
      %cst_113 = arith.constant 1.000000e+00 : f32
      %cst_114 = arith.constant 0.000000e+00 : f32
      %131 = vector.broadcast %cst_113 : f32 to vector<128x128xf32>
      %132 = vector.broadcast %cst_114 : f32 to vector<128x128xf32>
      %133 = arith.select %130, %131, %132 : vector<128x128xi1>, vector<128x128xf32>
      %134 = arith.truncf %133 : vector<128x128xf32> to vector<128x128xbf16>
      %c0_115 = arith.constant 0 : index
      %c0_116 = arith.constant 0 : index
      %135 = vector.load %arg36[%c0_115, %c0_116] : memref<128x128xbf16, #tpu.memory_space<vmem>>, vector<128x128xbf16>
      tpu.vector_store %arg36[%c0_115, %c0_116], %134 {strides = array<i32>} : memref<128x128xbf16, #tpu.memory_space<vmem>>, vector<128x128xbf16>,
      %136 = vector.extract_strided_slice %126 {offsets = [0, 1], sizes = [128, 1], strides = [1, 1]} : vector<128x2xi32> to vector<128x1xi32>
      %137 = vector.broadcast %136 : vector<128x1xi32> to vector<128x128xi32>
      %138 = arith.cmpi eq, %137, %127 : vector<128x128xi32>
      %cst_117 = arith.constant 1.000000e+00 : f32
      %cst_118 = arith.constant 0.000000e+00 : f32
      %139 = vector.broadcast %cst_117 : f32 to vector<128x128xf32>
      %140 = vector.broadcast %cst_118 : f32 to vector<128x128xf32>
      %141 = arith.select %138, %139, %140 : vector<128x128xi1>, vector<128x128xf32>
      %142 = arith.truncf %141 : vector<128x128xf32> to vector<128x128xbf16>
      %c0_119 = arith.constant 0 : index
      %c0_120 = arith.constant 0 : index
      %143 = vector.load %arg37[%c0_119, %c0_120] : memref<128x128xbf16, #tpu.memory_space<vmem>>, vector<128x128xbf16>
      tpu.vector_store %arg37[%c0_119, %c0_120], %142 {strides = array<i32>} : memref<128x128xbf16, #tpu.memory_space<vmem>>, vector<128x128xbf16>,
      %144 = tpu.iota {dimensions = array<i32: 0>} : vector<2x128xi32>
      %c0_121 = arith.constant 0 : index
      %c0_122 = arith.constant 0 : index
      %c0_123 = arith.constant 0 : index
      %145 = vector.load %arg5[%c0_121, %c0_122, %c0_123] : memref<1x1x128xi32, #tpu.memory_space<vmem>>, vector<1x1x128xi32>
      %146 = vector.shape_cast %145 : vector<1x1x128xi32> to vector<1x128xi32>
      %147 = vector.broadcast %146 : vector<1x128xi32> to vector<2x128xi32>
      %148 = arith.cmpi eq, %144, %147 : vector<2x128xi32>
      %cst_124 = arith.constant 1.000000e+00 : f32
      %cst_125 = arith.constant 0.000000e+00 : f32
      %149 = vector.broadcast %cst_124 : f32 to vector<2x128xf32>
      %150 = vector.broadcast %cst_125 : f32 to vector<2x128xf32>
      %151 = arith.select %148, %149, %150 : vector<2x128xi1>, vector<2x128xf32>
      %152 = arith.truncf %151 : vector<2x128xf32> to vector<2x128xbf16>
      %c0_126 = arith.constant 0 : index
      %c0_127 = arith.constant 0 : index
      %153 = vector.load %arg38[%c0_126, %c0_127] : memref<2x128xbf16, #tpu.memory_space<vmem>>, vector<2x128xbf16>
      tpu.vector_store %arg38[%c0_126, %c0_127], %152 {strides = array<i32>} : memref<2x128xbf16, #tpu.memory_space<vmem>>, vector<2x128xbf16>,
    } else {
    }
    %c0 = arith.constant 0 : index
    %c0_1 = arith.constant 0 : index
    %c0_2 = arith.constant 0 : index
    %3 = vector.load %arg33[%c0, %c0_1, %c0_2] : memref<1x128x128xf32, #tpu.memory_space<vmem>>, vector<1x128x128xf32>
    %4 = vector.shape_cast %3 : vector<1x128x128xf32> to vector<128x128xf32>
    %5 = arith.truncf %4 : vector<128x128xf32> to vector<128x128xbf16>
    %c0_3 = arith.constant 0 : index
    %c0_4 = arith.constant 0 : index
    %6 = vector.load %arg35[%c0_3, %c0_4] : memref<128x128xbf16, #tpu.memory_space<vmem>>, vector<128x128xbf16>
    %c0_5 = arith.constant 0 : index
    %c0_6 = arith.constant 0 : index
    %7 = vector.load %arg36[%c0_5, %c0_6] : memref<128x128xbf16, #tpu.memory_space<vmem>>, vector<128x128xbf16>
    %c0_7 = arith.constant 0 : index
    %c0_8 = arith.constant 0 : index
    %8 = vector.load %arg37[%c0_7, %c0_8] : memref<128x128xbf16, #tpu.memory_space<vmem>>, vector<128x128xbf16>
    %cst = arith.constant dense<0.000000e+00> : vector<128x128xf32>
    %9 = tpu.matmul %7, %5, %cst {dimension_numbers = #tpu.dot_dimension_numbers<[1], [0], [0], [1], [0, 0, 1, 1], [], []>} : vector<128x128xbf16>, vector<128x128xbf16>, vector<128x128xf32> -> vector<128x128xf32>
    %10 = arith.truncf %9 : vector<128x128xf32> to vector<128x128xbf16>
    %cst_9 = arith.constant dense<0.000000e+00> : vector<128x128xf32>
    %11 = tpu.matmul %8, %5, %cst_9 {dimension_numbers = #tpu.dot_dimension_numbers<[1], [0], [0], [1], [0, 0, 1, 1], [], []>} : vector<128x128xbf16>, vector<128x128xbf16>, vector<128x128xf32> -> vector<128x128xf32>
    %12 = arith.truncf %11 : vector<128x128xf32> to vector<128x128xbf16>
    %c0_10 = arith.constant 0 : index
    %c0_11 = arith.constant 0 : index
    %c0_12 = arith.constant 0 : index
    %13 = vector.load %arg10[%c0_10, %c0_11, %c0_12] : memref<1x128x128xbf16, #tpu.memory_space<vmem>>, vector<1x128x128xbf16>
    %14 = vector.shape_cast %13 : vector<1x128x128xbf16> to vector<128x128xbf16>
    %cst_13 = arith.constant dense<0.000000e+00> : vector<128x128xf32>
    %15 = tpu.matmul %10, %14, %cst_13 {dimension_numbers = #tpu.dot_dimension_numbers<[1], [0], [0], [1], [0, 0, 1, 1], [], []>} : vector<128x128xbf16>, vector<128x128xbf16>, vector<128x128xf32> -> vector<128x128xf32>
    %c0_14 = arith.constant 0 : index
    %c0_15 = arith.constant 0 : index
    %c0_16 = arith.constant 0 : index
    %16 = vector.load %arg11[%c0_14, %c0_15, %c0_16] : memref<1x128x128xbf16, #tpu.memory_space<vmem>>, vector<1x128x128xbf16>
    %17 = vector.shape_cast %16 : vector<1x128x128xbf16> to vector<128x128xbf16>
    %cst_17 = arith.constant dense<0.000000e+00> : vector<128x128xf32>
    %18 = tpu.matmul %12, %17, %cst_17 {dimension_numbers = #tpu.dot_dimension_numbers<[1], [0], [0], [1], [0, 0, 1, 1], [], []>} : vector<128x128xbf16>, vector<128x128xbf16>, vector<128x128xf32> -> vector<128x128xf32>
    %19 = arith.addf %15, %18 : vector<128x128xf32>
    %c0_18 = arith.constant 0 : index
    %c0_19 = arith.constant 0 : index
    %c0_20 = arith.constant 0 : index
    %20 = vector.load %arg12[%c0_18, %c0_19, %c0_20] : memref<1x128x128xbf16, #tpu.memory_space<vmem>>, vector<1x128x128xbf16>
    %21 = vector.shape_cast %20 : vector<1x128x128xbf16> to vector<128x128xbf16>
    %cst_21 = arith.constant dense<0.000000e+00> : vector<128x128xf32>
    %22 = tpu.matmul %6, %21, %cst_21 {dimension_numbers = #tpu.dot_dimension_numbers<[1], [0], [0], [1], [0, 0, 1, 1], [], []>} : vector<128x128xbf16>, vector<128x128xbf16>, vector<128x128xf32> -> vector<128x128xf32>
    %23 = arith.addf %19, %22 : vector<128x128xf32>
    %c0_22 = arith.constant 0 : index
    %c0_23 = arith.constant 0 : index
    %c0_24 = arith.constant 0 : index
    %24 = vector.load %arg13[%c0_22, %c0_23, %c0_24] : memref<1x1x128xf32, #tpu.memory_space<vmem>>, vector<1x1x128xf32>
    %25 = vector.shape_cast %24 : vector<1x1x128xf32> to vector<1x128xf32>
    %26 = vector.broadcast %25 : vector<1x128xf32> to vector<128x128xf32>
    %27 = arith.addf %23, %26 : vector<128x128xf32>
    %cst_25 = arith.constant 0.000000e+00 : f32
    %28 = vector.broadcast %cst_25 : f32 to vector<128x128xf32>
    %29 = arith.maximumf %27, %28 : vector<128x128xf32>
    %30 = arith.truncf %29 : vector<128x128xf32> to vector<128x128xbf16>
    %c0_26 = arith.constant 0 : index
    %c0_27 = arith.constant 0 : index
    %c0_28 = arith.constant 0 : index
    %31 = vector.load %arg14[%c0_26, %c0_27, %c0_28] : memref<1x128x128xbf16, #tpu.memory_space<vmem>>, vector<1x128x128xbf16>
    %32 = vector.shape_cast %31 : vector<1x128x128xbf16> to vector<128x128xbf16>
    %cst_29 = arith.constant dense<0.000000e+00> : vector<128x128xf32>
    %33 = tpu.matmul %30, %32, %cst_29 {dimension_numbers = #tpu.dot_dimension_numbers<[1], [0], [0], [1], [0, 0, 1, 1], [], []>} : vector<128x128xbf16>, vector<128x128xbf16>, vector<128x128xf32> -> vector<128x128xf32>
    %c0_30 = arith.constant 0 : index
    %c0_31 = arith.constant 0 : index
    %c0_32 = arith.constant 0 : index
    %34 = vector.load %arg15[%c0_30, %c0_31, %c0_32] : memref<1x1x128xf32, #tpu.memory_space<vmem>>, vector<1x1x128xf32>
    %35 = vector.shape_cast %34 : vector<1x1x128xf32> to vector<1x128xf32>
    %36 = vector.broadcast %35 : vector<1x128xf32> to vector<128x128xf32>
    %37 = arith.addf %33, %36 : vector<128x128xf32>
    %38 = arith.truncf %37 : vector<128x128xf32> to vector<128x128xbf16>
    %c0_33 = arith.constant 0 : index
    %c0_34 = arith.constant 0 : index
    %c0_35 = arith.constant 0 : index
    %39 = vector.load %arg16[%c0_33, %c0_34, %c0_35] : memref<1x128x128xbf16, #tpu.memory_space<vmem>>, vector<1x128x128xbf16>
    %40 = vector.shape_cast %39 : vector<1x128x128xbf16> to vector<128x128xbf16>
    %cst_36 = arith.constant dense<0.000000e+00> : vector<128x128xf32>
    %41 = tpu.matmul %12, %40, %cst_36 {dimension_numbers = #tpu.dot_dimension_numbers<[1], [0], [0], [1], [0, 0, 1, 1], [], []>} : vector<128x128xbf16>, vector<128x128xbf16>, vector<128x128xf32> -> vector<128x128xf32>
    %c0_37 = arith.constant 0 : index
    %c0_38 = arith.constant 0 : index
    %c0_39 = arith.constant 0 : index
    %42 = vector.load %arg17[%c0_37, %c0_38, %c0_39] : memref<1x128x128xbf16, #tpu.memory_space<vmem>>, vector<1x128x128xbf16>
    %43 = vector.shape_cast %42 : vector<1x128x128xbf16> to vector<128x128xbf16>
    %cst_40 = arith.constant dense<0.000000e+00> : vector<128x128xf32>
    %44 = tpu.matmul %10, %43, %cst_40 {dimension_numbers = #tpu.dot_dimension_numbers<[1], [0], [0], [1], [0, 0, 1, 1], [], []>} : vector<128x128xbf16>, vector<128x128xbf16>, vector<128x128xf32> -> vector<128x128xf32>
    %45 = arith.addf %41, %44 : vector<128x128xf32>
    %c0_41 = arith.constant 0 : index
    %c0_42 = arith.constant 0 : index
    %c0_43 = arith.constant 0 : index
    %46 = vector.load %arg18[%c0_41, %c0_42, %c0_43] : memref<1x128x128xbf16, #tpu.memory_space<vmem>>, vector<1x128x128xbf16>
    %47 = vector.shape_cast %46 : vector<1x128x128xbf16> to vector<128x128xbf16>
    %cst_44 = arith.constant dense<0.000000e+00> : vector<128x128xf32>
    %48 = tpu.matmul %6, %47, %cst_44 {dimension_numbers = #tpu.dot_dimension_numbers<[1], [0], [0], [1], [0, 0, 1, 1], [], []>} : vector<128x128xbf16>, vector<128x128xbf16>, vector<128x128xf32> -> vector<128x128xf32>
    %49 = arith.addf %45, %48 : vector<128x128xf32>
    %c0_45 = arith.constant 0 : index
    %c0_46 = arith.constant 0 : index
    %c0_47 = arith.constant 0 : index
    %50 = vector.load %arg19[%c0_45, %c0_46, %c0_47] : memref<1x1x128xf32, #tpu.memory_space<vmem>>, vector<1x1x128xf32>
    %51 = vector.shape_cast %50 : vector<1x1x128xf32> to vector<1x128xf32>
    %52 = vector.broadcast %51 : vector<1x128xf32> to vector<128x128xf32>
    %53 = arith.addf %49, %52 : vector<128x128xf32>
    %cst_48 = arith.constant 0.000000e+00 : f32
    %54 = vector.broadcast %cst_48 : f32 to vector<128x128xf32>
    %55 = arith.maximumf %53, %54 : vector<128x128xf32>
    %56 = arith.truncf %55 : vector<128x128xf32> to vector<128x128xbf16>
    %c0_49 = arith.constant 0 : index
    %c0_50 = arith.constant 0 : index
    %c0_51 = arith.constant 0 : index
    %57 = vector.load %arg20[%c0_49, %c0_50, %c0_51] : memref<1x128x128xbf16, #tpu.memory_space<vmem>>, vector<1x128x128xbf16>
    %58 = vector.shape_cast %57 : vector<1x128x128xbf16> to vector<128x128xbf16>
    %cst_52 = arith.constant dense<0.000000e+00> : vector<128x128xf32>
    %59 = tpu.matmul %56, %58, %cst_52 {dimension_numbers = #tpu.dot_dimension_numbers<[1], [0], [0], [1], [0, 0, 1, 1], [], []>} : vector<128x128xbf16>, vector<128x128xbf16>, vector<128x128xf32> -> vector<128x128xf32>
    %c0_53 = arith.constant 0 : index
    %c0_54 = arith.constant 0 : index
    %c0_55 = arith.constant 0 : index
    %60 = vector.load %arg21[%c0_53, %c0_54, %c0_55] : memref<1x1x128xf32, #tpu.memory_space<vmem>>, vector<1x1x128xf32>
    %61 = vector.shape_cast %60 : vector<1x1x128xf32> to vector<1x128xf32>
    %62 = vector.broadcast %61 : vector<1x128xf32> to vector<128x128xf32>
    %63 = arith.addf %59, %62 : vector<128x128xf32>
    %64 = arith.truncf %63 : vector<128x128xf32> to vector<128x128xbf16>
    %cst_56 = arith.constant dense<0.000000e+00> : vector<128x128xf32>
    %65 = tpu.matmul %8, %38, %cst_56 {dimension_numbers = #tpu.dot_dimension_numbers<[0], [0], [1], [1], [0, 1, 1, 1], [], []>} : vector<128x128xbf16>, vector<128x128xbf16>, vector<128x128xf32> -> vector<128x128xf32>
    %cst_57 = arith.constant dense<0.000000e+00> : vector<128x128xf32>
    %66 = tpu.matmul %7, %64, %cst_57 {dimension_numbers = #tpu.dot_dimension_numbers<[0], [0], [1], [1], [0, 1, 1, 1], [], []>} : vector<128x128xbf16>, vector<128x128xbf16>, vector<128x128xf32> -> vector<128x128xf32>
    %67 = arith.addf %65, %66 : vector<128x128xf32>
    %68 = arith.truncf %67 : vector<128x128xf32> to vector<128x128xbf16>
    %c0_58 = arith.constant 0 : index
    %c0_59 = arith.constant 0 : index
    %c0_60 = arith.constant 0 : index
    %69 = vector.load %arg22[%c0_58, %c0_59, %c0_60] : memref<1x128x128xbf16, #tpu.memory_space<vmem>>, vector<1x128x128xbf16>
    %70 = vector.shape_cast %69 : vector<1x128x128xbf16> to vector<128x128xbf16>
    %cst_61 = arith.constant dense<0.000000e+00> : vector<128x128xf32>
    %71 = tpu.matmul %68, %70, %cst_61 {dimension_numbers = #tpu.dot_dimension_numbers<[1], [0], [0], [1], [0, 0, 1, 1], [], []>} : vector<128x128xbf16>, vector<128x128xbf16>, vector<128x128xf32> -> vector<128x128xf32>
    %c0_62 = arith.constant 0 : index
    %c0_63 = arith.constant 0 : index
    %c0_64 = arith.constant 0 : index
    %72 = vector.load %arg23[%c0_62, %c0_63, %c0_64] : memref<1x128x128xbf16, #tpu.memory_space<vmem>>, vector<1x128x128xbf16>
    %73 = vector.shape_cast %72 : vector<1x128x128xbf16> to vector<128x128xbf16>
    %cst_65 = arith.constant dense<0.000000e+00> : vector<128x128xf32>
    %74 = tpu.matmul %5, %73, %cst_65 {dimension_numbers = #tpu.dot_dimension_numbers<[1], [0], [0], [1], [0, 0, 1, 1], [], []>} : vector<128x128xbf16>, vector<128x128xbf16>, vector<128x128xf32> -> vector<128x128xf32>
    %75 = arith.addf %71, %74 : vector<128x128xf32>
    %c0_66 = arith.constant 0 : index
    %c0_67 = arith.constant 0 : index
    %76 = vector.load %arg34[%c0_66, %c0_67] : memref<128x128xbf16, #tpu.memory_space<vmem>>, vector<128x128xbf16>
    %c0_68 = arith.constant 0 : index
    %c0_69 = arith.constant 0 : index
    %c0_70 = arith.constant 0 : index
    %77 = vector.load %arg24[%c0_68, %c0_69, %c0_70] : memref<1x128x128xbf16, #tpu.memory_space<vmem>>, vector<1x128x128xbf16>
    %78 = vector.shape_cast %77 : vector<1x128x128xbf16> to vector<128x128xbf16>
    %cst_71 = arith.constant dense<0.000000e+00> : vector<128x128xf32>
    %79 = tpu.matmul %76, %78, %cst_71 {dimension_numbers = #tpu.dot_dimension_numbers<[1], [0], [0], [1], [0, 0, 1, 1], [], []>} : vector<128x128xbf16>, vector<128x128xbf16>, vector<128x128xf32> -> vector<128x128xf32>
    %80 = arith.addf %75, %79 : vector<128x128xf32>
    %c0_72 = arith.constant 0 : index
    %c0_73 = arith.constant 0 : index
    %c0_74 = arith.constant 0 : index
    %81 = vector.load %arg25[%c0_72, %c0_73, %c0_74] : memref<1x1x128xf32, #tpu.memory_space<vmem>>, vector<1x1x128xf32>
    %82 = vector.shape_cast %81 : vector<1x1x128xf32> to vector<1x128xf32>
    %83 = vector.broadcast %82 : vector<1x128xf32> to vector<128x128xf32>
    %84 = arith.addf %80, %83 : vector<128x128xf32>
    %cst_75 = arith.constant 0.000000e+00 : f32
    %85 = vector.broadcast %cst_75 : f32 to vector<128x128xf32>
    %86 = arith.maximumf %84, %85 : vector<128x128xf32>
    %87 = arith.truncf %86 : vector<128x128xf32> to vector<128x128xbf16>
    %c0_76 = arith.constant 0 : index
    %c0_77 = arith.constant 0 : index
    %c0_78 = arith.constant 0 : index
    %88 = vector.load %arg26[%c0_76, %c0_77, %c0_78] : memref<1x128x128xbf16, #tpu.memory_space<vmem>>, vector<1x128x128xbf16>
    %89 = vector.shape_cast %88 : vector<1x128x128xbf16> to vector<128x128xbf16>
    %cst_79 = arith.constant dense<0.000000e+00> : vector<128x128xf32>
    %90 = tpu.matmul %87, %89, %cst_79 {dimension_numbers = #tpu.dot_dimension_numbers<[1], [0], [0], [1], [0, 0, 1, 1], [], []>} : vector<128x128xbf16>, vector<128x128xbf16>, vector<128x128xf32> -> vector<128x128xf32>
    %c0_80 = arith.constant 0 : index
    %c0_81 = arith.constant 0 : index
    %c0_82 = arith.constant 0 : index
    %91 = vector.load %arg27[%c0_80, %c0_81, %c0_82] : memref<1x1x128xf32, #tpu.memory_space<vmem>>, vector<1x1x128xf32>
    %92 = vector.shape_cast %91 : vector<1x1x128xf32> to vector<1x128xf32>
    %93 = vector.broadcast %92 : vector<1x128xf32> to vector<128x128xf32>
    %94 = arith.addf %90, %93 : vector<128x128xf32>
    %95 = arith.addf %4, %94 : vector<128x128xf32>
    %c0_83 = arith.constant 0 : index
    %c0_84 = arith.constant 0 : index
    %c0_85 = arith.constant 0 : index
    %96 = vector.load %arg33[%c0_83, %c0_84, %c0_85] : memref<1x128x128xf32, #tpu.memory_space<vmem>>, vector<1x128x128xf32>
    %97 = vector.shape_cast %96 : vector<1x128x128xf32> to vector<128x128xf32>
    %98 = vector.shape_cast %95 : vector<128x128xf32> to vector<1x128x128xf32>
    tpu.vector_store %arg33[%c0_83, %c0_84, %c0_85], %98 {strides = array<i32>} : memref<1x128x128xf32, #tpu.memory_space<vmem>>, vector<1x128x128xf32>,
    %c2_i32 = arith.constant 2 : i32
    %99 = arith.cmpi eq, %arg1, %c2_i32 : i32
    %100 = arith.extui %99 : i1 to i32
    %c0_i32_86 = arith.constant 0 : i32
    %101 = arith.cmpi ne, %100, %c0_i32_86 : i32
    scf.if %101 {
      %102 = arith.truncf %95 : vector<128x128xf32> to vector<128x128xbf16>
      %c0_87 = arith.constant 0 : index
      %c0_88 = arith.constant 0 : index
      %103 = vector.load %arg28[%c0_87, %c0_88] : memref<128x128xbf16, #tpu.memory_space<vmem>>, vector<128x128xbf16>
      %cst_89 = arith.constant dense<0.000000e+00> : vector<128x128xf32>
      %104 = tpu.matmul %102, %103, %cst_89 {dimension_numbers = #tpu.dot_dimension_numbers<[1], [0], [0], [1], [0, 0, 1, 1], [], []>} : vector<128x128xbf16>, vector<128x128xbf16>, vector<128x128xf32> -> vector<128x128xf32>
      %c0_90 = arith.constant 0 : index
      %c0_91 = arith.constant 0 : index
      %105 = vector.load %arg29[%c0_90, %c0_91] : memref<1x128xf32, #tpu.memory_space<vmem>>, vector<1x128xf32>
      %106 = vector.broadcast %105 : vector<1x128xf32> to vector<128x128xf32>
      %107 = arith.addf %104, %106 : vector<128x128xf32>
      %108 = arith.negf %107 : vector<128x128xf32>
      %109 = math.exp %108 : vector<128x128xf32>
      %cst_92 = arith.constant 1.000000e+00 : f32
      %110 = vector.broadcast %cst_92 : f32 to vector<128x128xf32>
      %111 = arith.addf %110, %109 : vector<128x128xf32>
      %112 = arith.divf %110, %111 : vector<128x128xf32>
      %c0_93 = arith.constant 0 : index
      %c0_94 = arith.constant 0 : index
      %113 = vector.load %arg30[%c0_93, %c0_94] : memref<128x128xbf16, #tpu.memory_space<vmem>>, vector<128x128xbf16>
      %cst_95 = arith.constant dense<0.000000e+00> : vector<128x128xf32>
      %114 = tpu.matmul %102, %113, %cst_95 {dimension_numbers = #tpu.dot_dimension_numbers<[1], [0], [0], [1], [0, 0, 1, 1], [], []>} : vector<128x128xbf16>, vector<128x128xbf16>, vector<128x128xf32> -> vector<128x128xf32>
      %c0_96 = arith.constant 0 : index
      %c0_97 = arith.constant 0 : index
      %115 = vector.load %arg31[%c0_96, %c0_97] : memref<1x128xf32, #tpu.memory_space<vmem>>, vector<1x128xf32>
      %116 = vector.broadcast %115 : vector<1x128xf32> to vector<128x128xf32>
      %117 = arith.addf %114, %116 : vector<128x128xf32>
      %118 = arith.mulf %112, %117 : vector<128x128xf32>
      %119 = arith.truncf %118 : vector<128x128xf32> to vector<128x128xbf16>
      %c0_98 = arith.constant 0 : index
      %c0_99 = arith.constant 0 : index
      %120 = vector.load %arg38[%c0_98, %c0_99] : memref<2x128xbf16, #tpu.memory_space<vmem>>, vector<2x128xbf16>
      %cst_100 = arith.constant dense<0.000000e+00> : vector<2x128xf32>
      %121 = tpu.matmul %120, %119, %cst_100 {dimension_numbers = #tpu.dot_dimension_numbers<[1], [0], [0], [1], [0, 0, 1, 1], [], []>} : vector<2x128xbf16>, vector<128x128xbf16>, vector<2x128xf32> -> vector<2x128xf32>
      %c0_101 = arith.constant 0 : index
      %c0_102 = arith.constant 0 : index
      %c0_103 = arith.constant 0 : index
      %122 = vector.load %arg32[%c0_101, %c0_102, %c0_103] : memref<1x2x128xf32, #tpu.memory_space<vmem>>, vector<1x2x128xf32>
      %123 = vector.shape_cast %122 : vector<1x2x128xf32> to vector<2x128xf32>
      %124 = vector.shape_cast %121 : vector<2x128xf32> to vector<1x2x128xf32>
      tpu.vector_store %arg32[%c0_101, %c0_102, %c0_103], %124 {strides = array<i32>} : memref<1x2x128xf32, #tpu.memory_space<vmem>>, vector<1x2x128xf32>,
    } else {
    }
    return
  }
  func.func @transform_0(%arg0: i32, %arg1: i32) -> (i32, i32, i32) {
    %c0_i32 = arith.constant 0 : i32
    %c0_i32_0 = arith.constant 0 : i32
    %c0_i32_1 = arith.constant 0 : i32
    return %arg0, %c0_i32, %c0_i32_0 : i32, i32, i32
  }
  func.func @transform_1(%arg0: i32, %arg1: i32) -> (i32, i32, i32) {
    %c0_i32 = arith.constant 0 : i32
    %c0_i32_0 = arith.constant 0 : i32
    %c0_i32_1 = arith.constant 0 : i32
    return %arg0, %c0_i32, %c0_i32_0 : i32, i32, i32
  }
  func.func @transform_2(%arg0: i32, %arg1: i32) -> (i32, i32, i32) {
    %c0_i32 = arith.constant 0 : i32
    %c0_i32_0 = arith.constant 0 : i32
    %c0_i32_1 = arith.constant 0 : i32
    return %arg0, %c0_i32, %c0_i32_0 : i32, i32, i32
  }
  func.func @transform_3(%arg0: i32, %arg1: i32) -> (i32, i32, i32) {
    %c0_i32 = arith.constant 0 : i32
    %c0_i32_0 = arith.constant 0 : i32
    %c0_i32_1 = arith.constant 0 : i32
    return %arg0, %c0_i32, %c0_i32_0 : i32, i32, i32
  }
  func.func @transform_4(%arg0: i32, %arg1: i32) -> (i32, i32) {
    %c0_i32 = arith.constant 0 : i32
    %c0_i32_0 = arith.constant 0 : i32
    %c0_i32_1 = arith.constant 0 : i32
    return %c0_i32, %c0_i32_0 : i32, i32
  }
  func.func @transform_5(%arg0: i32, %arg1: i32) -> (i32, i32) {
    %c0_i32 = arith.constant 0 : i32
    %c0_i32_0 = arith.constant 0 : i32
    %c0_i32_1 = arith.constant 0 : i32
    return %c0_i32, %c0_i32_0 : i32, i32
  }
  func.func @transform_6(%arg0: i32, %arg1: i32) -> (i32, i32) {
    %c0_i32 = arith.constant 0 : i32
    %c0_i32_0 = arith.constant 0 : i32
    %c0_i32_1 = arith.constant 0 : i32
    return %c0_i32, %c0_i32_0 : i32, i32
  }
  func.func @transform_7(%arg0: i32, %arg1: i32) -> (i32, i32) {
    %c0_i32 = arith.constant 0 : i32
    %c0_i32_0 = arith.constant 0 : i32
    %c0_i32_1 = arith.constant 0 : i32
    return %c0_i32, %c0_i32_0 : i32, i32
  }
  func.func @transform_8(%arg0: i32, %arg1: i32) -> (i32, i32, i32) {
    %c0_i32 = arith.constant 0 : i32
    %c0_i32_0 = arith.constant 0 : i32
    %c0_i32_1 = arith.constant 0 : i32
    return %arg1, %c0_i32, %c0_i32_0 : i32, i32, i32
  }
  func.func @transform_9(%arg0: i32, %arg1: i32) -> (i32, i32, i32) {
    %c0_i32 = arith.constant 0 : i32
    %c0_i32_0 = arith.constant 0 : i32
    %c0_i32_1 = arith.constant 0 : i32
    return %arg1, %c0_i32, %c0_i32_0 : i32, i32, i32
  }
  func.func @transform_10(%arg0: i32, %arg1: i32) -> (i32, i32, i32) {
    %c0_i32 = arith.constant 0 : i32
    %c0_i32_0 = arith.constant 0 : i32
    %c0_i32_1 = arith.constant 0 : i32
    return %arg1, %c0_i32, %c0_i32_0 : i32, i32, i32
  }
  func.func @transform_11(%arg0: i32, %arg1: i32) -> (i32, i32, i32) {
    %c0_i32 = arith.constant 0 : i32
    %c0_i32_0 = arith.constant 0 : i32
    %c0_i32_1 = arith.constant 0 : i32
    return %arg1, %c0_i32, %c0_i32_0 : i32, i32, i32
  }
  func.func @transform_12(%arg0: i32, %arg1: i32) -> (i32, i32, i32) {
    %c0_i32 = arith.constant 0 : i32
    %c0_i32_0 = arith.constant 0 : i32
    %c0_i32_1 = arith.constant 0 : i32
    return %arg1, %c0_i32, %c0_i32_0 : i32, i32, i32
  }
  func.func @transform_13(%arg0: i32, %arg1: i32) -> (i32, i32, i32) {
    %c0_i32 = arith.constant 0 : i32
    %c0_i32_0 = arith.constant 0 : i32
    %c0_i32_1 = arith.constant 0 : i32
    return %arg1, %c0_i32, %c0_i32_0 : i32, i32, i32
  }
  func.func @transform_14(%arg0: i32, %arg1: i32) -> (i32, i32, i32) {
    %c0_i32 = arith.constant 0 : i32
    %c0_i32_0 = arith.constant 0 : i32
    %c0_i32_1 = arith.constant 0 : i32
    return %arg1, %c0_i32, %c0_i32_0 : i32, i32, i32
  }
  func.func @transform_15(%arg0: i32, %arg1: i32) -> (i32, i32, i32) {
    %c0_i32 = arith.constant 0 : i32
    %c0_i32_0 = arith.constant 0 : i32
    %c0_i32_1 = arith.constant 0 : i32
    return %arg1, %c0_i32, %c0_i32_0 : i32, i32, i32
  }
  func.func @transform_16(%arg0: i32, %arg1: i32) -> (i32, i32, i32) {
    %c0_i32 = arith.constant 0 : i32
    %c0_i32_0 = arith.constant 0 : i32
    %c0_i32_1 = arith.constant 0 : i32
    return %arg1, %c0_i32, %c0_i32_0 : i32, i32, i32
  }
  func.func @transform_17(%arg0: i32, %arg1: i32) -> (i32, i32, i32) {
    %c0_i32 = arith.constant 0 : i32
    %c0_i32_0 = arith.constant 0 : i32
    %c0_i32_1 = arith.constant 0 : i32
    return %arg1, %c0_i32, %c0_i32_0 : i32, i32, i32
  }
  func.func @transform_18(%arg0: i32, %arg1: i32) -> (i32, i32, i32) {
    %c0_i32 = arith.constant 0 : i32
    %c0_i32_0 = arith.constant 0 : i32
    %c0_i32_1 = arith.constant 0 : i32
    return %arg1, %c0_i32, %c0_i32_0 : i32, i32, i32
  }
  func.func @transform_19(%arg0: i32, %arg1: i32) -> (i32, i32, i32) {
    %c0_i32 = arith.constant 0 : i32
    %c0_i32_0 = arith.constant 0 : i32
    %c0_i32_1 = arith.constant 0 : i32
    return %arg1, %c0_i32, %c0_i32_0 : i32, i32, i32
  }
  func.func @transform_20(%arg0: i32, %arg1: i32) -> (i32, i32, i32) {
    %c0_i32 = arith.constant 0 : i32
    %c0_i32_0 = arith.constant 0 : i32
    %c0_i32_1 = arith.constant 0 : i32
    return %arg1, %c0_i32, %c0_i32_0 : i32, i32, i32
  }
  func.func @transform_21(%arg0: i32, %arg1: i32) -> (i32, i32, i32) {
    %c0_i32 = arith.constant 0 : i32
    %c0_i32_0 = arith.constant 0 : i32
    %c0_i32_1 = arith.constant 0 : i32
    return %arg1, %c0_i32, %c0_i32_0 : i32, i32, i32
  }
  func.func @transform_22(%arg0: i32, %arg1: i32) -> (i32, i32, i32) {
    %c0_i32 = arith.constant 0 : i32
    %c0_i32_0 = arith.constant 0 : i32
    %c0_i32_1 = arith.constant 0 : i32
    return %arg1, %c0_i32, %c0_i32_0 : i32, i32, i32
  }
  func.func @transform_23(%arg0: i32, %arg1: i32) -> (i32, i32, i32) {
    %c0_i32 = arith.constant 0 : i32
    %c0_i32_0 = arith.constant 0 : i32
    %c0_i32_1 = arith.constant 0 : i32
    return %arg1, %c0_i32, %c0_i32_0 : i32, i32, i32
  }
  func.func @transform_24(%arg0: i32, %arg1: i32) -> (i32, i32, i32) {
    %c0_i32 = arith.constant 0 : i32
    %c0_i32_0 = arith.constant 0 : i32
    %c0_i32_1 = arith.constant 0 : i32
    return %arg1, %c0_i32, %c0_i32_0 : i32, i32, i32
  }
  func.func @transform_25(%arg0: i32, %arg1: i32) -> (i32, i32, i32) {
    %c0_i32 = arith.constant 0 : i32
    %c0_i32_0 = arith.constant 0 : i32
    %c0_i32_1 = arith.constant 0 : i32
    return %arg1, %c0_i32, %c0_i32_0 : i32, i32, i32
  }
  func.func @transform_26(%arg0: i32, %arg1: i32) -> (i32, i32) {
    %c0_i32 = arith.constant 0 : i32
    %c0_i32_0 = arith.constant 0 : i32
    %c0_i32_1 = arith.constant 0 : i32
    return %c0_i32, %c0_i32_0 : i32, i32
  }
  func.func @transform_27(%arg0: i32, %arg1: i32) -> (i32, i32) {
    %c0_i32 = arith.constant 0 : i32
    %c0_i32_0 = arith.constant 0 : i32
    %c0_i32_1 = arith.constant 0 : i32
    return %c0_i32, %c0_i32_0 : i32, i32
  }
  func.func @transform_28(%arg0: i32, %arg1: i32) -> (i32, i32) {
    %c0_i32 = arith.constant 0 : i32
    %c0_i32_0 = arith.constant 0 : i32
    %c0_i32_1 = arith.constant 0 : i32
    return %c0_i32, %c0_i32_0 : i32, i32
  }
  func.func @transform_29(%arg0: i32, %arg1: i32) -> (i32, i32) {
    %c0_i32 = arith.constant 0 : i32
    %c0_i32_0 = arith.constant 0 : i32
    %c0_i32_1 = arith.constant 0 : i32
    return %c0_i32, %c0_i32_0 : i32, i32
  }
  func.func @transform_30(%arg0: i32, %arg1: i32) -> (i32, i32, i32) {
    %c0_i32 = arith.constant 0 : i32
    %c0_i32_0 = arith.constant 0 : i32
    %c0_i32_1 = arith.constant 0 : i32
    return %arg0, %c0_i32, %c0_i32_0 : i32, i32, i32
  }
  func.func @transform_31(%arg0: i32, %arg1: i32) -> (i32, i32, i32) {
    %c0_i32 = arith.constant 0 : i32
    %c0_i32_0 = arith.constant 0 : i32
    %c0_i32_1 = arith.constant 0 : i32
    return %arg0, %c0_i32, %c0_i32_0 : i32, i32, i32
  }
}

</mosaic_0001>

<bundles_post_ra>
// kernel: tpu_custom_call.1
= control target key start
LH: loop header
LB: loop body
LE: loop exit
PB: predicated region body
PF: predicated region fallthrough
CT: control target
= control target key end

     0   :  { %s7273_s6 = smov 1   ;;  %s7274_s10 = smov 2   ;;  %s9124_s0 = inlined_call_operand.smem [shape: u32[32], index: -1, kind: input, shape index: {}] }
   0x1   :  { %s7325_s5 = sld [smem:[%s9124_s0]]   ;;  %s7275_s14 = smov 3  }
   0x2   :  { %s7330_s9 = sld [smem:[%s9124_s0 + %s7273_s6]]   ;;  %s7276_s18 = smov 4  }
   0x3   :  { %s7335_s13 = sld [smem:[%s9124_s0 + %s7274_s10]]   ;;  %s7277_s22 = smov 5  }
   0x4   :  { %s7340_s17 = sld [smem:[%s9124_s0 + %s7275_s14]]   ;;  %s7278_s26 = smov 6  }
   0x5   :  { %s7345_s21 = sld [smem:[%s9124_s0 + %s7276_s18]]   ;;  %s7279_s30 = smov 7  }
   0x6   :  { %s7350_s25 = sld [smem:[%s9124_s0 + %s7277_s22]]   ;;  %s7280_s4 = smov 8  }
   0x7   :  { %9170 = sst [smem:[#allocation33_spill]] %s7325_s5  ;;  %s7281_s10 = smov 9  }
   0x8   :  { %9171 = sst [smem:[#allocation34_spill]] %s7330_s9  ;;  %s7282_s15 = smov 10  }
   0x9   :  { %9172 = sst [smem:[#allocation35_spill]] %s7335_s13  ;;  %s7283_s20 = smov 11  }
   0xa   :  { %9173 = sst [smem:[#allocation36_spill]] %s7340_s17  ;;  %s7285_s1 = smov 13  }
   0xb   :  { %9174 = sst [smem:[#allocation37_spill]] %s7345_s21  ;;  %s7286_s7 = smov 14  }
   0xc   :  { %9175 = sst [smem:[#allocation38_spill]] %s7350_s25  ;;  %s7288_s22 = smov 16  }
   0xd   :  { %s7355_s29 = sld [smem:[%s9124_s0 + %s7278_s26]]   ;;  %s7284_s26 = smov 12  }
   0xe   :  { %s7360_s3 = sld [smem:[%s9124_s0 + %s7279_s30]]   ;;  %s7289_s28 = smov 17  }
   0xf   :  { %s7365_s8 = sld [smem:[%s9124_s0 + %s7280_s4]]  }
  0x10   :  { %s7370_s14 = sld [smem:[%s9124_s0 + %s7281_s10]]  }
  0x11   :  { %s7375_s19 = sld [smem:[%s9124_s0 + %s7282_s15]]   ;;  %s7287_s15 = smov 15  }
  0x12   :  { %s7380_s24 = sld [smem:[%s9124_s0 + %s7283_s20]]  }
  0x13   :  { %9176 = sst [smem:[#allocation39_spill]] %s7355_s29 }
  0x14   :  { %9177 = sst [smem:[#allocation40_spill]] %s7360_s3 }
  0x15   :  { %9178 = sst [smem:[#allocation41_spill]] %s7365_s8 }
  0x16   :  { %9179 = sst [smem:[#allocation42_spill]] %s7370_s14 }
  0x17   :  { %9180 = sst [smem:[#allocation43_spill]] %s7375_s19 }
  0x18   :  { %9181 = sst [smem:[#allocation44_spill]] %s7380_s24 }
  0x19   :  { %s7385_s30 = sld [smem:[%s9124_s0 + %s7284_s26]]  }
  0x1a   :  { %s7390_s6 = sld [smem:[%s9124_s0 + %s7285_s1]]  }
  0x1b   :  { %s7395_s12 = sld [smem:[%s9124_s0 + %s7286_s7]]   ;;  %s7290_s7 = smov 18  }
  0x1c   :  { %s7400_s20 = sld [smem:[%s9124_s0 + %s7287_s15]]   ;;  %s7291_s15 = smov 19  }
  0x1d   :  { %s7405_s27 = sld [smem:[%s9124_s0 + %s7288_s22]]   ;;  %s7292_s22 = smov 20  }
  0x1e   :  { %s7410_s4 = sld [smem:[%s9124_s0 + %s7289_s28]]   ;;  %s7293_s28 = smov 21  }
  0x1f   :  { %9182 = sst [smem:[#allocation45_spill]] %s7385_s30 }
  0x20   :  { %9183 = sst [smem:[#allocation46_spill]] %s7390_s6 }
  0x21   :  { %9184 = sst [smem:[#allocation47_spill]] %s7395_s12 }
  0x22   :  { %9185 = sst [smem:[#allocation48_spill]] %s7400_s20 }
  0x23   :  { %9186 = sst [smem:[#allocation49_spill]] %s7405_s27 }
  0x24   :  { %9187 = sst [smem:[#allocation50_spill]] %s7410_s4 }
  0x25   :  { %s7415_s21 = sld [smem:[%s9124_s0 + %s7290_s7]]   ;;  %s7294_s7 = smov 22  }
  0x26   :  { %s7420_s29 = sld [smem:[%s9124_s0 + %s7291_s15]]   ;;  %s7295_s15 = smov 23  }
  0x27   :  { %s7425_s6 = sld [smem:[%s9124_s0 + %s7292_s22]]   ;;  %s7296_s22 = smov 24  }
  0x28   :  { %s7430_s4 = sld [smem:[%s9124_s0 + %s7293_s28]]   ;;  %s7297_s28 = smov 25  }
  0x29   :  { %s7435_s30 = sld [smem:[%s9124_s0 + %s7294_s7]]   ;;  %s7298_s7 = smov 26  }
  0x2a   :  { %s7445_s19 = sld [smem:[%s9124_s0 + %s7296_s22]]   ;;  %s7300_s22 = smov 28  }
  0x2b   :  { %9188 = sst [smem:[#allocation51_spill]] %s7415_s21 }
  0x2c   :  { %9189 = sst [smem:[#allocation52_spill]] %s7420_s29 }
  0x2d   :  { %9190 = sst [smem:[#allocation53_spill]] %s7425_s6 }
  0x2e   :  { %9191 = sst [smem:[#allocation54_spill]] %s7430_s4 }
  0x2f   :  { %9192 = sst [smem:[#allocation55_spill]] %s7435_s30 }
  0x30   :  { %s7440_s29 = sld [smem:[%s9124_s0 + %s7295_s15]]   ;;  %s7299_s15 = smov 27  }
  0x31   :  { %9194 = sst [smem:[#allocation57_spill]] %s7445_s19 }
  0x32   :  { %s7450_s14 = sld [smem:[%s9124_s0 + %s7297_s28]]   ;;  %s7301_s28 = smov 29  }
  0x33   :  { %s7455_s8 = sld [smem:[%s9124_s0 + %s7298_s7]]   ;;  %s7302_s7 = smov 30  }
  0x34   :  { %s7465_s24 = sld [smem:[%s9124_s0 + %s7300_s22]]  }
  0x35   :  { %s7475_s13 = sld [smem:[%s9124_s0 + %s7302_s7]]  }
  0x36   :  { %9193 = sst [smem:[#allocation56_spill]] %s7440_s29 }
  0x37   :  { %s7460_s29 = sld [smem:[%s9124_s0 + %s7299_s15]]   ;;  %s7303_s15 = smov 31  }
  0x38   :  { %9195 = sst [smem:[#allocation58_spill]] %s7450_s14 }
  0x39   :  { %9196 = sst [smem:[#allocation59_spill]] %s7455_s8 }
  0x3a   :  { %9198 = sst [smem:[#allocation61_spill]] %s7465_s24 }
  0x3b   :  { %s7470_s14 = sld [smem:[%s9124_s0 + %s7301_s28]]  }
  0x3c   :  { %9200 = sst [smem:[#allocation63_spill]] %s7475_s13 }
  0x3d   :  { %9197 = sst [smem:[#allocation60_spill]] %s7460_s29 }
  0x3e   :  { %s7480_s29 = sld [smem:[%s9124_s0 + %s7303_s15]]  }
  0x41   :  { %9199 = sst [smem:[#allocation62_spill]] %s7470_s14 }
  0x44   :  { %9201 = sst [smem:[#allocation64_spill]] %s7480_s29 }
  0x45   :  { %69 = vsyncpa [#allocation8], 0 }
  0x46   :  { %70 = vsyncpa [#allocation11], 0 }
  0x47   :  { %71 = vsyncpa [#allocation22], 0 }
  0x48   :  { %72 = vsyncpa [#allocation9], 0 }
  0x49   :  { %74 = vsyncpa [#allocation9 + $0x1], 0 }
  0x4a   :  { %75 = vsyncpa [#allocation25], 0 }
  0x4b   :  { %77 = vsyncpa [#allocation25 + $0x1], 0  ;;  %s7482_s22 = smov 0   ;;  %s7484_s23 = smov 0  }
  0x4c   :  { %s7486_s26 = smov 0   ;;  %s7488_s28 = smov 0  }
  0x4d   :  { %s7490_s1 = smov 0   ;;  %s7492_s2 = smov 0  }
  0x4e   :  { %s7494_s0 = smov 0   ;;  %s7496_s7 = smov 0  }
  0x4f   :  { %s7498_s10 = smov 0   ;;  %s7500_s11 = smov 0  }
  0x50   :  { %s7502_s15 = smov 0  }
  0x51 LB: > { %s9202_s30 = sld [smem:[#allocation55_spill]]  ;;  %s7536_s16 = sadd.s32 4294967295, %s7271_s15   ;;  %s7231_s22 = sphi %s7482_s22, %s9332_s22   ;;  %s7271_s15 = sphi %s7502_s15, %s83_s15   ;;  %s7267_s11 = sphi %s7500_s11, %s9341_s11   ;;  %s7263_s10 = sphi %s7498_s10, %s9340_s10   ;;  %s7259_s7 = sphi %s7496_s7, %s9339_s7   ;;  %s7255_s0 = sphi %s7494_s0, %s9338_s0   ;;  %s7251_s2 = sphi %s7492_s2, %s9337_s2   ;;  %s7247_s1 = sphi %s7490_s1, %s9336_s1   ;;  %s7243_s28 = sphi %s7488_s28, %s9335_s28   ;;  %s7239_s26 = sphi %s7486_s26, %s9334_s26   ;;  %s7235_s23 = sphi %s7484_s23, %s9333_s23  }
  0x52   : > { %s9203_s27 = sld [smem:[#allocation49_spill]]  ;;  %s5351_s18 = sadd.s32 4294967294, %s7271_s15  }
  0x53   : > { %s9204_s24 = sld [smem:[#allocation61_spill]]  ;;  %s92_s29 = sadd.s32 1, %s7263_s10 }
  0x54   : > { %s9205_s21 = sld [smem:[#allocation51_spill]]  ;;  %s95_s13 = sadd.s32 1, %s7267_s11 }
  0x55   : > { %s9206_s20 = sld [smem:[#allocation48_spill]]  ;;  %p93_p0 = scmp.ge.s32.totalorder %s92_s29, 3 }
  0x56   : > { %s9207_s19 = sld [smem:[#allocation57_spill]]  ;;  %s446_s14 = sadd.s32 1, %s7251_s2 }
  0x57   : > { %s9208_s8 = sld [smem:[#allocation59_spill]]  ;;  %p453_p1 = scmp.ne.s32.totalorder %s7251_s2, %s7247_s1 }
  0x58   : > { %s9209_s4 = sld [smem:[#allocation54_spill]]  ;;  %p454_p2 = scmp.eq.s32.totalorder %s7271_s15, 0 }
  0x59   : > { %s9210_s3 = sld [smem:[#allocation40_spill]]  ;;  %s9343_s29 = smov (%p93_p0, %s92_s29), 0 }
  0x5a   : > { %s9211_s6 = sld [smem:[#allocation53_spill]]  ;;  %s9345_s13 = smov (!%p93_p0, %s95_s13), %s7267_s11 }
  0x5b   : > { %s9212_s12 = sld [smem:[#allocation47_spill]]  ;;  %s443_s9 = ssub.s32 %s7263_s10, %s9343_s29 }
  0x5c   : > { %s9213_s25 = sld [smem:[#allocation38_spill]]  ;;  %p7550_p3 = por %p454_p2, %p453_p1 }
  0x5d   : > { %9214 = sst [smem:[#allocation65_spill]] %s7231_s22  ;;  %p97_p4 = scmp.ge.s32.totalorder %s9345_s13, 2 }
  0x5e   : > { %9215 = sst [smem:[#allocation66_spill]] %s7235_s23  ;;  %p444_p5 = scmp.eq.s32.totalorder %s443_s9, 0 }
  0x5f   : > { %9216 = sst [smem:[#allocation67_spill]] %s7239_s26  ;;  %p459_p6 = scmp.ne.s32.totalorder %s7247_s1, %s7243_s28 }
  0x60   : > { %9217 = sst [smem:[#allocation68_spill]] %s7247_s1  ;;  %p9135_p7 = scmp.eq.s32.totalorder %s7536_s16, 0 }
  0x61   : > { %9218 = sst [smem:[#allocation69_spill]] %s7251_s2  ;;  %s9347_s13 = smov (%p97_p4, %s9345_s13), 0 }
  0x62   : > { %9219 = sst [smem:[#allocation70_spill]] %s7255_s0  ;;  %p7563_p8 = por %p9135_p7, %p459_p6 }
  0x63   : > { %9220 = sst [smem:[#allocation71_spill]] %s7259_s7  ;;  %s839_s0 = ssub.s32 %s7267_s11, %s9347_s13 }
  0x64   : > { %9221 = sst [smem:[#allocation72_spill]] %s7263_s10  ;;  %p840_p9 = scmp.eq.s32.totalorder %s839_s0, 0 }
  0x65   : > { %9222 = sst [smem:[#allocation73_spill]] %s7267_s11  ;;  %s842_s7 = sadd.s32 1, %s7239_s26 }
  0x66   : > { %9223 = sst [smem:[#allocation74_spill]] %s7271_s15  ;;  %p852_p10 = scmp.ne.s32.totalorder %s7239_s26, %s7235_s23 }
  0x67   : > { %9224 = sst [smem:[#allocation75_spill]] %s9343_s29  ;;  %p853_p11 = scmp.eq.s32.totalorder %s7536_s16, 5 }
  0x68   : > { %9226 = sst [smem:[#allocation76_spill]] %s9347_s13  ;;  %p858_p13 = scmp.ne.s32.totalorder %s7235_s23, %s7231_s22 }
  0x69   : > { %s7559_s17 = scalar_select %p444_p5, %s7251_s2, %s446_s14  }
  0x6a   : > { %s7574_s9 = scalar_select %p840_p9, %s7239_s26, %s842_s7  }
  0x6b   : > { %9227 = sst [smem:[#allocation77_spill]] %s7559_s17  ;;  %p7576_p12 = por %p853_p11, %p852_p10 }
  0x6c   : > { %9229 = sst [smem:[#allocation78_spill]] %s7574_s9  ;;  %p859_p0 = scmp.eq.s32.totalorder %s5351_s18, 5 }
  0x6d   : > { %s9230_s28 = scalar_select %p7576_p12, 1, 0 }
  0x6e   : > { %p5352_p1 = scmp.ge.s32.totalorder %s7271_s15, 1  ;;  %p892_p2 = scmp.lt.s32.totalorder %s7271_s15, 7 }
  0x6f   : > { %9231 = sst [smem:[#allocation79_spill]] %s9230_s28  ;;  %p7584_p4 = por %p859_p0, %p858_p13 }
  0x70   : > { %s907_s0 = sshll.u32 %s9213_s25, 4  ;;  %p7589_p5 = pnand %p5352_p1, %p892_p2  ;;  %s908_s0 = int_to_ptr.hbm [resolvable:$true] %s907_s0 }
  0x71   : > { %s9232_s14 = scalar_select %p7584_p4, 1, 0 }
  0x72   : > { %p6459_p6 = pneg %p7589_p5  ;;  %s7304_s7 = smov [#allocation7]  }
  0x73   : > { %9233 = sst [smem:[#allocation80_spill]] %s9232_s14  ;;  %s909_s11 = sshll.u32 %s7304_s7, 4  ;;  %s910_s11 = int_to_ptr.vmem [resolvable:$true] %s909_s11 }
  0x74   : > { %p6508_p9 = scmp.lt.s32.totalorder %s7271_s15, 6  ;;  %p7598_p10 = pnand %p6459_p6, %p9135_p7 }
  0x75   : > { %s1045_s17 = sand.u32 1, %s7251_s2   ;;  %s6741_s26 = sshra.s32 %s908_s0, 4  ;;  %s6742_s26 = int_to_ptr.hbm [resolvable:$true] %s6741_s26 }
  0x76   : > { %p7605_p11 = pnand %p6508_p9, %p7550_p3  ;;  %s6743_s14 = scalar_lea.hbm %s6742_s26, 1 }
  0x77   : > { %p6744_p13 = scmp.ne.s32.totalorder %s6742_s26, %s6743_s14  ;;  %p6745_p0 = pneg %p7598_p10 }
  0x78   : > { %s6748_s7 = scalar_lea.hbm %s9213_s25, 1  ;;  %p6749_p6 = scmp.lt.s32.totalorder %s6742_s26, %s9213_s25 }
  0x79   : > { %p6746_p1 = pnand %p6745_p0, %p6744_p13  ;;  %p6750_p7 = scmp.lt.s32.totalorder %s6748_s7, %s6743_s14 }
  0x7b   : > { %p6747_p2 = pneg %p6746_p1  ;;  %p6751_p4 = por %p6750_p7, %p6749_p6 }
  0x7d   : > { %p6752_p12 = pnand %p6751_p4, %p6747_p2 }
  0x7f   : > { %6755 = shalt.err (!%p6752_p12)
}
  0x80   : > { %6462 = dma.hbm_to_vmem [thread:$0]  (!%p7598_p10), %s908_s0, 16, %s910_s11, [#allocation8]  }
  0x81   : > { %s1043_s5 = sand.u32 1, %s7271_s15   ;;  %s7619_s2 = sshll.u32 %s1045_s17, 6 }
  0x82   : > { %s7622_s22 = sshll.u32 %s7263_s10, 6  ;;  %s1047_s14 = scalar_lea.vmem [#allocation12], %s7619_s2 }
  0x83   : > { %s1052_s26 = scalar_lea.hbm %s9212_s12, %s7622_s22  ;;  %s1055_s7 = sshll.u32 %s1047_s14, 4  ;;  %s1056_s7 = int_to_ptr.vmem [resolvable:$true] %s1055_s7 }
  0x84   : > { %s1053_s25 = sshll.u32 %s1052_s26, 4  ;;  %s7627_s28 = scalar_lea.sflag [#allocation8], %s1043_s5  ;;  %s1054_s25 = int_to_ptr.hbm [resolvable:$true] %s1053_s25 }
  0x85   : > { %s6771_s23 = sshra.s32 %s1054_s25, 4  ;;  %p7631_p7 = pneg %p7605_p11  ;;  %s6772_s23 = int_to_ptr.hbm [resolvable:$true] %s6771_s23 }
  0x86   : > { %s6773_s11 = scalar_lea.hbm %s6772_s23, 64  ;;  %s6778_s0 = scalar_lea.hbm %s9212_s12, 192 }
  0x87   : > { %p6774_p3 = scmp.ne.s32.totalorder %s6772_s23, %s6773_s11  ;;  %p6779_p9 = scmp.lt.s32.totalorder %s6772_s23, %s9212_s12 }
  0x88   : > { %p6780_p13 = scmp.lt.s32.totalorder %s6778_s0, %s6773_s11 }
  0x89   : > { %p6776_p12 = pnand %p7631_p7, %p6774_p3 }
  0x8a   : > { %p6781_p1 = por %p6780_p13, %p6779_p9 }
  0x8b   : > { %p6777_p4 = pneg %p6776_p12 }
  0x8d   : > { %p6782_p2 = pnand %p6781_p1, %p6777_p4 }
  0x8f   : > { %6785 = shalt.err (!%p6782_p2)
}
  0x90   : > { %s9148_s5 = smov 64   ;;  %s7306_s26 = smov 4  }
  0x91   : > { %6475 = dma.hbm_to_vmem [thread:$0]  (!%p7605_p11), %s1054_s25, 1024, %s1056_s7, %s7627_s28, %s9148_s5, %s9148_s5, %s7306_s26  }
  0x92   : > { %s1074_s23 = scalar_lea.hbm %s9206_s20, %s7622_s22  ;;  %s1069_s14 = scalar_lea.vmem [#allocation13], %s7619_s2 }
  0x93   : > { %s1077_s11 = sshll.u32 %s1069_s14, 4  ;;  %s1075_s0 = sshll.u32 %s1074_s23, 4  ;;  %s1078_s11 = int_to_ptr.vmem [resolvable:$true] %s1077_s11  ;;  %s1076_s0 = int_to_ptr.hbm [resolvable:$true] %s1075_s0 }
  0x94   : > { %s6801_s12 = sshra.s32 %s1076_s0, 4  ;;  %s6808_s15 = scalar_lea.hbm %s9206_s20, 192  ;;  %s6802_s12 = int_to_ptr.hbm [resolvable:$true] %s6801_s12 }
  0x95   : > { %s6803_s10 = scalar_lea.hbm %s6802_s12, 64  ;;  %p6809_p4 = scmp.lt.s32.totalorder %s6802_s12, %s9206_s20 }
  0x96   : > { %p6804_p6 = scmp.ne.s32.totalorder %s6802_s12, %s6803_s10  ;;  %p6810_p9 = scmp.lt.s32.totalorder %s6808_s15, %s6803_s10 }
  0x98   : > { %p6806_p3 = pnand %p6804_p6, %p7631_p7  ;;  %p6811_p13 = por %p6810_p9, %p6809_p4 }
  0x9a   : > { %p6807_p12 = pneg %p6806_p3 }
  0x9c   : > { %p6812_p1 = pnand %p6811_p13, %p6807_p12 }
  0x9e   : > { %6815 = shalt.err (!%p6812_p1)
}
  0x9f   : > { %6478 = dma.hbm_to_vmem [thread:$0]  (!%p7605_p11), %s1076_s0, 1024, %s1078_s11, %s7627_s28, %s9148_s5, %s9148_s5, %s7306_s26  }
  0xa0   : > { %s1096_s25 = scalar_lea.hbm %s9203_s27, %s7622_s22  ;;  %s1091_s7 = scalar_lea.vmem [#allocation14], %s7619_s2 }
  0xa1   : > { %s1099_s12 = sshll.u32 %s1091_s7, 4  ;;  %s1097_s10 = sshll.u32 %s1096_s25, 4  ;;  %s1100_s12 = int_to_ptr.vmem [resolvable:$true] %s1099_s12  ;;  %s1098_s10 = int_to_ptr.hbm [resolvable:$true] %s1097_s10 }
  0xa2   : > { %s6831_s15 = sshra.s32 %s1098_s10, 4  ;;  %s6838_s14 = scalar_lea.hbm %s9203_s27, 192  ;;  %s6832_s15 = int_to_ptr.hbm [resolvable:$true] %s6831_s15 }
  0xa3   : > { %s6833_s23 = scalar_lea.hbm %s6832_s15, 64  ;;  %p6839_p12 = scmp.lt.s32.totalorder %s6832_s15, %s9203_s27 }
  0xa4   : > { %p6834_p2 = scmp.ne.s32.totalorder %s6832_s15, %s6833_s23  ;;  %p6840_p4 = scmp.lt.s32.totalorder %s6838_s14, %s6833_s23 }
  0xa6   : > { %p6836_p6 = pnand %p6834_p2, %p7631_p7  ;;  %p6841_p9 = por %p6840_p4, %p6839_p12 }
  0xa8   : > { %p6837_p3 = pneg %p6836_p6 }
  0xaa   : > { %p6842_p13 = pnand %p6841_p9, %p6837_p3 }
  0xac   : > { %6845 = shalt.err (!%p6842_p13)
}
  0xad   : > { %6481 = dma.hbm_to_vmem [thread:$0]  (!%p7605_p11), %s1098_s10, 1024, %s1100_s12, %s7627_s28, %s9148_s5, %s9148_s5, %s7306_s26  }
  0xae   : > { %s1124_s11 = scalar_lea.hbm %s9205_s21, %s7622_s22  ;;  %s1119_s0 = scalar_lea.vmem [#allocation15], %s7619_s2 }
  0xaf   : > { %s1127_s25 = sshll.u32 %s1119_s0, 4  ;;  %s1125_s7 = sshll.u32 %s1124_s11, 4  ;;  %s1128_s25 = int_to_ptr.vmem [resolvable:$true] %s1127_s25  ;;  %s1126_s7 = int_to_ptr.hbm [resolvable:$true] %s1125_s7 }
  0xb0   : > { %s6861_s15 = sshra.s32 %s1126_s7, 4  ;;  %s6868_s14 = scalar_lea.hbm %s9205_s21, 192  ;;  %s6862_s15 = int_to_ptr.hbm [resolvable:$true] %s6861_s15 }
  0xb1   : > { %s6863_s23 = scalar_lea.hbm %s6862_s15, 64  ;;  %p6869_p3 = scmp.lt.s32.totalorder %s6862_s15, %s9205_s21 }
  0xb2   : > { %p6864_p1 = scmp.ne.s32.totalorder %s6862_s15, %s6863_s23  ;;  %p6870_p12 = scmp.lt.s32.totalorder %s6868_s14, %s6863_s23 }
  0xb4   : > { %p6866_p2 = pnand %p6864_p1, %p7631_p7  ;;  %p6871_p4 = por %p6870_p12, %p6869_p3 }
  0xb6   : > { %p6867_p6 = pneg %p6866_p2 }
  0xb8   : > { %p6872_p9 = pnand %p6871_p4, %p6867_p6 }
  0xba   : > { %6875 = shalt.err (!%p6872_p9)
}
  0xbb   : > { %6484 = dma.hbm_to_vmem [thread:$0]  (!%p7605_p11), %s1126_s7, 1024, %s1128_s25, %s7627_s28, %s9148_s5, %s9148_s5, %s7306_s26  }
  0xbc   : > { %s1152_s12 = scalar_lea.hbm %s9211_s6, %s7622_s22  ;;  %s1147_s10 = scalar_lea.vmem [#allocation16], %s7619_s2 }
  0xbd   : > { %s1155_s11 = sshll.u32 %s1147_s10, 4  ;;  %s1153_s0 = sshll.u32 %s1152_s12, 4  ;;  %s1156_s11 = int_to_ptr.vmem [resolvable:$true] %s1155_s11  ;;  %s1154_s0 = int_to_ptr.hbm [resolvable:$true] %s1153_s0 }
  0xbe   : > { %s6891_s15 = sshra.s32 %s1154_s0, 4  ;;  %s6898_s14 = scalar_lea.hbm %s9211_s6, 192  ;;  %s6892_s15 = int_to_ptr.hbm [resolvable:$true] %s6891_s15 }
  0xbf   : > { %s6893_s23 = scalar_lea.hbm %s6892_s15, 64  ;;  %p6899_p6 = scmp.lt.s32.totalorder %s6892_s15, %s9211_s6 }
  0xc0   : > { %p6894_p13 = scmp.ne.s32.totalorder %s6892_s15, %s6893_s23  ;;  %p6900_p3 = scmp.lt.s32.totalorder %s6898_s14, %s6893_s23 }
  0xc2   : > { %p6896_p1 = pnand %p6894_p13, %p7631_p7  ;;  %p6901_p12 = por %p6900_p3, %p6899_p6 }
  0xc4   : > { %p6897_p2 = pneg %p6896_p1 }
  0xc6   : > { %p6902_p4 = pnand %p6901_p12, %p6897_p2 }
  0xc8   : > { %6905 = shalt.err (!%p6902_p4)
}
  0xc9   : > { %6487 = dma.hbm_to_vmem [thread:$0]  (!%p7605_p11), %s1154_s0, 1024, %s1156_s11, %s7627_s28, %s9148_s5, %s9148_s5, %s7306_s26  }
  0xca   : > { %s1174_s25 = scalar_lea.hbm %s9209_s4, %s7622_s22  ;;  %s1169_s7 = scalar_lea.vmem [#allocation17], %s7619_s2 }
  0xcb   : > { %s1177_s12 = sshll.u32 %s1169_s7, 4  ;;  %s1175_s10 = sshll.u32 %s1174_s25, 4  ;;  %s1178_s12 = int_to_ptr.vmem [resolvable:$true] %s1177_s12  ;;  %s1176_s10 = int_to_ptr.hbm [resolvable:$true] %s1175_s10 }
  0xcc   : > { %s922_s15 = sshll.u32 %s9210_s3, 4  ;;  %s6921_s23 = sshra.s32 %s1176_s10, 4  ;;  %s6922_s23 = int_to_ptr.hbm [resolvable:$true] %s6921_s23  ;;  %s923_s15 = int_to_ptr.hbm [resolvable:$true] %s922_s15 }
  0xcd   : > { %s6923_s14 = scalar_lea.hbm %s6922_s23, 64  ;;  %s6928_s6 = scalar_lea.hbm %s9209_s4, 192 }
  0xce   : > { %p6924_p9 = scmp.ne.s32.totalorder %s6922_s23, %s6923_s14  ;;  %p6929_p2 = scmp.lt.s32.totalorder %s6922_s23, %s9209_s4 }
  0xcf   : > { %p6930_p6 = scmp.lt.s32.totalorder %s6928_s6, %s6923_s14 }
  0xd0   : > { %p6926_p13 = pnand %p6924_p9, %p7631_p7 }
  0xd1   : > { %p6931_p3 = por %p6930_p6, %p6929_p2 }
  0xd2   : > { %p6927_p1 = pneg %p6926_p13 }
  0xd4   : > { %p6932_p12 = pnand %p6931_p3, %p6927_p1 }
  0xd6   : > { %6935 = shalt.err (!%p6932_p12)
}
  0xd7   : > { %6490 = dma.hbm_to_vmem [thread:$0]  (!%p7605_p11), %s1176_s10, 1024, %s1178_s12, %s7627_s28, %s9148_s5, %s9148_s5, %s7306_s26  }
  0xd8   : > { %s7307_s11 = smov [#allocation10]   ;;  %s1196_s6 = scalar_lea.hbm %s9202_s30, %s7622_s22 }
  0xd9   : > { %s924_s0 = sshll.u32 %s7307_s11, 4  ;;  %s6951_s25 = sshra.s32 %s923_s15, 4  ;;  %s925_s0 = int_to_ptr.vmem [resolvable:$true] %s924_s0  ;;  %s6952_s25 = int_to_ptr.hbm [resolvable:$true] %s6951_s25 }
  0xda   : > { %s6953_s7 = scalar_lea.hbm %s6952_s25, 1  ;;  %s6958_s23 = scalar_lea.hbm %s9210_s3, 1 }
  0xdb   : > { %p6954_p4 = scmp.ne.s32.totalorder %s6952_s25, %s6953_s7  ;;  %p6959_p1 = scmp.lt.s32.totalorder %s6952_s25, %s9210_s3 }
  0xdc   : > { %p6960_p2 = scmp.lt.s32.totalorder %s6958_s23, %s6953_s7 }
  0xdd   : > { %p6956_p9 = pnand %p6954_p4, %p6745_p0 }
  0xde   : > { %p6961_p6 = por %p6960_p2, %p6959_p1 }
  0xdf   : > { %p6957_p13 = pneg %p6956_p9 }
  0xe1   : > { %p6962_p3 = pnand %p6961_p6, %p6957_p13 }
  0xe3   : > { %6965 = shalt.err (!%p6962_p3)
}
  0xe4   : > { %6465 = dma.hbm_to_vmem [thread:$0]  (!%p7598_p10), %s923_s15, 16, %s925_s0, [#allocation11]  }
  0xe5   : > { %s1197_s12 = sshll.u32 %s1196_s6, 4  ;;  %s1191_s10 = scalar_lea.vmem [#allocation18], %s7619_s2  ;;  %s1198_s12 = int_to_ptr.hbm [resolvable:$true] %s1197_s12 }
  0xe6   : > { %s1199_s14 = sshll.u32 %s1191_s10, 4  ;;  %s6981_s11 = sshra.s32 %s1198_s12, 4  ;;  %s1200_s14 = int_to_ptr.vmem [resolvable:$true] %s1199_s14  ;;  %s6982_s11 = int_to_ptr.hbm [resolvable:$true] %s6981_s11 }
  0xe7   : > { %s6983_s5 = scalar_lea.hbm %s6982_s11, 64  ;;  %s6988_s25 = scalar_lea.hbm %s9202_s30, 192 }
  0xe8   : > { %p6984_p12 = scmp.ne.s32.totalorder %s6982_s11, %s6983_s5  ;;  %p6989_p13 = scmp.lt.s32.totalorder %s6982_s11, %s9202_s30 }
  0xe9   : > { %p6990_p1 = scmp.lt.s32.totalorder %s6988_s25, %s6983_s5 }
  0xea   : > { %p6986_p4 = pnand %p6984_p12, %p7631_p7 }
  0xeb   : > { %p6991_p2 = por %p6990_p1, %p6989_p13 }
  0xec   : > { %p6987_p9 = pneg %p6986_p4 }
  0xee   : > { %p6992_p6 = pnand %p6991_p2, %p6987_p9 }
  0xf0   : > { %6995 = shalt.err (!%p6992_p6)
}
  0xf1   : > { %s9238_s15 = smov 64   ;;  %s933_s0 = sshll.u32 %s9208_s8, 4  ;;  %s934_s0 = int_to_ptr.hbm [resolvable:$true] %s933_s0 }
  0xf2   : > { %6493 = dma.hbm_to_vmem [thread:$0]  (!%p7605_p11), %s1198_s12, 1024, %s1200_s14, %s7627_s28, %s9238_s15, %s9238_s15, %s7306_s26  }
  0xf3   : > { %s7308_s6 = smov [#allocation20]   ;;  %s950_s5 = sshll.u32 %s9204_s24, 4  ;;  %s951_s5 = int_to_ptr.hbm [resolvable:$true] %s950_s5 }
  0xf4   : > { %s935_s7 = sshll.u32 %s7308_s6, 4  ;;  %s7011_s23 = sshra.s32 %s934_s0, 4  ;;  %s936_s7 = int_to_ptr.vmem [resolvable:$true] %s935_s7  ;;  %s7012_s23 = int_to_ptr.hbm [resolvable:$true] %s7011_s23 }
  0xf5   : > { %s7013_s10 = scalar_lea.hbm %s7012_s23, 64  ;;  %s7018_s11 = scalar_lea.hbm %s9208_s8, 64 }
  0xf6   : > { %p7014_p3 = scmp.ne.s32.totalorder %s7012_s23, %s7013_s10  ;;  %p7019_p9 = scmp.lt.s32.totalorder %s7012_s23, %s9208_s8 }
  0xf7   : > { %p7020_p13 = scmp.lt.s32.totalorder %s7018_s11, %s7013_s10 }
  0xf8   : > { %p7016_p12 = pnand %p7014_p3, %p6745_p0 }
  0xf9   : > { %p7021_p1 = por %p7020_p13, %p7019_p9 }
  0xfa   : > { %p7017_p4 = pneg %p7016_p12 }
  0xfc   : > { %p7022_p2 = pnand %p7021_p1, %p7017_p4 }
  0xfe   : > { %7025 = shalt.err (!%p7022_p2)
}
  0xff   : > { %6468 = dma.hbm_to_vmem [thread:$0]  (!%p7598_p10), %s934_s0, 1024, %s936_s7, [#allocation11], %s9238_s15, %s9238_s15, %s7306_s26  }
 0x100   : > { %s7309_s12 = smov [#allocation21]   ;;  %s1224_s25 = scalar_lea.hbm %s9207_s19, %s7622_s22 }
 0x101   : > { %s952_s14 = sshll.u32 %s7309_s12, 4  ;;  %s7041_s6 = sshra.s32 %s951_s5, 4  ;;  %s953_s14 = int_to_ptr.vmem [resolvable:$true] %s952_s14  ;;  %s7042_s6 = int_to_ptr.hbm [resolvable:$true] %s7041_s6 }
 0x102   : > { %s7043_s23 = scalar_lea.hbm %s7042_s6, 64  ;;  %s7048_s10 = scalar_lea.hbm %s9204_s24, 64 }
 0x103   : > { %p7044_p6 = scmp.ne.s32.totalorder %s7042_s6, %s7043_s23  ;;  %p7049_p4 = scmp.lt.s32.totalorder %s7042_s6, %s9204_s24 }
 0x104   : > { %p7050_p9 = scmp.lt.s32.totalorder %s7048_s10, %s7043_s23 }
 0x105   : > { %p7046_p3 = pnand %p7044_p6, %p6745_p0 }
 0x106   : > { %p7051_p13 = por %p7050_p9, %p7049_p4 }
 0x107   : > { %p7047_p12 = pneg %p7046_p3 }
 0x109   : > { %p7052_p1 = pnand %p7051_p13, %p7047_p12 }
 0x10b   : > { %7055 = shalt.err (!%p7052_p1)
}
 0x10c   : > { %6471 = dma.hbm_to_vmem [thread:$0]  (!%p7598_p10), %s951_s5, 1024, %s953_s14, [#allocation22], %s9238_s15, %s9238_s15, %s7306_s26  }
 0x10d   : > { %s1225_s22 = sshll.u32 %s1224_s25, 4  ;;  %s1219_s0 = scalar_lea.vmem [#allocation19], %s7619_s2  ;;  %s1226_s22 = int_to_ptr.hbm [resolvable:$true] %s1225_s22 }
 0x10e   : > { %s1227_s7 = sshll.u32 %s1219_s0, 4  ;;  %s7071_s11 = sshra.s32 %s1226_s22, 4  ;;  %s1228_s7 = int_to_ptr.vmem [resolvable:$true] %s1227_s7  ;;  %s7072_s11 = int_to_ptr.hbm [resolvable:$true] %s7071_s11 }
 0x10f   : > { %s7073_s12 = scalar_lea.hbm %s7072_s11, 64  ;;  %s7078_s18 = scalar_lea.hbm %s9207_s19, 192 }
 0x110   : > { %p7074_p0 = scmp.ne.s32.totalorder %s7072_s11, %s7073_s12  ;;  %p7079_p3 = scmp.lt.s32.totalorder %s7072_s11, %s9207_s19 }
 0x111   : > { %p7080_p12 = scmp.lt.s32.totalorder %s7078_s18, %s7073_s12 }
 0x112   : > { %p7076_p2 = pnand %p7074_p0, %p7631_p7 }
 0x113   : > { %p7081_p4 = por %p7080_p12, %p7079_p3 }
 0x114   : > { %p7077_p6 = pneg %p7076_p2 }
 0x116   : > { %p7082_p9 = pnand %p7081_p4, %p7077_p6 }
 0x118   : > { %7085 = shalt.err (!%p7082_p9)
}
 0x119   : > { %6496 = dma.hbm_to_vmem [thread:$0]  (!%p7605_p11), %s1226_s22, 1024, %s1228_s7, %s7627_s28, %s9238_s15, %s9238_s15, %s7306_s26  }
 0x11a   : > { %1245 = sbr.rel (%p7589_p5) target bundleno = 2289 (0x8f1), region = 140 }
 0x11f   : > { %p9239_p10 = scmp.eq.s32.totalorder %s7536_s16, 0 }
 0x121   : > { %7202 = dma.done.wait (%p9239_p10), [#allocation8], 16   ;;  %p9240_p7 = pmov %p9239_p10 }
 0x123   : > { %7204 = vsyncadd (%p9240_p7), [#allocation8], 4294967280  ;;  %p9241_p13 = pmov %p9240_p7 }
 0x124   : > { %p9242_p1 = pmov %p9240_p7 }
 0x125   : > { %7206 = dma.done.wait (%p9241_p13), [#allocation11], 16  }
 0x126   : > { %7208 = vsyncadd (%p9242_p1), [#allocation11], 4294967280  ;;  %s1257_s2 = sand.u32 1, %s7536_s16   ;;  %s1259_s9 = sand.u32 1, %s7247_s1  }
 0x127   : > { %s5385_s28 = sshll.u32 %s1259_s9, 6  ;;  %s1258_s13 = scalar_lea.sflag [#allocation8], %s1257_s2 }
 0x128   : > { %s7778_s17 = scalar_lea.vmem [#allocation12], %s5385_s28 }
 0x129   : > { %9243 = sst [smem:[#allocation81_spill]] %s7778_s17 }
 0x12a   : > { %7210 = dma.done.wait (%p7563_p8), %s1258_s13, 8192  }
 0x12b   : > { %7212 = vsyncadd (%p7563_p8), %s1258_s13, 4294959104  ;;  %s7784_s26 = scalar_lea.vmem [#allocation13], %s5385_s28  ;;  %s7786_s15 = scalar_lea.vmem [#allocation14], %s5385_s28 }
 0x12c   : > { %9244 = sst [smem:[#allocation82_spill]] %s7784_s26  ;;  %s7788_s5 = scalar_lea.vmem [#allocation15], %s5385_s28 }
 0x12d   : > { %9245 = sst [smem:[#allocation83_spill]] %s7786_s15  ;;  %s7790_s14 = scalar_lea.vmem [#allocation16], %s5385_s28 }
 0x12e   : > { %9246 = sst [smem:[#allocation84_spill]] %s7788_s5  ;;  %s7792_s25 = scalar_lea.vmem [#allocation17], %s5385_s28 }
 0x12f   : > { %9247 = sst [smem:[#allocation85_spill]] %s7790_s14  ;;  %s7794_s6 = scalar_lea.vmem [#allocation18], %s5385_s28 }
 0x130   : > { %9248 = sst [smem:[#allocation86_spill]] %s7792_s25  ;;  %s7796_s23 = scalar_lea.vmem [#allocation19], %s5385_s28 }
 0x131   : > { %9249 = sst [smem:[#allocation87_spill]] %s7794_s6  ;;  %p9251_p5 = pmov %p9242_p1 }
 0x132   : > { %9250 = sst [smem:[#allocation88_spill]] %s7796_s23 }
 0x133   : > { %7214 = dma.done.wait (%p9251_p5), [#allocation11], 1024   ;;  %p9252_p11 = pmov %p9242_p1 }
 0x134   : > { %p9253_p8 = pmov %p9242_p1 }
 0x135   : > { %7216 = vsyncadd (%p9252_p11), [#allocation11], 4294966272 }
 0x136   : > { %7218 = dma.done.wait (%p9253_p8), [#allocation22], 1024   ;;  %p9254_p0 = pmov %p9242_p1 }
 0x137   : > { %s9255_s29 = sld [smem:[#allocation66_spill]] }
 0x138   : > { %7220 = vsyncadd (%p9254_p0), [#allocation22], 4294966272  ;;  %s9256_s10 = sld [smem:[#allocation71_spill]] }
 0x139   : > { %s9257_s22 = sld [smem:[#allocation70_spill]] }
 0x13a   : > { %s9259_s7 = sld [smem:[#allocation33_spill]] }
 0x13b   : > { %s9260_s11 = sld [smem:[#allocation34_spill]] }
 0x13c   : > { %s9261_s12 = sld [smem:[#allocation35_spill]] }
 0x13d   : > { %s9262_s18 = sld [smem:[#allocation44_spill]]  ;;  %s7807_s28 = sand.u32 1, %s9255_s29  }
 0x13e   : > { %s9263_s2 = sld [smem:[#allocation41_spill]]  ;;  %p1517_p2 = scmp.lt.s32.totalorder %s9256_s10, 1 }
 0x13f   : > { %s9264_s9 = sld [smem:[#allocation42_spill]]  ;;  %s5395_s3 = sshll.u32 %s7807_s28, 1 }
 0x140   : > { %9265 = sst [smem:[#allocation89_spill]] %s7807_s28  ;;  %s5396_s8 = sshll.u32 %s7807_s28, 7 }
 0x141   : > { %s9266_s13 = sld [smem:[#allocation43_spill]]  ;;  %s9349_s10 = smov (!%p1517_p2, %s9256_s10), 1 }
 0x142   : > { %s9267_s16 = sld [smem:[#allocation45_spill]]  ;;  %p1535_p6 = scmp.lt.s32.totalorder %s9257_s22, 2 }
 0x143   : > { %s9268_s4 = sld [smem:[#allocation46_spill]]  ;;  %s6040_s24 = sshll.u32 %s9349_s10, 7 }
 0x144   : > { %s9269_s19 = sld [smem:[#allocation50_spill]]  ;;  %s7820_s30 = scalar_lea.vmem %s9259_s7, %s6040_s24 }
 0x145   : > { %s9270_s20 = sld [smem:[#allocation52_spill]]  ;;  %s7823_s1 = scalar_lea.vmem %s9260_s11, %s6040_s24 }
 0x146   : > { %s9271_s21 = sld [smem:[#allocation56_spill]]  ;;  %s7826_s23 = scalar_lea.vmem %s9261_s12, %s6040_s24 }
 0x147   : > { %s9272_s27 = sld [smem:[#allocation58_spill]]  ;;  %s7856_s17 = scalar_lea.vmem [#allocation23], %s5395_s3 }
 0x148   : > { %s7829_s14 = scalar_select %p1535_p6, %s9257_s22, 2 }
 0x149   : > { %s7858_s26 = scalar_lea.vmem [#allocation24], %s5396_s8  ;;  %p5411_p3 = scmp.ne.s32.totalorder %s9257_s22, 0 }
 0x14a   : > { %s6043_s28 = sshll.u32 %s7829_s14, 6  ;;  %s1552_s25 = scalar_lea.vmem %s9262_s18, %s7829_s14 }
 0x14b   : > { %s7835_s6 = scalar_lea.vmem %s9263_s2, %s6043_s28  ;;  %s7838_s0 = scalar_lea.vmem %s9264_s9, %s6043_s28 }
 0x14c   : > { %s7841_s7 = scalar_lea.vmem %s9266_s13, %s6043_s28  ;;  %s7844_s11 = scalar_lea.vmem %s9267_s16, %s6043_s28 }
 0x14d   : > { %s1560_s24 = scalar_lea.vmem %s9268_s4, %s7829_s14  ;;  %s1563_s12 = scalar_lea.vmem %s9269_s19, %s7829_s14 }
 0x14e   : > { %s1566_s29 = scalar_lea.vmem %s9270_s20, %s7829_s14  ;;  %s1569_s5 = scalar_lea.vmem %s9271_s21, %s7829_s14 }
 0x14f   : > { %s1572_s15 = scalar_lea.vmem %s9272_s27, %s7829_s14  ;;  %1577 = sbr.rel (%p5411_p3) target bundleno = 544 (0x220), region = 192 }
 0x150   : > { %s9273_s18 = sld [smem:[#allocation39_spill]] (!%p5411_p3) }
 0x151   : > { %s9274_s2 = sld [smem:[#allocation37_spill]] (!%p5411_p3) }
 0x152   : > { %s9275_s21 = sld [smem:[#allocation36_spill]] (!%p5411_p3) }
 0x154   : > { %v7862_v0 = vld [vmem:[%s7826_s23 + $0x20] sm:$0xff]  ;;  %v7865_v1 = vld [vmem:[%s7826_s23 + $0x10] sm:$0xff]  ;;  %vm1742_vm0 = vcmask 1043456   ;;  %v7310_v3 = vmov 0   ;;  %v1697_v8 = vld [vmem:[%s7823_s1 + $0x48] sm:$0xff]  ;;  %vm1717_vm1 = vcmask 64512  }
 0x155   : > { %v7868_v2 = vld [vmem:[%s7826_s23] sm:$0xff]  ;;  %6646 = vset.pattern.permute.xlu2 %v7310_v3  ;;  %6645 = vset.pattern.permute.xlu1 %v7310_v3  ;;  %v1587_v10 = vld [vmem:[%s7820_s30 + $0x48] sm:$0xff]  ;;  %vm1614_vm2 = vcmask 130048   ;;  %v7891_v20 = vld [vmem:[%s7826_s23 + $0x18] sm:$0xff]  ;;  %v7311_v56 = vmov 1  }
 0x156   : > { %v1712_v4 = vld [vmem:[%s9273_s18] sm:$0xf]  ;;  %6644 = vset.pattern.permute.xlu0 %v7310_v3  ;;  %1906 = vperm.xlu2 %6646, %v7862_v0   ;;  %v1579_v14 = vld [vmem:[%s7820_s30 + $0x8] sm:$0xff]  ;;  %v7900_v23 = vld [vmem:[%s7826_s23 + $0x38] sm:$0xff] }
 0x157   : > { %v6047_v5 = vld [vmem:[%s9274_s2] sm:$0xff]  ;;  %v1744_v7 = vsel %vm1742_vm0, %v1712_v4, 0  ;;  %1900 = vperm.xlu1 %6645, %v7865_v1   ;;  %1894 = vperm.xlu0 %6644, %v7868_v2   ;;  %v1689_v17 = vld [vmem:[%s7823_s1 + $0x8] sm:$0xff]  ;;  %v7903_v24 = vld [vmem:[%s7826_s23 + $0x30] sm:$0xff] }
 0x158   : > { %v1696_v6 = vld [vmem:[%s7823_s1 + $0x40] sm:$0xff]  ;;  %6350 = vmatpush.bf16.msra.mxu3 %v1744_v7  ;;  %6349 = vmatpush.bf16.msra.mxu2 %v6047_v5  ;;  %v7886_v19 = vld [vmem:[%s7826_s23 + $0x28] sm:$0xff]  ;;  %v1698_v25 = vld [vmem:[%s7823_s1 + $0x50] sm:$0xff]  ;;  %s9276_s3 = scalar_lea.vmem %s9275_s21, %s9349_s10 }
 0x159   : > { %v1586_v9 = vld [vmem:[%s7820_s30 + $0x40] sm:$0xff]  ;;  %v1708_v11 = vpack.c.bf16 %v1697_v8, %v1696_v6  ;;  %1646 = vmatpush.bf16.msra.mxu0 %v6047_v5  ;;  %1753 = vmatpush.bf16.msra.mxu1 %v1744_v7  ;;  %v1876_v21 = vld [vmem:[%s7826_s23 + $0x8] sm:$0xff]  ;;  %v1699_v26 = vld [vmem:[%s7823_s1 + $0x58] sm:$0xff] }
 0x15a   : > { %v1598_v12 = vpack.c.bf16 %v1587_v10, %v1586_v9  ;;  %v1578_v13 = vld [vmem:[%s7820_s30] sm:$0xff]  ;;  %v1588_v27 = vld [vmem:[%s7820_s30 + $0x50] sm:$0xff]  ;;  %v1589_v28 = vld [vmem:[%s7820_s30 + $0x58] sm:$0xff]  ;;  %v1709_v33 = vpack.c.bf16 %v1699_v26, %v1698_v25 }
 0x15b   : > { %v1688_v15 = vld [vmem:[%s7823_s1] sm:$0xff]  ;;  %v1594_v16 = vpack.c.bf16 %v1579_v14, %v1578_v13  ;;  %5428 = vmatmul.msk.bf16.vlgmr.msra.gmra.mxu3 %vm1717_vm1, %v1708_v11  ;;  %v1580_v29 = vld [vmem:[%s7820_s30 + $0x10] sm:$0xff]  ;;  %v1581_v30 = vld [vmem:[%s7820_s30 + $0x18] sm:$0xff]  ;;  %v1599_v34 = vpack.c.bf16 %v1589_v28, %v1588_v27 }
 0x15c   : > { %v1704_v18 = vpack.c.bf16 %v1689_v17, %v1688_v15  ;;  %5420 = vmatmul.msk.bf16.vlgmr.msra.gmra.mxu2 %vm1614_vm2, %v1598_v12  ;;  %v7897_v22 = vld [vmem:[%s7826_s23 + $0x40] sm:$0xff]  ;;  %v1690_v31 = vld [vmem:[%s7823_s1 + $0x10] sm:$0xff]  ;;  %v1691_v32 = vld [vmem:[%s7823_s1 + $0x18] sm:$0xff]  ;;  %v1595_v35 = vpack.c.bf16 %v1581_v30, %v1580_v29 }
 0x15d   : > { %5416 = vmatmul.msk.bf16.vlgmr.msra.gmra.mxu0 %vm1614_vm2, %v1594_v16  ;;  %v1705_v36 = vpack.c.bf16 %v1691_v32, %v1690_v31  ;;  %v7919_v37 = vld [vmem:[%s7826_s23 + $0x58] sm:$0xff]  ;;  %v7924_v38 = vld [vmem:[%s7826_s23 + $0x50] sm:$0xff]  ;;  %v7927_v39 = vld [vmem:[%s7826_s23 + $0x48] sm:$0xff] }
 0x15e   : > { %5424 = vmatmul.msk.bf16.vlgmr.msra.gmra.mxu1 %vm1717_vm1, %v1704_v18  ;;  %1909 = vperm.xlu2 %6646, %v7886_v19   ;;  %v7933_v40 = vld [vmem:[%s7826_s23 + $0x70] sm:$0xff]  ;;  %v7936_v41 = vld [vmem:[%s7826_s23 + $0x68] sm:$0xff]  ;;  %v1887_v42 = vld [vmem:[%s7826_s23 + $0x60] sm:$0xff] }
 0x15f   : > { %1903 = vperm.xlu1 %6645, %v7891_v20   ;;  %1897 = vperm.xlu0 %6644, %v1876_v21   ;;  %v1700_v43 = vld [vmem:[%s7823_s1 + $0x60] sm:$0xff]  ;;  %v1701_v44 = vld [vmem:[%s7823_s1 + $0x68] sm:$0xff]  ;;  %v1890_v55 = vld [vmem:[%s7826_s23 + $0x78] sm:$0xff] }
 0x160   : > { %v1590_v45 = vld [vmem:[%s7820_s30 + $0x60] sm:$0xff]  ;;  %v1591_v46 = vld [vmem:[%s7820_s30 + $0x68] sm:$0xff]  ;;  %v1710_v51 = vpack.c.bf16 %v1701_v44, %v1700_v43  ;;  %v1702_v57 = vld [vmem:[%s7823_s1 + $0x70] sm:$0xff] }
 0x161   : > { %v1582_v47 = vld [vmem:[%s7820_s30 + $0x20] sm:$0xff]  ;;  %v1583_v48 = vld [vmem:[%s7820_s30 + $0x28] sm:$0xff]  ;;  %v1600_v52 = vpack.c.bf16 %v1591_v46, %v1590_v45  ;;  %v1703_v58 = vld [vmem:[%s7823_s1 + $0x78] sm:$0xff] }
 0x162   : > { %v1692_v49 = vld [vmem:[%s7823_s1 + $0x20] sm:$0xff]  ;;  %v1693_v50 = vld [vmem:[%s7823_s1 + $0x28] sm:$0xff]  ;;  %v1596_v53 = vpack.c.bf16 %v1583_v48, %v1582_v47  ;;  %v1592_v59 = vld [vmem:[%s7820_s30 + $0x70] sm:$0xff]  ;;  %v1711_v4 = vpack.c.bf16 %v1703_v58, %v1702_v57 }
 0x163   : > { %v1706_v54 = vpack.c.bf16 %v1693_v50, %v1692_v49  ;;  %v1593_v60 = vld [vmem:[%s7820_s30 + $0x78] sm:$0xff]  ;;  %v1584_v61 = vld [vmem:[%s7820_s30 + $0x30] sm:$0xff]  ;;  %v6650_v8 = vld [vmem:[%s9276_s3] ss:$0 sm:$0xff] }
 0x164   : > { %v1585_v62 = vld [vmem:[%s7820_s30 + $0x38] sm:$0xff]  ;;  %v1694_v63 = vld [vmem:[%s7823_s1 + $0x30] sm:$0xff]  ;;  %v1601_v5 = vpack.c.bf16 %v1593_v60, %v1592_v59  ;;  %v7999_v30 = vld [vmem:[#allocation7] ss:$0 sm:$0xff] }
 0x165   : > { %v1695_v3 = vld [vmem:[%s7823_s1 + $0x38] sm:$0xff]  ;;  %v1597_v6 = vpack.c.bf16 %v1585_v62, %v1584_v61 }
 0x166   : > { %1918 = vperm.xlu2 %6646, %v7897_v22   ;;  %v1707_v7 = vpack.c.bf16 %v1695_v3, %v1694_v63 }
 0x167   : > { %1915 = vperm.xlu1 %6645, %v7900_v23   ;;  %1912 = vperm.xlu0 %6644, %v7903_v24  }
 0x16b   : > { %5429 = vmatmul.msk.bf16.gmra.mxu3 %vm1717_vm1, %v1709_v33 }
 0x16c   : > { %5421 = vmatmul.msk.bf16.gmra.mxu2 %vm1614_vm2, %v1599_v34 }
 0x16d   : > { %5417 = vmatmul.msk.bf16.gmra.mxu0 %vm1614_vm2, %v1595_v35 }
 0x16e   : > { %5425 = vmatmul.msk.bf16.gmra.mxu1 %vm1717_vm1, %v1705_v36  ;;  %1927 = vperm.xlu2 %6646, %v7919_v37  }
 0x16f   : > { %1924 = vperm.xlu1 %6645, %v7924_v38   ;;  %1921 = vperm.xlu0 %6644, %v7927_v39  }
 0x176   : > { %1936 = vperm.xlu2 %6646, %v7933_v40  }
 0x177   : > { %1933 = vperm.xlu1 %6645, %v7936_v41   ;;  %1930 = vperm.xlu0 %6644, %v1887_v42  }
 0x17b   : > { %5430 = vmatmul.msk.bf16.gmra.mxu3 %vm1717_vm1, %v1710_v51 }
 0x17c   : > { %5422 = vmatmul.msk.bf16.gmra.mxu2 %vm1614_vm2, %v1600_v52 }
 0x17d   : > { %5418 = vmatmul.msk.bf16.gmra.mxu0 %vm1614_vm2, %v1596_v53 }
 0x17e   : > { %5426 = vmatmul.msk.bf16.gmra.mxu1 %vm1717_vm1, %v1706_v54  ;;  %6648 = vset.pattern.permute.xlu2 %v7311_v56 }
 0x17f   : > { %6647 = vset.pattern.permute.xlu1 %v7311_v56  ;;  %1939 = vperm.xlu0 %6644, %v1890_v55  }
 0x180   : > { %2009 = vperm.xlu2 %6648, %v1876_v21   ;;  %2006 = vperm.xlu1 %6647, %v7868_v2   ;;  %v1891_v2 = vlaneseq }
 0x182   : > { %v2118_v9 = vshrl.u32 %v1891_v2, 7  ;;  %v7983_v12 = vand.u32 127, %v1891_v2 }
 0x184   : > { %vm2121_vm3 = vcmp.eq.s32.totalorder %v2118_v9, %v6650_v8 }
 0x187   : > { %6649 = vset.pattern.permute.xlu0 %v7311_v56 }
 0x188   : > { %2018 = vperm.xlu2 %6648, %v7862_v0   ;;  %2015 = vperm.xlu1 %6647, %v7891_v20   ;;  %v7312_v0 = vmov 0.0  }
 0x189   : > { %2012 = vperm.xlu0 %6649, %v7865_v1   ;;  %v2122_v10 = vsel %vm2121_vm3, 1.0, %v7312_v0 }
 0x18a   : > { %v2123_v11 = vpack.c.bf16 %v2122_v10, %v2122_v10 }
 0x18b   : > { %5431 = vmatmul.msk.bf16.gmra.mxu3 %vm1717_vm1, %v1711_v4 }
 0x18c   : > { %5423 = vmatmul.msk.bf16.gmra.mxu2 %vm1614_vm2, %v1601_v5  ;;  %2124 = vst [vmem:[#allocation6] sm:$0x1] %v2123_v11 }
 0x18d   : > { %5419 = vmatmul.msk.bf16.gmra.mxu0 %vm1614_vm2, %v1597_v6 }
 0x18e   : > { %5427 = vmatmul.msk.bf16.gmra.mxu1 %vm1717_vm1, %v1707_v7 }
 0x190   : > { %2024 = vperm.xlu2 %6648, %v7903_v24   ;;  %2021 = vperm.xlu1 %6647, %v7886_v19  }
 0x191   : > { %2027 = vperm.xlu0 %6649, %v7900_v23  }
 0x198   : > { %2033 = vperm.xlu2 %6648, %v7927_v39   ;;  %2030 = vperm.xlu1 %6647, %v7897_v22   ;;  %v8007_v39 = vld [vmem:[#allocation10] ss:$0 sm:$0xff] }
 0x199   : > { %2036 = vperm.xlu0 %6649, %v7924_v38  }
 0x1a0   : > { %2042 = vperm.xlu2 %6648, %v1887_v42   ;;  %2039 = vperm.xlu1 %6647, %v7919_v37  }
 0x1a1   : > { %2045 = vperm.xlu0 %6649, %v7936_v41  }
 0x1a8   : > { %2051 = vperm.xlu2 %6648, %v1890_v55   ;;  %2048 = vperm.xlu1 %6647, %v7933_v40  }
 0x1b0   : > { %v1907_v1 = vpop.permute.xlu2 %1906 }
 0x1b1   : > { %vm1945_vm4 = vcmp.eq.s32.totalorder %v1907_v1, %v7983_v12 }
 0x1b2   : > { %v1961_v13 = vsel %vm1945_vm4, 1.0, %v7312_v0 }
 0x1b8   : > { %v1910_v14 = vpop.permute.xlu2 %1909 }
 0x1b9   : > { %vm1946_vm5 = vcmp.eq.s32.totalorder %v1910_v14, %v7983_v12 }
 0x1ba   : > { %v1962_v15 = vsel %vm1946_vm5, 1.0, %v7312_v0 }
 0x1bb   : > { %v6280_v16 = vpack.c.bf16 %v1962_v15, %v1961_v13 }
 0x1bd   : > { %6336 = vst [vmem:[#allocation4 + $0x38] sm:$0xff] %v6280_v16  }
 0x1c0   : > { %v1919_v17 = vpop.permute.xlu2 %1918 }
 0x1c1   : > { %vm1949_vm12 = vcmp.eq.s32.totalorder %v1919_v17, %v7983_v12 }
 0x1c2   : > { %v1965_v46 = vsel %vm1949_vm12, 1.0, %v7312_v0 }
 0x1c8   : > { %v1928_v20 = vpop.permute.xlu2 %1927 }
 0x1c9   : > { %v1901_v18 = vpop.permute.xlu1 %1900  ;;  %v1895_v19 = vpop.permute.xlu0 %1894  ;;  %vm1952_vm13 = vcmp.eq.s32.totalorder %v1928_v20, %v7983_v12 }
 0x1ca   : > { %vm1941_vm6 = vcmp.eq.s32.totalorder %v1895_v19, %v7983_v12  ;;  %vm1943_vm7 = vcmp.eq.s32.totalorder %v1901_v18, %v7983_v12  ;;  %v1968_v49 = vsel %vm1952_vm13, 1.0, %v7312_v0 }
 0x1cb   : > { %v1957_v21 = vsel %vm1941_vm6, 1.0, %v7312_v0  ;;  %v1959_v24 = vsel %vm1943_vm7, 1.0, %v7312_v0 }
 0x1d0   : > { %v7997_v29 = vpop.permute.xlu2 %1936 }
 0x1d1   : > { %v1904_v22 = vpop.permute.xlu1 %1903  ;;  %v1898_v23 = vpop.permute.xlu0 %1897  ;;  %vm1955_vm3 = vcmp.eq.s32.totalorder %v7997_v29, %v7983_v12 }
 0x1d2   : > { %vm1944_vm8 = vcmp.eq.s32.totalorder %v1904_v22, %v7983_v12  ;;  %vm1942_vm9 = vcmp.eq.s32.totalorder %v1898_v23, %v7983_v12  ;;  %v1971_v19 = vsel %vm1955_vm3, 1.0, %v7312_v0 }
 0x1d3   : > { %v1960_v25 = vsel %vm1944_vm8, 1.0, %v7312_v0  ;;  %v1958_v26 = vsel %vm1942_vm9, 1.0, %v7312_v0 }
 0x1d4   : > { %v6277_v27 = vpack.c.bf16 %v1960_v25, %v1959_v24  ;;  %v6274_v28 = vpack.c.bf16 %v1958_v26, %v1957_v21 }
 0x1d6   : > { %6335 = vst [vmem:[#allocation4 + $0x20] sm:$0xff] %v6277_v27  }
 0x1d7   : > { %6275 = vst [vmem:[#allocation4 + $0x28] sm:$0xff] %v6274_v28  }
 0x1d9   : > { %v1916_v31 = vpop.permute.xlu1 %1915  ;;  %v1913_v32 = vpop.permute.xlu0 %1912 }
 0x1da   : > { %vm1948_vm10 = vcmp.eq.s32.totalorder %v1916_v31, %v7983_v12  ;;  %vm1947_vm11 = vcmp.eq.s32.totalorder %v1913_v32, %v7983_v12  ;;  %v1648_v33 = vpop.f32.mrf.mxu0  ;;  %v2010_v43 = vpop.permute.xlu2 %2009 }
 0x1db   : > { %v1964_v34 = vsel %vm1948_vm10, 1.0, %v7312_v0  ;;  %v1963_v35 = vsel %vm1947_vm11, 1.0, %v7312_v0  ;;  %v1649_v36 = vadd.f32 %v7999_v30, %v1648_v33  ;;  %v1755_v37 = vpop.f32.mrf.mxu1  ;;  %vm2054_vm2 = vcmp.eq.s32.totalorder %v2010_v43, %v7983_v12 }
 0x1dc   : > { %v6283_v38 = vpack.c.bf16 %v1964_v34, %v1963_v35  ;;  %v1756_v47 = vadd.f32 %v8007_v39, %v1755_v37  ;;  %v2070_v17 = vsel %vm2054_vm2, 1.0, %v7312_v0 }
 0x1dd   : > { %1859 = vst [vmem:[%s7858_s26] sm:$0xff] %v1649_v36 }
 0x1de   : > { %6337 = vst [vmem:[#allocation4 + $0x10] sm:$0xff] %v6283_v38   ;;  %v1775_v40 = vpop.f32.mrf.mxu3 }
 0x1df   : > { %v1668_v41 = vpop.f32.mrf.mxu2  ;;  %v1776_v61 = vadd.f32 %v8007_v39, %v1775_v40 }
 0x1e0   : > { %v1669_v42 = vadd.f32 %v7999_v30, %v1668_v41 }
 0x1e1   : > { %v1925_v44 = vpop.permute.xlu1 %1924  ;;  %v1922_v45 = vpop.permute.xlu0 %1921 }
 0x1e2   : > { %1867 = vst [vmem:[%s7858_s26 + $0x40] sm:$0xff] %v1669_v42  ;;  %vm1951_vm14 = vcmp.eq.s32.totalorder %v1925_v44, %v7983_v12  ;;  %vm1950_vm15 = vcmp.eq.s32.totalorder %v1922_v45, %v7983_v12  ;;  %v1650_v48 = vpop.f32.mrf.mxu0  ;;  %v8029_v2 = vpop.permute.xlu2 %2018 }
 0x1e3   : > { %v1967_v50 = vsel %vm1951_vm14, 1.0, %v7312_v0  ;;  %v1966_v51 = vsel %vm1950_vm15, 1.0, %v7312_v0  ;;  %v1651_v52 = vadd.f32 %v7999_v30, %v1650_v48  ;;  %v1757_v53 = vpop.f32.mrf.mxu1  ;;  %vm2057_vm8 = vcmp.eq.s32.totalorder %v8029_v2, %v7983_v12 }
 0x1e4   : > { %v6289_v54 = vpack.c.bf16 %v1968_v49, %v1967_v50  ;;  %v6286_v55 = vpack.c.bf16 %v1966_v51, %v1965_v46  ;;  %v1758_v56 = vadd.f32 %v8007_v39, %v1757_v53 }
 0x1e5   : > { %v6196_v57 = vpack.c.bf16 %v1651_v52, %v1649_v36  ;;  %1860 = vst [vmem:[%s7858_s26 + $0x8] sm:$0xff] %v1651_v52 }
 0x1e6   : > { %6339 = vst [vmem:[#allocation4 + $0x30] sm:$0xff] %v6289_v54   ;;  %v6236_v58 = vpack.c.bf16 %v1758_v56, %v1756_v47  ;;  %v1777_v59 = vpop.f32.mrf.mxu3 }
 0x1e7   : > { %v1670_v60 = vpop.f32.mrf.mxu2  ;;  %6338 = vst [vmem:[#allocation4 + $0x8] sm:$0xff] %v6286_v55   ;;  %v1778_v62 = vadd.f32 %v8007_v39, %v1777_v59 }
 0x1e8   : > { %v1671_v63 = vadd.f32 %v7999_v30, %v1670_v60  ;;  %6197 = vst [vmem:[#allocation2 + $0x30] sm:$0xff] %v6196_v57   ;;  %v2073_v57 = vsel %vm2057_vm8, 1.0, %v7312_v0 }
 0x1e9   : > { %6237 = vst [vmem:[#allocation3] sm:$0xff] %v6236_v58   ;;  %v6256_v3 = vpack.c.bf16 %v1778_v62, %v1776_v61  ;;  %v1934_v5 = vpop.permute.xlu1 %1933  ;;  %v1931_v6 = vpop.permute.xlu0 %1930 }
 0x1ea   : > { %v6216_v4 = vpack.c.bf16 %v1671_v63, %v1669_v42  ;;  %1868 = vst [vmem:[%s7858_s26 + $0x48] sm:$0xff] %v1671_v63  ;;  %vm1954_vm0 = vcmp.eq.s32.totalorder %v1934_v5, %v7983_v12  ;;  %vm1953_vm1 = vcmp.eq.s32.totalorder %v1931_v6, %v7983_v12  ;;  %v1653_v7 = vpop.f32.mrf.mxu0  ;;  %v2025_v27 = vpop.permute.xlu2 %2024 }
 0x1eb   : > { %6331 = vst [vmem:[#allocation3 + $0x28] sm:$0xff] %v6256_v3   ;;  %v1970_v8 = vsel %vm1954_vm0, 1.0, %v7312_v0  ;;  %v1969_v9 = vsel %vm1953_vm1, 1.0, %v7312_v0  ;;  %v1654_v10 = vadd.f32 %v7999_v30, %v1653_v7  ;;  %v1760_v11 = vpop.f32.mrf.mxu1  ;;  %vm2059_vm9 = vcmp.eq.s32.totalorder %v2025_v27, %v7983_v12 }
 0x1ec   : > { %6324 = vst [vmem:[#allocation2 + $0x8] sm:$0xff] %v6216_v4   ;;  %v6292_v1 = vpack.c.bf16 %v1970_v8, %v1969_v9  ;;  %v1761_v20 = vadd.f32 %v8007_v39, %v1760_v11  ;;  %v2075_v61 = vsel %vm2059_vm9, 1.0, %v7312_v0 }
 0x1ed   : > { %1861 = vst [vmem:[%s7858_s26 + $0x10] sm:$0xff] %v1654_v10 }
 0x1ee   : > { %6340 = vst [vmem:[#allocation4 + $0x18] sm:$0xff] %v6292_v1   ;;  %v1780_v13 = vpop.f32.mrf.mxu3 }
 0x1ef   : > { %v1673_v14 = vpop.f32.mrf.mxu2  ;;  %v1781_v34 = vadd.f32 %v8007_v39, %v1780_v13 }
 0x1f0   : > { %v1674_v15 = vadd.f32 %v7999_v30, %v1673_v14 }
 0x1f1   : > { %v1940_v16 = vpop.permute.xlu0 %1939 }
 0x1f2   : > { %1869 = vst [vmem:[%s7858_s26 + $0x50] sm:$0xff] %v1674_v15  ;;  %vm1956_vm4 = vcmp.eq.s32.totalorder %v1940_v16, %v7983_v12  ;;  %v2007_v18 = vpop.permute.xlu1 %2006  ;;  %v1655_v22 = vpop.f32.mrf.mxu0 }
 0x1f3   : > { %v1972_v21 = vsel %vm1956_vm4, 1.0, %v7312_v0  ;;  %vm2053_vm5 = vcmp.eq.s32.totalorder %v2007_v18, %v7983_v12  ;;  %v1762_v23 = vpop.f32.mrf.mxu1  ;;  %v1656_v26 = vadd.f32 %v7999_v30, %v1655_v22  ;;  %v2034_v52 = vpop.permute.xlu2 %2033 }
 0x1f4   : > { %v6295_v24 = vpack.c.bf16 %v1972_v21, %v1971_v19  ;;  %v2069_v25 = vsel %vm2053_vm5, 1.0, %v7312_v0  ;;  %v1763_v29 = vadd.f32 %v8007_v39, %v1762_v23  ;;  %vm2062_vm12 = vcmp.eq.s32.totalorder %v2034_v52, %v7983_v12 }
 0x1f5   : > { %v6298_v28 = vpack.c.bf16 %v2070_v17, %v2069_v25  ;;  %v6201_v31 = vpack.c.bf16 %v1656_v26, %v1654_v10  ;;  %1862 = vst [vmem:[%s7858_s26 + $0x18] sm:$0xff] %v1656_v26  ;;  %v2078_v17 = vsel %vm2062_vm12, 1.0, %v7312_v0 }
 0x1f6   : > { %6341 = vst [vmem:[#allocation4] sm:$0xff] %v6295_v24   ;;  %v1782_v32 = vpop.f32.mrf.mxu3  ;;  %v6241_v35 = vpack.c.bf16 %v1763_v29, %v1761_v20 }
 0x1f7   : > { %v1675_v33 = vpop.f32.mrf.mxu2  ;;  %6299 = vst [vmem:[#allocation5 + $0x8] sm:$0xff] %v6298_v28   ;;  %v1783_v36 = vadd.f32 %v8007_v39, %v1782_v32 }
 0x1f8   : > { %v1676_v37 = vadd.f32 %v7999_v30, %v1675_v33  ;;  %6321 = vst [vmem:[#allocation2] sm:$0xff] %v6201_v31  }
 0x1f9   : > { %v6261_v38 = vpack.c.bf16 %v1783_v36, %v1781_v34  ;;  %6328 = vst [vmem:[#allocation3 + $0x18] sm:$0xff] %v6241_v35  }
 0x1fa   : > { %v6221_v40 = vpack.c.bf16 %v1676_v37, %v1674_v15  ;;  %v2016_v41 = vpop.permute.xlu1 %2015  ;;  %v1658_v43 = vpop.f32.mrf.mxu0  ;;  %1870 = vst [vmem:[%s7858_s26 + $0x58] sm:$0xff] %v1676_v37 }
 0x1fb   : > { %6332 = vst [vmem:[#allocation3 + $0x8] sm:$0xff] %v6261_v38   ;;  %vm2056_vm6 = vcmp.eq.s32.totalorder %v2016_v41, %v7983_v12  ;;  %v2013_v42 = vpop.permute.xlu0 %2012  ;;  %v1659_v45 = vadd.f32 %v7999_v30, %v1658_v43  ;;  %v1765_v46 = vpop.f32.mrf.mxu1 }
 0x1fc   : > { %6325 = vst [vmem:[#allocation2 + $0x20] sm:$0xff] %v6221_v40   ;;  %v2072_v44 = vsel %vm2056_vm6, 1.0, %v7312_v0  ;;  %vm2055_vm7 = vcmp.eq.s32.totalorder %v2013_v42, %v7983_v12  ;;  %v1766_v54 = vadd.f32 %v8007_v39, %v1765_v46  ;;  %v2043_v13 = vpop.permute.xlu2 %2042 }
 0x1fd   : > { %v2071_v47 = vsel %vm2055_vm7, 1.0, %v7312_v0  ;;  %1863 = vst [vmem:[%s7858_s26 + $0x20] sm:$0xff] %v1659_v45  ;;  %vm2065_vm15 = vcmp.eq.s32.totalorder %v2043_v13, %v7983_v12 }
 0x1fe   : > { %v6301_v48 = vpack.c.bf16 %v2072_v44, %v2071_v47  ;;  %v1785_v49 = vpop.f32.mrf.mxu3  ;;  %v2081_v34 = vsel %vm2065_vm15, 1.0, %v7312_v0 }
 0x1ff   : > { %v1678_v50 = vpop.f32.mrf.mxu2  ;;  %v1786_v2 = vadd.f32 %v8007_v39, %v1785_v49 }
 0x200   : > { %v1679_v51 = vadd.f32 %v7999_v30, %v1678_v50  ;;  %6342 = vst [vmem:[#allocation5] sm:$0xff] %v6301_v48  }
 0x202   : > { %1871 = vst [vmem:[%s7858_s26 + $0x60] sm:$0xff] %v1679_v51  ;;  %v2022_v53 = vpop.permute.xlu1 %2021  ;;  %v1660_v56 = vpop.f32.mrf.mxu0 }
 0x203   : > { %vm2058_vm10 = vcmp.eq.s32.totalorder %v2022_v53, %v7983_v12  ;;  %v2028_v55 = vpop.permute.xlu0 %2027  ;;  %v1661_v59 = vadd.f32 %v7999_v30, %v1660_v56  ;;  %v1767_v60 = vpop.f32.mrf.mxu1 }
 0x204   : > { %v2074_v58 = vsel %vm2058_vm10, 1.0, %v7312_v0  ;;  %vm2060_vm11 = vcmp.eq.s32.totalorder %v2028_v55, %v7983_v12  ;;  %v1768_v3 = vadd.f32 %v8007_v39, %v1767_v60  ;;  %v2052_v35 = vpop.permute.xlu2 %2051 }
 0x205   : > { %v6304_v62 = vpack.c.bf16 %v2074_v58, %v2073_v57  ;;  %v2076_v63 = vsel %vm2060_vm11, 1.0, %v7312_v0  ;;  %v6206_v5 = vpack.c.bf16 %v1661_v59, %v1659_v45  ;;  %1864 = vst [vmem:[%s7858_s26 + $0x28] sm:$0xff] %v1661_v59  ;;  %vm2068_vm2 = vcmp.eq.s32.totalorder %v2052_v35, %v7983_v12 }
 0x206   : > { %v6307_v4 = vpack.c.bf16 %v2076_v63, %v2075_v61  ;;  %v1787_v6 = vpop.f32.mrf.mxu3  ;;  %v6246_v8 = vpack.c.bf16 %v1768_v3, %v1766_v54 }
 0x207   : > { %v1680_v7 = vpop.f32.mrf.mxu2  ;;  %6343 = vst [vmem:[#allocation5 + $0x10] sm:$0xff] %v6304_v62   ;;  %v1788_v9 = vadd.f32 %v8007_v39, %v1787_v6 }
 0x208   : > { %v1681_v10 = vadd.f32 %v7999_v30, %v1680_v7  ;;  %6344 = vst [vmem:[#allocation5 + $0x20] sm:$0xff] %v6307_v4  }
 0x209   : > { %6322 = vst [vmem:[#allocation2 + $0x18] sm:$0xff] %v6206_v5   ;;  %v6266_v11 = vpack.c.bf16 %v1788_v9, %v1786_v2 }
 0x20a   : > { %v6226_v1 = vpack.c.bf16 %v1681_v10, %v1679_v51  ;;  %6329 = vst [vmem:[#allocation3 + $0x10] sm:$0xff] %v6246_v8   ;;  %v2031_v14 = vpop.permute.xlu1 %2030  ;;  %v1663_v16 = vpop.f32.mrf.mxu0  ;;  %v2084_v51 = vsel %vm2068_vm2, 1.0, %v7312_v0 }
 0x20b   : > { %6333 = vst [vmem:[#allocation3 + $0x30] sm:$0xff] %v6266_v11   ;;  %vm2061_vm13 = vcmp.eq.s32.totalorder %v2031_v14, %v7983_v12  ;;  %v2037_v15 = vpop.permute.xlu0 %2036  ;;  %v1664_v19 = vadd.f32 %v7999_v30, %v1663_v16  ;;  %v1770_v20 = vpop.f32.mrf.mxu1 }
 0x20c   : > { %6326 = vst [vmem:[#allocation2 + $0x28] sm:$0xff] %v6226_v1   ;;  %v2077_v18 = vsel %vm2061_vm13, 1.0, %v7312_v0  ;;  %vm2063_vm14 = vcmp.eq.s32.totalorder %v2037_v15, %v7983_v12  ;;  %v1771_v26 = vadd.f32 %v8007_v39, %v1770_v20 }
 0x20d   : > { %1872 = vst [vmem:[%s7858_s26 + $0x68] sm:$0xff] %v1681_v10  ;;  %v6310_v21 = vpack.c.bf16 %v2078_v17, %v2077_v18  ;;  %v2079_v29 = vsel %vm2063_vm14, 1.0, %v7312_v0 }
 0x20e   : > { %1865 = vst [vmem:[%s7858_s26 + $0x30] sm:$0xff] %v1664_v19  ;;  %v1790_v22 = vpop.f32.mrf.mxu3 }
 0x20f   : > { %v1683_v23 = vpop.f32.mrf.mxu2  ;;  %6345 = vst [vmem:[#allocation5 + $0x30] sm:$0xff] %v6310_v21   ;;  %v1791_v44 = vadd.f32 %v8007_v39, %v1790_v22 }
 0x210   : > { %v1684_v24 = vadd.f32 %v7999_v30, %v1683_v23 }
 0x212   : > { %1873 = vst [vmem:[%s7858_s26 + $0x70] sm:$0xff] %v1684_v24  ;;  %v2040_v25 = vpop.permute.xlu1 %2039  ;;  %v1665_v28 = vpop.f32.mrf.mxu0 }
 0x213   : > { %vm2064_vm0 = vcmp.eq.s32.totalorder %v2040_v25, %v7983_v12  ;;  %v2046_v27 = vpop.permute.xlu0 %2045  ;;  %v1666_v32 = vadd.f32 %v7999_v30, %v1665_v28  ;;  %v1772_v33 = vpop.f32.mrf.mxu1 }
 0x214   : > { %v2080_v31 = vsel %vm2064_vm0, 1.0, %v7312_v0  ;;  %vm2066_vm1 = vcmp.eq.s32.totalorder %v2046_v27, %v7983_v12  ;;  %v1773_v38 = vadd.f32 %v8007_v39, %v1772_v33 }
 0x215   : > { %v6313_v36 = vpack.c.bf16 %v2080_v31, %v2079_v29  ;;  %v2082_v37 = vsel %vm2066_vm1, 1.0, %v7312_v0  ;;  %v6211_v41 = vpack.c.bf16 %v1666_v32, %v1664_v19  ;;  %1866 = vst [vmem:[%s7858_s26 + $0x38] sm:$0xff] %v1666_v32 }
 0x216   : > { %v6316_v40 = vpack.c.bf16 %v2082_v37, %v2081_v34  ;;  %v1792_v42 = vpop.f32.mrf.mxu3  ;;  %v6251_v45 = vpack.c.bf16 %v1773_v38, %v1771_v26 }
 0x217   : > { %v1685_v43 = vpop.f32.mrf.mxu2  ;;  %6346 = vst [vmem:[#allocation5 + $0x18] sm:$0xff] %v6313_v36   ;;  %v1793_v46 = vadd.f32 %v8007_v39, %v1792_v42 }
 0x218   : > { %v1686_v47 = vadd.f32 %v7999_v30, %v1685_v43  ;;  %6347 = vst [vmem:[#allocation5 + $0x28] sm:$0xff] %v6316_v40  }
 0x219   : > { %6323 = vst [vmem:[#allocation2 + $0x10] sm:$0xff] %v6211_v41   ;;  %v6271_v48 = vpack.c.bf16 %v1793_v46, %v1791_v44 }
 0x21a   : > { %v6231_v49 = vpack.c.bf16 %v1686_v47, %v1684_v24  ;;  %6330 = vst [vmem:[#allocation3 + $0x20] sm:$0xff] %v6251_v45   ;;  %v2049_v50 = vpop.permute.xlu1 %2048 }
 0x21b   : > { %6334 = vst [vmem:[#allocation3 + $0x38] sm:$0xff] %v6271_v48   ;;  %vm2067_vm3 = vcmp.eq.s32.totalorder %v2049_v50, %v7983_v12 }
 0x21c   : > { %6327 = vst [vmem:[#allocation2 + $0x38] sm:$0xff] %v6231_v49   ;;  %v2083_v52 = vsel %vm2067_vm3, 1.0, %v7312_v0 }
 0x21d   : > { %1874 = vst [vmem:[%s7858_s26 + $0x78] sm:$0xff] %v1686_v47  ;;  %v6319_v39 = vpack.c.bf16 %v2084_v51, %v2083_v52 }
 0x21f   : > { %6348 = vst [vmem:[#allocation5 + $0x38] sm:$0xff] %v6319_v39  }
 0x220 PF: > { %v2139_v30 = vld [vmem:[%s7858_s26 + $0x70] sm:$0xff]  ;;  %v2137_v12 = vld [vmem:[%s7858_s26 + $0x60] sm:$0xff]  ;;  %v2138_v0 = vld [vmem:[%s7858_s26 + $0x68] sm:$0xff]  ;;  %s9277_s8 = sld [smem:[#allocation82_spill]] }
 0x221   : > { %v8115_v55 = vpack.c.bf16 %v2138_v0, %v2137_v12  ;;  %v2135_v56 = vld [vmem:[%s7858_s26 + $0x50] sm:$0xff]  ;;  %v2136_v57 = vld [vmem:[%s7858_s26 + $0x58] sm:$0xff]  ;;  %v2133_v59 = vld [vmem:[%s7858_s26 + $0x40] sm:$0xff]  ;;  %s9278_s19 = sld [smem:[#allocation81_spill]] }
 0x222   : > { %v8121_v58 = vpack.c.bf16 %v2136_v57, %v2135_v56  ;;  %v2134_v60 = vld [vmem:[%s7858_s26 + $0x48] sm:$0xff]  ;;  %v2131_v62 = vld [vmem:[%s7858_s26 + $0x30] sm:$0xff]  ;;  %v2132_v63 = vld [vmem:[%s7858_s26 + $0x38] sm:$0xff]  ;;  %s9279_s30 = sld [smem:[#allocation83_spill]] }
 0x223   : > { %v8127_v61 = vpack.c.bf16 %v2134_v60, %v2133_v59  ;;  %v8133_v3 = vpack.c.bf16 %v2132_v63, %v2131_v62  ;;  %v2129_v4 = vld [vmem:[%s7858_s26 + $0x20] sm:$0xff]  ;;  %v2130_v5 = vld [vmem:[%s7858_s26 + $0x28] sm:$0xff]  ;;  %v2127_v7 = vld [vmem:[%s7858_s26 + $0x10] sm:$0xff]  ;;  %s9281_s27 = sld [smem:[#allocation84_spill]] }
 0x224   : > { %v2140_v53 = vld [vmem:[%s7858_s26 + $0x78] sm:$0xff]  ;;  %v8139_v6 = vpack.c.bf16 %v2130_v5, %v2129_v4  ;;  %v2125_v9 = vld [vmem:[%s7858_s26] sm:$0xff]  ;;  %v2126_v10 = vld [vmem:[%s7858_s26 + $0x8] sm:$0xff]  ;;  %s9286_s23 = sld [smem:[#allocation86_spill]] }
 0x225   : > { %v8110_v54 = vpack.c.bf16 %v2140_v53, %v2139_v30  ;;  %v2128_v2 = vld [vmem:[%s7858_s26 + $0x18] sm:$0xff]  ;;  %v8151_v11 = vpack.c.bf16 %v2126_v10, %v2125_v9  ;;  %v6058_v16 = vld [vmem:[#allocation4 + $0x38] sm:$0xff]  ;;  %v8167_v17 = vld [vmem:[#allocation5 + $0x10] sm:$0xff]  ;;  %s9287_s10 = sld [smem:[#allocation85_spill]] }
 0x226   : > { %v8145_v8 = vpack.c.bf16 %v2128_v2, %v2127_v7  ;;  %v8153_v1 = vld [vmem:[#allocation4 + $0x28] sm:$0xff]  ;;  %v8161_v14 = vld [vmem:[#allocation4 + $0x20] sm:$0xff]  ;;  %v6059_v18 = vld [vmem:[#allocation4 + $0x10] sm:$0xff]  ;;  %s9288_s22 = sld [smem:[#allocation88_spill]] }
 0x227   : > { %2245 = vmatpush.bf16.msra.mxu0 %v8110_v54  ;;  %2350 = vmatpush.bf16.msra.mxu1 %v8110_v54  ;;  %v8155_v13 = vld [vmem:[#allocation5 + $0x8] sm:$0xff]  ;;  %v8163_v15 = vld [vmem:[#allocation5] sm:$0xff]  ;;  %v6068_v21 = vld [vmem:[#allocation5 + $0x30] sm:$0xff] }
 0x228   : > { %v8170_v19 = vld [vmem:[#allocation5 + $0x20] sm:$0xff]  ;;  %v6060_v20 = vld [vmem:[#allocation4 + $0x8] sm:$0xff]  ;;  %v6087_v22 = vld [vmem:[%s7838_s0 + $0x38] sm:$0xff] }
 0x229   : > { %v6079_v23 = vld [vmem:[%s7835_s6 + $0x38] sm:$0xff]  ;;  %2487 = vmatpush.bf16.msra.mxu2 %v6087_v22  ;;  %v6086_v25 = vld [vmem:[%s7838_s0 + $0x30] sm:$0xff]  ;;  %v8178_v27 = vld [vmem:[#allocation4] sm:$0xff] }
 0x22a   : > { %v6095_v24 = vld [vmem:[%s7841_s7 + $0x38] sm:$0xff]  ;;  %2584 = vmatpush.bf16.msra.mxu3 %v6079_v23  ;;  %v6078_v26 = vld [vmem:[%s7835_s6 + $0x30] sm:$0xff]  ;;  %v6085_v33 = vld [vmem:[%s7838_s0 + $0x28] sm:$0xff] }
 0x22b   : > { %2246 = vmatpush.bf16.msra.mxu0 %v8115_v55  ;;  %2351 = vmatpush.bf16.msra.mxu1 %v8115_v55  ;;  %v6094_v28 = vld [vmem:[%s7841_s7 + $0x30] sm:$0xff]  ;;  %v6062_v29 = vld [vmem:[#allocation4 + $0x18] sm:$0xff]  ;;  %v6077_v34 = vld [vmem:[%s7835_s6 + $0x28] sm:$0xff] }
 0x22c   : > { %v6061_v31 = vld [vmem:[#allocation4 + $0x30] sm:$0xff]  ;;  %v6069_v32 = vld [vmem:[#allocation5 + $0x18] sm:$0xff]  ;;  %v6093_v35 = vld [vmem:[%s7841_s7 + $0x28] sm:$0xff] }
 0x22d   : > { %6370 = vmatpush.lsf.bf16.msrb.mxu2 %v8178_v27  ;;  %v6071_v36 = vld [vmem:[#allocation5 + $0x38] sm:$0xff]  ;;  %v6084_v37 = vld [vmem:[%s7838_s0 + $0x20] sm:$0xff]  ;;  %v6070_v41 = vld [vmem:[#allocation5 + $0x28] sm:$0xff] }
 0x22e   : > { %2585 = vmatpush.bf16.msra.mxu3 %v6078_v26  ;;  %v6076_v38 = vld [vmem:[%s7835_s6 + $0x20] sm:$0xff]  ;;  %v6083_v42 = vld [vmem:[%s7838_s0 + $0x18] sm:$0xff]  ;;  %v6082_v45 = vld [vmem:[%s7838_s0 + $0x10] sm:$0xff] }
 0x22f   : > { %2247 = vmatpush.bf16.msra.mxu0 %v8121_v58  ;;  %2352 = vmatpush.bf16.msra.mxu1 %v8121_v58  ;;  %v6092_v40 = vld [vmem:[%s7841_s7 + $0x20] sm:$0xff]  ;;  %v6075_v43 = vld [vmem:[%s7835_s6 + $0x18] sm:$0xff]  ;;  %v6074_v46 = vld [vmem:[%s7835_s6 + $0x10] sm:$0xff] }
 0x230   : > { %v6091_v44 = vld [vmem:[%s7841_s7 + $0x18] sm:$0xff]  ;;  %v6090_v47 = vld [vmem:[%s7841_s7 + $0x10] sm:$0xff]  ;;  %v6081_v48 = vld [vmem:[%s7838_s0 + $0x8] sm:$0xff] }
 0x231   : > { %2488 = vmatpush.bf16.msra.mxu2 %v6086_v25  ;;  %v6073_v49 = vld [vmem:[%s7835_s6 + $0x8] sm:$0xff]  ;;  %v6080_v51 = vld [vmem:[%s7838_s0] sm:$0xff]  ;;  %v8216_v60 = vld [vmem:[#allocation3 + $0x18] sm:$0xff] }
 0x232   : > { %2586 = vmatpush.bf16.msra.mxu3 %v6077_v34  ;;  %v6089_v50 = vld [vmem:[%s7841_s7 + $0x8] sm:$0xff]  ;;  %v6072_v52 = vld [vmem:[%s7835_s6] sm:$0xff]  ;;  %v8225_v9 = vld [vmem:[#allocation3 + $0x10] sm:$0xff]  ;;  %s9285_s6 = sld [smem:[#allocation87_spill]] }
 0x233   : > { %2248 = vmatpush.bf16.msra.mxu0 %v8127_v61  ;;  %2353 = vmatpush.bf16.msra.mxu1 %v8127_v61  ;;  %v6088_v39 = vld [vmem:[%s7841_s7] sm:$0xff]  ;;  %v6127_v34 = vld [vmem:[%s9279_s30 + $0x38] sm:$0xff] }
 0x234   : > { %v8207_v30 = vld [vmem:[#allocation3] sm:$0xff] }
 0x235   : > { %6371 = vmatpush.lsf.bf16.msrb.mxu2 %v6062_v29 }
 0x236   : > { %6398 = vmatpush.lsf.bf16.msrb.mxu3 %v6071_v36 }
 0x237   : > { %2249 = vmatpush.bf16.msra.mxu0 %v8133_v3  ;;  %2354 = vmatpush.bf16.msra.mxu1 %v8133_v3 }
 0x239   : > { %6372 = vmatpush.lsf.bf16.msrb.mxu2 %v6061_v31 }
 0x23a   : > { %2587 = vmatpush.bf16.msra.mxu3 %v6076_v38  ;;  %v8258_v38 = vld [vmem:[#allocation3 + $0x8] sm:$0xff] }
 0x23b   : > { %2250 = vmatpush.bf16.msra.mxu0 %v8139_v6  ;;  %2355 = vmatpush.bf16.msra.mxu1 %v8139_v6 }
 0x23d   : > { %2489 = vmatpush.bf16.msra.mxu2 %v6085_v33  ;;  %v6111_v33 = vld [vmem:[%s9278_s19 + $0x38] sm:$0xff] }
 0x23e   : > { %6399 = vmatpush.lsf.bf16.msrb.mxu3 %v6070_v41 }
 0x23f   : > { %2251 = vmatpush.bf16.msra.mxu0 %v8145_v8  ;;  %2356 = vmatpush.bf16.msra.mxu1 %v8145_v8 }
 0x241   : > { %6373 = vmatpush.lsf.bf16.msrb.mxu2 %v6060_v20 }
 0x242   : > { %2588 = vmatpush.bf16.msra.mxu3 %v6075_v43  ;;  %v6109_v43 = vld [vmem:[%s9278_s19 + $0x28] sm:$0xff] }
 0x243   : > { %2252 = vmatpush.bf16.msra.mxu0 %v8151_v11  ;;  %2357 = vmatpush.bf16.msra.mxu1 %v8151_v11 }
 0x245   : > { %2490 = vmatpush.bf16.msra.mxu2 %v6084_v37  ;;  %v6126_v37 = vld [vmem:[%s9279_s30 + $0x30] sm:$0xff] }
 0x246   : > { %2253 = vmatmul.bf16.vlgmr.msra.gmra.mxu0 %v8153_v1  ;;  %2358 = vmatmul.bf16.vlgmr.msra.gmra.mxu1 %v8155_v13 }
 0x247   : > { %2745 = vmatpush.bf16.msrb.mxu0 %v6095_v24  ;;  %6400 = vmatpush.lsf.bf16.msrb.mxu3 %v6069_v32  ;;  %v8243_v24 = vld [vmem:[#allocation3 + $0x28] sm:$0xff] }
 0x249   : > { %6374 = vmatpush.lsf.bf16.msrb.mxu2 %v6059_v18 }
 0x24b   : > { %2746 = vmatpush.bf16.msrb.mxu0 %v6094_v28  ;;  %2589 = vmatpush.bf16.msra.mxu3 %v6074_v46  ;;  %v6108_v46 = vld [vmem:[%s9278_s19 + $0x20] sm:$0xff] }
 0x24d   : > { %2491 = vmatpush.bf16.msra.mxu2 %v6083_v42  ;;  %v6117_v42 = vld [vmem:[%s9277_s8 + $0x28] sm:$0xff] }
 0x24f   : > { %2747 = vmatpush.bf16.msrb.mxu0 %v6093_v35  ;;  %6401 = vmatpush.lsf.bf16.msrb.mxu3 %v6068_v21  ;;  %v6118_v35 = vld [vmem:[%s9277_s8 + $0x30] sm:$0xff] }
 0x251   : > { %6375 = vmatpush.lsf.bf16.msrb.mxu2 %v6058_v16 }
 0x253   : > { %2748 = vmatpush.bf16.msrb.mxu0 %v6092_v40  ;;  %2590 = vmatpush.bf16.msra.mxu3 %v6073_v49 }
 0x255   : > { %2492 = vmatpush.bf16.msra.mxu2 %v6082_v45  ;;  %v6116_v45 = vld [vmem:[%s9277_s8 + $0x20] sm:$0xff] }
 0x256   : > { %2258 = vmatmul.bf16.gmra.mxu0 %v8161_v14  ;;  %2363 = vmatmul.bf16.gmra.mxu1 %v8163_v15 }
 0x257   : > { %2749 = vmatpush.bf16.msrb.mxu0 %v6091_v44  ;;  %6402 = vmatpush.lsf.bf16.msrb.mxu3 %v8170_v19  ;;  %v6125_v44 = vld [vmem:[%s9279_s30 + $0x28] sm:$0xff] }
 0x259   : > { %6376 = vmatpush.lsf.bf16.msrb.mxu2 %v8161_v14 }
 0x25b   : > { %2750 = vmatpush.bf16.msrb.mxu0 %v6090_v47  ;;  %2591 = vmatpush.bf16.msra.mxu3 %v6072_v52  ;;  %v6124_v47 = vld [vmem:[%s9279_s30 + $0x20] sm:$0xff]  ;;  %v6115_v52 = vld [vmem:[%s9277_s8 + $0x18] sm:$0xff] }
 0x25d   : > { %2493 = vmatpush.bf16.msra.mxu2 %v6081_v48 }
 0x25f   : > { %2751 = vmatpush.bf16.msrb.mxu0 %v6089_v50  ;;  %6403 = vmatpush.lsf.bf16.msrb.mxu3 %v8167_v17 }
 0x261   : > { %6377 = vmatpush.lsf.bf16.msrb.mxu2 %v8153_v1 }
 0x263   : > { %2752 = vmatpush.bf16.msrb.mxu0 %v6088_v39  ;;  %6378 = vllmr.16.mxu2  ;;  %v6107_v39 = vld [vmem:[%s9278_s19 + $0x18] sm:$0xff] }
 0x264   : > { %6404 = vmatpush.lsf.bf16.msrb.mxu3 %v8163_v15 }
 0x265   : > { %2494 = vmatpush.bf16.msra.mxu2 %v6080_v51 }
 0x266   : > { %2263 = vmatmul.bf16.gmra.mxu0 %v6058_v16  ;;  %2368 = vmatmul.bf16.gmra.mxu1 %v8167_v17  ;;  %v8234_v17 = vld [vmem:[#allocation3 + $0x20] sm:$0xff] }
 0x267   : > { %3269 = vmatpush.bf16.msra.mxu0 %v6127_v34 }
 0x268   : > { %6405 = vmatpush.lsf.bf16.msrb.mxu3 %v8155_v13 }
 0x26a   : > { %6406 = vllmr.16.mxu3 }
 0x26b   : > { %3270 = vmatpush.bf16.msra.mxu0 %v6126_v37  ;;  %v6098_v37 = vld [vmem:[%s7844_s11 + $0x10] sm:$0xff] }
 0x26f   : > { %3271 = vmatpush.bf16.msra.mxu0 %v6125_v44 }
 0x273   : > { %3272 = vmatpush.bf16.msra.mxu0 %v6124_v47 }
 0x276   : > { %2268 = vmatmul.bf16.gmra.mxu0 %v6059_v18  ;;  %2373 = vmatmul.bf16.gmra.mxu1 %v8170_v19 }
 0x286   : > { %2273 = vmatmul.bf16.gmra.mxu0 %v6060_v20  ;;  %2378 = vmatmul.bf16.gmra.mxu1 %v6068_v21 }
 0x296   : > { %2278 = vmatmul.bf16.gmra.mxu0 %v6061_v31  ;;  %2383 = vmatmul.bf16.gmra.mxu1 %v6069_v32  ;;  %v6119_v32 = vld [vmem:[%s9277_s8 + $0x38] sm:$0xff] }
 0x2a6   : > { %2283 = vmatmul.bf16.gmra.mxu0 %v6062_v29  ;;  %2388 = vmatmul.bf16.gmra.mxu1 %v6070_v41 }
 0x2b6   : > { %2288 = vmatmul.bf16.gmra.mxu0 %v8178_v27  ;;  %2393 = vmatmul.bf16.gmra.mxu1 %v6071_v36  ;;  %v6110_v36 = vld [vmem:[%s9278_s19 + $0x30] sm:$0xff] }
 0x2c3   : > { %v2254_v53 = vpop.f32.mrf.mxu0  ;;  %v2359_v12 = vpop.f32.mrf.mxu1 }
 0x2c6   : > { %2753 = vmatmul.bf16.vlgmr.msrb.gmra.mxu0 %v8207_v30 }
 0x2cb   : > { %v2256_v0 = vpop.f32.mrf.mxu0  ;;  %v2361_v56 = vpop.f32.mrf.mxu1 }
 0x2cc   : > { %v8210_v57 = vpack.c.bf16 %v2361_v56, %v2359_v12  ;;  %v8212_v59 = vpack.c.bf16 %v2256_v0, %v2254_v53  ;;  %v6123_v53 = vld [vmem:[%s9279_s30 + $0x18] sm:$0xff]  ;;  %v6114_v12 = vld [vmem:[%s9277_s8 + $0x10] sm:$0xff] }
 0x2cd   : > { %v6106_v0 = vld [vmem:[%s9278_s19 + $0x10] sm:$0xff]  ;;  %v6103_v56 = vld [vmem:[%s7844_s11 + $0x38] sm:$0xff]  ;;  %3273 = vmatpush.bf16.msra.mxu0 %v6123_v53 }
 0x2ce   : > { %2495 = vmatmul.bf16.vlgmr.msra.gmra.mxu2 %v8210_v57  ;;  %2592 = vmatmul.bf16.vlgmr.msra.gmra.mxu3 %v8212_v59 }
 0x2cf   : > { %3059 = vmatpush.bf16.msra.mxu2 %v6119_v32  ;;  %3156 = vmatpush.bf16.msra.mxu3 %v6111_v33  ;;  %v6100_v32 = vld [vmem:[%s7844_s11 + $0x20] sm:$0xff]  ;;  %v8298_v33 = vld [vmem:[#allocation3 + $0x38] sm:$0xff] }
 0x2d0   : > { %2922 = vmatpush.bf16.msrb.mxu1 %v6103_v56 }
 0x2d3   : > { %v2259_v62 = vpop.f32.mrf.mxu0  ;;  %v2364_v63 = vpop.f32.mrf.mxu1  ;;  %3060 = vmatpush.bf16.msra.mxu2 %v6118_v35  ;;  %3157 = vmatpush.bf16.msra.mxu3 %v6110_v36  ;;  %v6099_v36 = vld [vmem:[%s7844_s11 + $0x18] sm:$0xff] }
 0x2d6   : > { %2758 = vmatmul.bf16.gmra.mxu0 %v8216_v60 }
 0x2d7   : > { %3061 = vmatpush.bf16.msra.mxu2 %v6117_v42  ;;  %3158 = vmatpush.bf16.msra.mxu3 %v6109_v43  ;;  %v6097_v42 = vld [vmem:[%s7844_s11 + $0x8] sm:$0xff] }
 0x2db   : > { %v2261_v4 = vpop.f32.mrf.mxu0  ;;  %v2366_v5 = vpop.f32.mrf.mxu1  ;;  %3062 = vmatpush.bf16.msra.mxu2 %v6116_v45  ;;  %3159 = vmatpush.bf16.msra.mxu3 %v6108_v46  ;;  %v6096_v45 = vld [vmem:[%s7844_s11] sm:$0xff] }
 0x2dc   : > { %v8219_v7 = vpack.c.bf16 %v2366_v5, %v2364_v63  ;;  %v8221_v2 = vpack.c.bf16 %v2261_v4, %v2259_v62  ;;  %v6122_v62 = vld [vmem:[%s9279_s30 + $0x10] sm:$0xff] }
 0x2dd   : > { %v6102_v63 = vld [vmem:[%s7844_s11 + $0x30] sm:$0xff]  ;;  %3274 = vmatpush.bf16.msra.mxu0 %v6122_v62 }
 0x2de   : > { %2500 = vmatmul.bf16.gmra.mxu2 %v8219_v7  ;;  %2597 = vmatmul.bf16.gmra.mxu3 %v8221_v2  ;;  %v8281_v4 = vld [vmem:[#allocation3 + $0x30] sm:$0xff] }
 0x2df   : > { %3063 = vmatpush.bf16.msra.mxu2 %v6115_v52  ;;  %3160 = vmatpush.bf16.msra.mxu3 %v6107_v39 }
 0x2e0   : > { %2923 = vmatpush.bf16.msrb.mxu1 %v6102_v63 }
 0x2e3   : > { %v2264_v10 = vpop.f32.mrf.mxu0  ;;  %v2369_v1 = vpop.f32.mrf.mxu1  ;;  %3064 = vmatpush.bf16.msra.mxu2 %v6114_v12  ;;  %3161 = vmatpush.bf16.msra.mxu3 %v6106_v0  ;;  %v8318_v12 = vld [vmem:[%s1552_s25] ss:$0 sm:$0xff] }
 0x2e6   : > { %2763 = vmatmul.bf16.gmra.mxu0 %v8225_v9 }
 0x2eb   : > { %v2266_v13 = vpop.f32.mrf.mxu0  ;;  %v2371_v14 = vpop.f32.mrf.mxu1 }
 0x2ec   : > { %v8228_v15 = vpack.c.bf16 %v2371_v14, %v2369_v1  ;;  %v8230_v16 = vpack.c.bf16 %v2266_v13, %v2264_v10  ;;  %v6113_v1 = vld [vmem:[%s9277_s8 + $0x8] sm:$0xff] }
 0x2ed   : > { %v6105_v13 = vld [vmem:[%s9278_s19 + $0x8] sm:$0xff]  ;;  %3065 = vmatpush.bf16.msra.mxu2 %v6113_v1 }
 0x2ee   : > { %2505 = vmatmul.bf16.gmra.mxu2 %v8228_v15  ;;  %2602 = vmatmul.bf16.gmra.mxu3 %v8230_v16  ;;  %v6121_v14 = vld [vmem:[%s9279_s30 + $0x8] sm:$0xff] }
 0x2ef   : > { %3162 = vmatpush.bf16.msra.mxu3 %v6105_v13  ;;  %3275 = vmatpush.bf16.msra.mxu0 %v6121_v14 }
 0x2f3   : > { %v2269_v18 = vpop.f32.mrf.mxu0  ;;  %v2374_v19 = vpop.f32.mrf.mxu1 }
 0x2f6   : > { %2768 = vmatmul.bf16.gmra.mxu0 %v8234_v17 }
 0x2fb   : > { %v2271_v20 = vpop.f32.mrf.mxu0  ;;  %v2376_v21 = vpop.f32.mrf.mxu1 }
 0x2fc   : > { %v8237_v22 = vpack.c.bf16 %v2376_v21, %v2374_v19  ;;  %v8239_v23 = vpack.c.bf16 %v2271_v20, %v2269_v18  ;;  %v6101_v18 = vld [vmem:[%s7844_s11 + $0x28] sm:$0xff]  ;;  %v6112_v19 = vld [vmem:[%s9277_s8] sm:$0xff] }
 0x2fd   : > { %v6104_v20 = vld [vmem:[%s9278_s19] sm:$0xff]  ;;  %2924 = vmatpush.bf16.msrb.mxu1 %v6101_v18  ;;  %3066 = vmatpush.bf16.msra.mxu2 %v6112_v19 }
 0x2fe   : > { %2510 = vmatmul.bf16.gmra.mxu2 %v8237_v22  ;;  %2607 = vmatmul.bf16.gmra.mxu3 %v8239_v23  ;;  %v6120_v21 = vld [vmem:[%s9279_s30] sm:$0xff] }
 0x2ff   : > { %3163 = vmatpush.bf16.msra.mxu3 %v6104_v20  ;;  %3276 = vmatpush.bf16.msra.mxu0 %v6120_v21 }
 0x301   : > { %2925 = vmatpush.bf16.msrb.mxu1 %v6100_v32 }
 0x303   : > { %v2274_v25 = vpop.f32.mrf.mxu0  ;;  %v2379_v26 = vpop.f32.mrf.mxu1 }
 0x305   : > { %2926 = vmatpush.bf16.msrb.mxu1 %v6099_v36 }
 0x306   : > { %2773 = vmatmul.bf16.gmra.mxu0 %v8243_v24 }
 0x309   : > { %2927 = vmatpush.bf16.msrb.mxu1 %v6098_v37 }
 0x30b   : > { %v2276_v27 = vpop.f32.mrf.mxu0  ;;  %v2381_v28 = vpop.f32.mrf.mxu1 }
 0x30c   : > { %v8246_v29 = vpack.c.bf16 %v2381_v28, %v2379_v26  ;;  %v8248_v31 = vpack.c.bf16 %v2276_v27, %v2274_v25 }
 0x30d   : > { %2928 = vmatpush.bf16.msrb.mxu1 %v6097_v42 }
 0x30e   : > { %2515 = vmatmul.bf16.gmra.mxu2 %v8246_v29  ;;  %2612 = vmatmul.bf16.gmra.mxu3 %v8248_v31 }
 0x311   : > { %2929 = vmatpush.bf16.msrb.mxu1 %v6096_v45 }
 0x313   : > { %v2279_v40 = vpop.f32.mrf.mxu0  ;;  %v2384_v41 = vpop.f32.mrf.mxu1 }
 0x316   : > { %2778 = vmatmul.bf16.gmra.mxu0 %v8258_v38 }
 0x31b   : > { %v2281_v48 = vpop.f32.mrf.mxu0  ;;  %v2386_v49 = vpop.f32.mrf.mxu1 }
 0x31c   : > { %v8267_v50 = vpack.c.bf16 %v2386_v49, %v2384_v41  ;;  %v8269_v51 = vpack.c.bf16 %v2281_v48, %v2279_v40 }
 0x31e   : > { %2520 = vmatmul.bf16.gmra.mxu2 %v8267_v50  ;;  %2617 = vmatmul.bf16.gmra.mxu3 %v8269_v51 }
 0x323   : > { %v2284_v5 = vpop.f32.mrf.mxu0  ;;  %v2389_v10 = vpop.f32.mrf.mxu1 }
 0x326   : > { %2783 = vmatmul.bf16.gmra.mxu0 %v8281_v4 }
 0x32b   : > { %v2286_v25 = vpop.f32.mrf.mxu0  ;;  %v2391_v26 = vpop.f32.mrf.mxu1 }
 0x32c   : > { %v8291_v27 = vpack.c.bf16 %v2391_v26, %v2389_v10  ;;  %v8293_v28 = vpack.c.bf16 %v2286_v25, %v2284_v5 }
 0x32e   : > { %2525 = vmatmul.bf16.gmra.mxu2 %v8291_v27  ;;  %2622 = vmatmul.bf16.gmra.mxu3 %v8293_v28 }
 0x333   : > { %v2289_v34 = vpop.f32.mrf.mxu0  ;;  %v2394_v35 = vpop.f32.mrf.mxu1 }
 0x336   : > { %2788 = vmatmul.bf16.gmra.mxu0 %v8298_v33 }
 0x33b   : > { %v2291_v40 = vpop.f32.mrf.mxu0  ;;  %v2396_v41 = vpop.f32.mrf.mxu1 }
 0x33c   : > { %v8304_v43 = vpack.c.bf16 %v2396_v41, %v2394_v35  ;;  %v8306_v44 = vpack.c.bf16 %v2291_v40, %v2289_v34 }
 0x33e   : > { %2530 = vmatmul.bf16.gmra.mxu2 %v8304_v43  ;;  %2627 = vmatmul.bf16.gmra.mxu3 %v8306_v44 }
 0x343   : > { %v2754_v46 = vpop.f32.mrf.mxu0 }
 0x346   : > { %3277 = vmatmul.bf16.vlgmr.msra.gmra.mxu0 %v8207_v30 }
 0x34b   : > { %v2756_v47 = vpop.f32.mrf.mxu0 }
 0x34e   : > { %3067 = vmatmul.bf16.vlgmr.msra.gmra.mxu2 %v8212_v59  ;;  %3164 = vmatmul.bf16.vlgmr.msra.gmra.mxu3 %v8210_v57 }
 0x351   : > { %v2496_v48 = vpop.f32.mrf.mxu2  ;;  %v2593_v49 = vpop.f32.mrf.mxu3 }
 0x352   : > { %v2594_v39 = vadd.f32 %v2593_v49, %v2496_v48 }
 0x353   : > { %v2759_v52 = vpop.f32.mrf.mxu0 }
 0x354   : > { %v2794_v53 = vadd.f32 %v2754_v46, %v2594_v39 }
 0x356   : > { %3282 = vmatmul.bf16.gmra.mxu0 %v8216_v60  ;;  %v2814_v30 = vadd.f32 %v8318_v12, %v2794_v53 }
 0x358   : > { %v2830_v57 = vmax.f32 %v2814_v30, 0.0 }
 0x359   : > { %v2498_v0 = vpop.f32.mrf.mxu2  ;;  %v2595_v56 = vpop.f32.mrf.mxu3 }
 0x35a   : > { %v2596_v62 = vadd.f32 %v2595_v56, %v2498_v0 }
 0x35b   : > { %v2761_v63 = vpop.f32.mrf.mxu0 }
 0x35c   : > { %v2795_v5 = vadd.f32 %v2756_v47, %v2596_v62 }
 0x35e   : > { %v2815_v59 = vadd.f32 %v8318_v12, %v2795_v5  ;;  %3072 = vmatmul.bf16.gmra.mxu2 %v8221_v2  ;;  %3169 = vmatmul.bf16.gmra.mxu3 %v8219_v7 }
 0x360   : > { %v2831_v10 = vmax.f32 %v2815_v59, 0.0 }
 0x361   : > { %v2501_v60 = vpop.f32.mrf.mxu2  ;;  %v2598_v1 = vpop.f32.mrf.mxu3 }
 0x362   : > { %v2846_v13 = vpack.c.bf16 %v2831_v10, %v2830_v57  ;;  %v2599_v18 = vadd.f32 %v2598_v1, %v2501_v60 }
 0x363   : > { %v2764_v14 = vpop.f32.mrf.mxu0 }
 0x364   : > { %2930 = vmatmul.bf16.vlgmr.msrb.gmra.mxu1 %v2846_v13  ;;  %v2796_v19 = vadd.f32 %v2759_v52, %v2599_v18 }
 0x366   : > { %3287 = vmatmul.bf16.gmra.mxu0 %v8225_v9  ;;  %v2816_v2 = vadd.f32 %v8318_v12, %v2796_v19 }
 0x368   : > { %v2832_v34 = vmax.f32 %v2816_v2, 0.0 }
 0x369   : > { %v2503_v20 = vpop.f32.mrf.mxu2  ;;  %v2600_v21 = vpop.f32.mrf.mxu3 }
 0x36a   : > { %v2601_v25 = vadd.f32 %v2600_v21, %v2503_v20 }
 0x36b   : > { %v2766_v26 = vpop.f32.mrf.mxu0 }
 0x36c   : > { %v2797_v32 = vadd.f32 %v2761_v63, %v2601_v25 }
 0x36e   : > { %3077 = vmatmul.bf16.gmra.mxu2 %v8230_v16  ;;  %3174 = vmatmul.bf16.gmra.mxu3 %v8228_v15  ;;  %v2817_v7 = vadd.f32 %v8318_v12, %v2797_v32 }
 0x370   : > { %v2833_v35 = vmax.f32 %v2817_v7, 0.0 }
 0x371   : > { %v2506_v36 = vpop.f32.mrf.mxu2  ;;  %v2603_v37 = vpop.f32.mrf.mxu3 }
 0x372   : > { %v2847_v40 = vpack.c.bf16 %v2833_v35, %v2832_v34  ;;  %v2604_v41 = vadd.f32 %v2603_v37, %v2506_v36 }
 0x373   : > { %v2769_v9 = vpop.f32.mrf.mxu0 }
 0x374   : > { %2935 = vmatmul.bf16.gmra.mxu1 %v2847_v40  ;;  %v2798_v42 = vadd.f32 %v2764_v14, %v2604_v41  ;;  %v6135_v40 = vld [vmem:[%s9281_s27 + $0x38] sm:$0xff]  ;;  %v6134_v41 = vld [vmem:[%s9281_s27 + $0x30] sm:$0xff] }
 0x375   : > { %3446 = vmatpush.bf16.msra.mxu1 %v6135_v40  ;;  %v8367_v40 = vld [vmem:[%s1563_s12] ss:$0 sm:$0xff] }
 0x376   : > { %3292 = vmatmul.bf16.gmra.mxu0 %v8234_v17  ;;  %v2818_v15 = vadd.f32 %v8318_v12, %v2798_v42 }
 0x378   : > { %v2834_v52 = vmax.f32 %v2818_v15, 0.0 }
 0x379   : > { %v2508_v45 = vpop.f32.mrf.mxu2  ;;  %v2605_v46 = vpop.f32.mrf.mxu3  ;;  %3447 = vmatpush.bf16.msra.mxu1 %v6134_v41 }
 0x37a   : > { %v2606_v47 = vadd.f32 %v2605_v46, %v2508_v45 }
 0x37b   : > { %v2771_v48 = vpop.f32.mrf.mxu0 }
 0x37c   : > { %v2799_v16 = vadd.f32 %v2766_v26, %v2606_v47  ;;  %v6133_v47 = vld [vmem:[%s9281_s27 + $0x28] sm:$0xff] }
 0x37d   : > { %3448 = vmatpush.bf16.msra.mxu1 %v6133_v47 }
 0x37e   : > { %3082 = vmatmul.bf16.gmra.mxu2 %v8239_v23  ;;  %3179 = vmatmul.bf16.gmra.mxu3 %v8237_v22  ;;  %v2819_v49 = vadd.f32 %v8318_v12, %v2799_v16 }
 0x380   : > { %v2835_v39 = vmax.f32 %v2819_v49, 0.0 }
 0x381   : > { %v2511_v53 = vpop.f32.mrf.mxu2  ;;  %v2608_v0 = vpop.f32.mrf.mxu3 }
 0x382   : > { %v2848_v56 = vpack.c.bf16 %v2835_v39, %v2834_v52  ;;  %v2609_v62 = vadd.f32 %v2608_v0, %v2511_v53 }
 0x383   : > { %v2774_v17 = vpop.f32.mrf.mxu0 }
 0x384   : > { %2940 = vmatmul.bf16.gmra.mxu1 %v2848_v56  ;;  %v2800_v63 = vadd.f32 %v2769_v9, %v2609_v62 }
 0x386   : > { %3297 = vmatmul.bf16.gmra.mxu0 %v8243_v24  ;;  %v2820_v22 = vadd.f32 %v8318_v12, %v2800_v63  ;;  %v6130_v63 = vld [vmem:[%s9281_s27 + $0x10] sm:$0xff] }
 0x388   : > { %v2836_v60 = vmax.f32 %v2820_v22, 0.0 }
 0x389   : > { %v2513_v30 = vpop.f32.mrf.mxu2  ;;  %v2610_v5 = vpop.f32.mrf.mxu3 }
 0x38a   : > { %v2611_v59 = vadd.f32 %v2610_v5, %v2513_v30 }
 0x38b   : > { %v2776_v57 = vpop.f32.mrf.mxu0 }
 0x38c   : > { %v2801_v23 = vadd.f32 %v2771_v48, %v2611_v59 }
 0x38e   : > { %3087 = vmatmul.bf16.gmra.mxu2 %v8248_v31  ;;  %3184 = vmatmul.bf16.gmra.mxu3 %v8246_v29  ;;  %v2821_v10 = vadd.f32 %v8318_v12, %v2801_v23 }
 0x390   : > { %v2837_v1 = vmax.f32 %v2821_v10, 0.0 }
 0x391   : > { %v2516_v13 = vpop.f32.mrf.mxu2  ;;  %v2613_v14 = vpop.f32.mrf.mxu3 }
 0x392   : > { %v2849_v18 = vpack.c.bf16 %v2837_v1, %v2836_v60  ;;  %v2614_v19 = vadd.f32 %v2613_v14, %v2516_v13  ;;  %v6128_v1 = vld [vmem:[%s9281_s27] sm:$0xff] }
 0x393   : > { %v2779_v24 = vpop.f32.mrf.mxu0 }
 0x394   : > { %2945 = vmatmul.bf16.gmra.mxu1 %v2849_v18  ;;  %v2802_v20 = vadd.f32 %v2774_v17, %v2614_v19  ;;  %v6131_v17 = vld [vmem:[%s9281_s27 + $0x18] sm:$0xff] }
 0x396   : > { %3302 = vmatmul.bf16.gmra.mxu0 %v8258_v38  ;;  %v2822_v29 = vadd.f32 %v8318_v12, %v2802_v20 }
 0x398   : > { %v2838_v7 = vmax.f32 %v2822_v29, 0.0 }
 0x399   : > { %v2518_v21 = vpop.f32.mrf.mxu2  ;;  %v2615_v25 = vpop.f32.mrf.mxu3 }
 0x39a   : > { %v2616_v26 = vadd.f32 %v2615_v25, %v2518_v21 }
 0x39b   : > { %v2781_v31 = vpop.f32.mrf.mxu0 }
 0x39c   : > { %v2803_v32 = vadd.f32 %v2776_v57, %v2616_v26  ;;  %v6129_v57 = vld [vmem:[%s9281_s27 + $0x8] sm:$0xff] }
 0x39e   : > { %v2823_v2 = vadd.f32 %v8318_v12, %v2803_v32  ;;  %3092 = vmatmul.bf16.gmra.mxu2 %v8269_v51  ;;  %3189 = vmatmul.bf16.gmra.mxu3 %v8267_v50 }
 0x3a0   : > { %v2839_v34 = vmax.f32 %v2823_v2, 0.0 }
 0x3a1   : > { %v2521_v35 = vpop.f32.mrf.mxu2  ;;  %v2618_v38 = vpop.f32.mrf.mxu3 }
 0x3a2   : > { %v2850_v36 = vpack.c.bf16 %v2839_v34, %v2838_v7  ;;  %v2619_v9 = vadd.f32 %v2618_v38, %v2521_v35 }
 0x3a3   : > { %v2784_v37 = vpop.f32.mrf.mxu0 }
 0x3a4   : > { %2950 = vmatmul.bf16.gmra.mxu1 %v2850_v36  ;;  %v2804_v42 = vadd.f32 %v2779_v24, %v2619_v9 }
 0x3a6   : > { %3307 = vmatmul.bf16.gmra.mxu0 %v8281_v4  ;;  %v2824_v48 = vadd.f32 %v8318_v12, %v2804_v42  ;;  %v6132_v4 = vld [vmem:[%s9281_s27 + $0x20] sm:$0xff] }
 0x3a7   : > { %3449 = vmatpush.bf16.msra.mxu1 %v6132_v4 }
 0x3a8   : > { %v2840_v49 = vmax.f32 %v2824_v48, 0.0 }
 0x3a9   : > { %v2523_v45 = vpop.f32.mrf.mxu2  ;;  %v2620_v51 = vpop.f32.mrf.mxu3 }
 0x3aa   : > { %v2621_v50 = vadd.f32 %v2620_v51, %v2523_v45 }
 0x3ab   : > { %v2786_v46 = vpop.f32.mrf.mxu0  ;;  %3450 = vmatpush.bf16.msra.mxu1 %v6131_v17 }
 0x3ac   : > { %v2805_v16 = vadd.f32 %v2781_v31, %v2621_v50 }
 0x3ae   : > { %v2825_v15 = vadd.f32 %v8318_v12, %v2805_v16  ;;  %3097 = vmatmul.bf16.gmra.mxu2 %v8293_v28  ;;  %3194 = vmatmul.bf16.gmra.mxu3 %v8291_v27 }
 0x3af   : > { %3451 = vmatpush.bf16.msra.mxu1 %v6130_v63 }
 0x3b0   : > { %v2841_v52 = vmax.f32 %v2825_v15, 0.0 }
 0x3b1   : > { %v2526_v39 = vpop.f32.mrf.mxu2  ;;  %v2623_v53 = vpop.f32.mrf.mxu3 }
 0x3b2   : > { %v2851_v0 = vpack.c.bf16 %v2841_v52, %v2840_v49  ;;  %v2624_v62 = vadd.f32 %v2623_v53, %v2526_v39  ;;  %v8374_v39 = vld [vmem:[%s1560_s24] ss:$0 sm:$0xff] }
 0x3b3   : > { %v2789_v56 = vpop.f32.mrf.mxu0  ;;  %3452 = vmatpush.bf16.msra.mxu1 %v6129_v57 }
 0x3b4   : > { %2955 = vmatmul.bf16.gmra.mxu1 %v2851_v0  ;;  %v2806_v28 = vadd.f32 %v2784_v37, %v2624_v62 }
 0x3b6   : > { %3312 = vmatmul.bf16.gmra.mxu0 %v8298_v33  ;;  %v2826_v23 = vadd.f32 %v8318_v12, %v2806_v28 }
 0x3b7   : > { %3453 = vmatpush.bf16.msra.mxu1 %v6128_v1 }
 0x3b8   : > { %v2842_v33 = vmax.f32 %v2826_v23, 0.0 }
 0x3b9   : > { %v2528_v30 = vpop.f32.mrf.mxu2  ;;  %v2625_v27 = vpop.f32.mrf.mxu3 }
 0x3ba   : > { %v2626_v5 = vadd.f32 %v2625_v27, %v2528_v30 }
 0x3bb   : > { %v2791_v59 = vpop.f32.mrf.mxu0 }
 0x3bc   : > { %v2807_v22 = vadd.f32 %v2786_v46, %v2626_v5 }
 0x3be   : > { %v2827_v10 = vadd.f32 %v8318_v12, %v2807_v22  ;;  %3102 = vmatmul.bf16.gmra.mxu2 %v8306_v44  ;;  %3199 = vmatmul.bf16.gmra.mxu3 %v8304_v43 }
 0x3c0   : > { %v2843_v60 = vmax.f32 %v2827_v10, 0.0 }
 0x3c1   : > { %v2531_v13 = vpop.f32.mrf.mxu2  ;;  %v2628_v14 = vpop.f32.mrf.mxu3 }
 0x3c2   : > { %v2852_v18 = vpack.c.bf16 %v2843_v60, %v2842_v33  ;;  %v2629_v19 = vadd.f32 %v2628_v14, %v2531_v13 }
 0x3c3   : > { %v3278_v24 = vpop.f32.mrf.mxu0 }
 0x3c4   : > { %2960 = vmatmul.bf16.gmra.mxu1 %v2852_v18  ;;  %v2808_v20 = vadd.f32 %v2789_v56, %v2629_v19 }
 0x3c6   : > { %v2828_v44 = vadd.f32 %v8318_v12, %v2808_v20 }
 0x3c8   : > { %v2844_v32 = vmax.f32 %v2828_v44, 0.0 }
 0x3c9   : > { %v2533_v21 = vpop.f32.mrf.mxu2  ;;  %v2630_v25 = vpop.f32.mrf.mxu3 }
 0x3ca   : > { %v2631_v26 = vadd.f32 %v2630_v25, %v2533_v21 }
 0x3cb   : > { %v3280_v31 = vpop.f32.mrf.mxu0 }
 0x3cc   : > { %v2809_v43 = vadd.f32 %v2791_v59, %v2631_v26 }
 0x3ce   : > { %v2829_v29 = vadd.f32 %v8318_v12, %v2809_v43 }
 0x3d0   : > { %v2845_v2 = vmax.f32 %v2829_v29, 0.0 }
 0x3d1   : > { %v3068_v7 = vpop.f32.mrf.mxu2  ;;  %v3165_v34 = vpop.f32.mrf.mxu3 }
 0x3d2   : > { %v2853_v35 = vpack.c.bf16 %v2845_v2, %v2844_v32  ;;  %v3166_v36 = vadd.f32 %v3165_v34, %v3068_v7 }
 0x3d3   : > { %v3283_v38 = vpop.f32.mrf.mxu0 }
 0x3d4   : > { %2965 = vmatmul.bf16.gmra.mxu1 %v2853_v35  ;;  %v3318_v37 = vadd.f32 %v3278_v24, %v3166_v36 }
 0x3d6   : > { %v3338_v12 = vadd.f32 %v8367_v40, %v3318_v37 }
 0x3d8   : > { %v3354_v46 = vmax.f32 %v3338_v12, 0.0 }
 0x3d9   : > { %v3070_v9 = vpop.f32.mrf.mxu2  ;;  %v3167_v41 = vpop.f32.mrf.mxu3 }
 0x3da   : > { %v3168_v42 = vadd.f32 %v3167_v41, %v3070_v9 }
 0x3db   : > { %v3285_v45 = vpop.f32.mrf.mxu0 }
 0x3dc   : > { %v3319_v51 = vadd.f32 %v3280_v31, %v3168_v42 }
 0x3de   : > { %v3339_v50 = vadd.f32 %v8367_v40, %v3319_v51 }
 0x3e0   : > { %v3355_v47 = vmax.f32 %v3339_v50, 0.0 }
 0x3e1   : > { %v2931_v48 = vpop.f32.mrf.mxu1  ;;  %v3073_v16 = vpop.f32.mrf.mxu2 }
 0x3e2   : > { %v3370_v15 = vpack.c.bf16 %v3355_v47, %v3354_v46  ;;  %v3170_v4 = vpop.f32.mrf.mxu3  ;;  %v8377_v17 = vadd.f32 %v8374_v39, %v2931_v48 }
 0x3e3   : > { %v3288_v49 = vpop.f32.mrf.mxu0  ;;  %v3171_v52 = vadd.f32 %v3170_v4, %v3073_v16 }
 0x3e4   : > { %3454 = vmatmul.bf16.vlgmr.msra.gmra.mxu1 %v3370_v15 }
 0x3e5   : > { %v3320_v53 = vadd.f32 %v3283_v38, %v3171_v52 }
 0x3e7   : > { %v3340_v5 = vadd.f32 %v8367_v40, %v3320_v53 }
 0x3e9   : > { %v2933_v0 = vpop.f32.mrf.mxu1  ;;  %v3075_v56 = vpop.f32.mrf.mxu2  ;;  %v3356_v10 = vmax.f32 %v3340_v5, 0.0 }
 0x3ea   : > { %v8380_v62 = vadd.f32 %v8374_v39, %v2933_v0  ;;  %v3172_v63 = vpop.f32.mrf.mxu3 }
 0x3eb   : > { %v3173_v28 = vadd.f32 %v3172_v63, %v3075_v56  ;;  %v3290_v30 = vpop.f32.mrf.mxu0 }
 0x3ec   : > { %v2971_v27 = vpack.c.bf16 %v8380_v62, %v8377_v17 }
 0x3ed   : > { %v3321_v59 = vadd.f32 %v3285_v45, %v3173_v28 }
 0x3ef   : > { %v3341_v57 = vadd.f32 %v8367_v40, %v3321_v59 }
 0x3f1   : > { %v2936_v23 = vpop.f32.mrf.mxu1  ;;  %v3078_v22 = vpop.f32.mrf.mxu2  ;;  %v3357_v33 = vmax.f32 %v3341_v57, 0.0 }
 0x3f2   : > { %v3175_v60 = vpop.f32.mrf.mxu3  ;;  %v8387_v20 = vadd.f32 %v8374_v39, %v2936_v23 }
 0x3f3   : > { %v3371_v1 = vpack.c.bf16 %v3357_v33, %v3356_v10  ;;  %v3293_v13 = vpop.f32.mrf.mxu0  ;;  %v3176_v14 = vadd.f32 %v3175_v60, %v3078_v22 }
 0x3f5   : > { %3459 = vmatmul.bf16.gmra.mxu1 %v3371_v1  ;;  %v3322_v18 = vadd.f32 %v3288_v49, %v3176_v14 }
 0x3f7   : > { %v3342_v43 = vadd.f32 %v8367_v40, %v3322_v18 }
 0x3f9   : > { %v2938_v24 = vpop.f32.mrf.mxu1  ;;  %v3080_v19 = vpop.f32.mrf.mxu2  ;;  %v3358_v34 = vmax.f32 %v3342_v43, 0.0 }
 0x3fa   : > { %v8390_v21 = vadd.f32 %v8374_v39, %v2938_v24  ;;  %v3177_v25 = vpop.f32.mrf.mxu3 }
 0x3fb   : > { %v3178_v26 = vadd.f32 %v3177_v25, %v3080_v19  ;;  %v3295_v44 = vpop.f32.mrf.mxu0 }
 0x3fc   : > { %v2972_v31 = vpack.c.bf16 %v8390_v21, %v8387_v20 }
 0x3fd   : > { %v3323_v29 = vadd.f32 %v3290_v30, %v3178_v26 }
 0x3ff   : > { %v3343_v32 = vadd.f32 %v8367_v40, %v3323_v29 }
 0x401   : > { %v2941_v2 = vpop.f32.mrf.mxu1  ;;  %v3083_v7 = vpop.f32.mrf.mxu2  ;;  %v3359_v35 = vmax.f32 %v3343_v32, 0.0 }
 0x402   : > { %v3180_v38 = vpop.f32.mrf.mxu3  ;;  %v8397_v12 = vadd.f32 %v8374_v39, %v2941_v2 }
 0x403   : > { %v3372_v36 = vpack.c.bf16 %v3359_v35, %v3358_v34  ;;  %v3181_v37 = vadd.f32 %v3180_v38, %v3083_v7  ;;  %v3298_v9 = vpop.f32.mrf.mxu0 }
 0x405   : > { %3464 = vmatmul.bf16.gmra.mxu1 %v3372_v36  ;;  %v3324_v41 = vadd.f32 %v3293_v13, %v3181_v37 }
 0x407   : > { %v3344_v48 = vadd.f32 %v8367_v40, %v3324_v41 }
 0x409   : > { %v2943_v42 = vpop.f32.mrf.mxu1  ;;  %v3085_v45 = vpop.f32.mrf.mxu2  ;;  %v3360_v53 = vmax.f32 %v3344_v48, 0.0 }
 0x40a   : > { %v8400_v51 = vadd.f32 %v8374_v39, %v2943_v42  ;;  %v3182_v50 = vpop.f32.mrf.mxu3 }
 0x40b   : > { %v3183_v46 = vadd.f32 %v3182_v50, %v3085_v45  ;;  %v3300_v4 = vpop.f32.mrf.mxu0 }
 0x40c   : > { %v2973_v47 = vpack.c.bf16 %v8400_v51, %v8397_v12  ;;  %v6656_v51 = vld [vmem:[%s1566_s29] ss:$0 sm:$0xff] }
 0x40d   : > { %v3325_v16 = vadd.f32 %v3295_v44, %v3183_v46 }
 0x40f   : > { %v3345_v15 = vadd.f32 %v8367_v40, %v3325_v16 }
 0x411   : > { %v2946_v49 = vpop.f32.mrf.mxu1  ;;  %v3088_v52 = vpop.f32.mrf.mxu2  ;;  %v3361_v0 = vmax.f32 %v3345_v15, 0.0 }
 0x412   : > { %v3185_v56 = vpop.f32.mrf.mxu3  ;;  %v8407_v57 = vadd.f32 %v8374_v39, %v2946_v49 }
 0x413   : > { %v3373_v63 = vpack.c.bf16 %v3361_v0, %v3360_v53  ;;  %v3186_v28 = vadd.f32 %v3185_v56, %v3088_v52  ;;  %v3303_v10 = vpop.f32.mrf.mxu0 }
 0x415   : > { %3469 = vmatmul.bf16.gmra.mxu1 %v3373_v63  ;;  %v3326_v30 = vadd.f32 %v3298_v9, %v3186_v28 }
 0x417   : > { %v3346_v1 = vadd.f32 %v8367_v40, %v3326_v30 }
 0x419   : > { %v2948_v5 = vpop.f32.mrf.mxu1  ;;  %v3090_v59 = vpop.f32.mrf.mxu2  ;;  %v3362_v18 = vmax.f32 %v3346_v1, 0.0 }
 0x41a   : > { %v8410_v23 = vadd.f32 %v8374_v39, %v2948_v5  ;;  %v3187_v22 = vpop.f32.mrf.mxu3 }
 0x41b   : > { %v3188_v33 = vadd.f32 %v3187_v22, %v3090_v59  ;;  %v3305_v43 = vpop.f32.mrf.mxu0 }
 0x41c   : > { %v2974_v60 = vpack.c.bf16 %v8410_v23, %v8407_v57 }
 0x41d   : > { %v3327_v13 = vadd.f32 %v3300_v4, %v3188_v33 }
 0x41f   : > { %v3347_v14 = vadd.f32 %v8367_v40, %v3327_v13 }
 0x421   : > { %v8416_v24 = vpop.f32.mrf.mxu1  ;;  %v3093_v19 = vpop.f32.mrf.mxu2  ;;  %v3363_v25 = vmax.f32 %v3347_v14, 0.0 }
 0x422   : > { %v3190_v26 = vpop.f32.mrf.mxu3 }
 0x423   : > { %v3374_v44 = vpack.c.bf16 %v3363_v25, %v3362_v18  ;;  %v3191_v29 = vadd.f32 %v3190_v26, %v3093_v19  ;;  %v3308_v37 = vpop.f32.mrf.mxu0 }
 0x425   : > { %3474 = vmatmul.bf16.gmra.mxu1 %v3374_v44  ;;  %v3328_v32 = vadd.f32 %v3303_v10, %v3191_v29 }
 0x427   : > { %v3348_v38 = vadd.f32 %v8367_v40, %v3328_v32 }
 0x429   : > { %v2953_v2 = vpop.f32.mrf.mxu1  ;;  %v3095_v7 = vpop.f32.mrf.mxu2  ;;  %v3364_v41 = vmax.f32 %v3348_v38, 0.0 }
 0x42a   : > { %v3192_v34 = vpop.f32.mrf.mxu3 }
 0x42b   : > { %v3193_v35 = vadd.f32 %v3192_v34, %v3095_v7  ;;  %v3310_v15 = vpop.f32.mrf.mxu0 }
 0x42d   : > { %v3329_v36 = vadd.f32 %v3305_v43, %v3193_v35 }
 0x42f   : > { %v3349_v9 = vadd.f32 %v8367_v40, %v3329_v36 }
 0x431   : > { %v2956_v42 = vpop.f32.mrf.mxu1  ;;  %v3098_v45 = vpop.f32.mrf.mxu2  ;;  %v3365_v50 = vmax.f32 %v3349_v9, 0.0 }
 0x432   : > { %v3195_v46 = vpop.f32.mrf.mxu3 }
 0x433   : > { %v3375_v48 = vpack.c.bf16 %v3365_v50, %v3364_v41  ;;  %v3196_v16 = vadd.f32 %v3195_v46, %v3098_v45  ;;  %v3313_v10 = vpop.f32.mrf.mxu0 }
 0x435   : > { %3479 = vmatmul.bf16.gmra.mxu1 %v3375_v48  ;;  %v3330_v4 = vadd.f32 %v3308_v37, %v3196_v16  ;;  %v2957_v16 = vadd.f32 %v8374_v39, %v2956_v42 }
 0x437   : > { %v3350_v56 = vadd.f32 %v8367_v40, %v3330_v4 }
 0x439   : > { %v2958_v49 = vpop.f32.mrf.mxu1  ;;  %v3100_v52 = vpop.f32.mrf.mxu2  ;;  %v3366_v30 = vmax.f32 %v3350_v56, 0.0 }
 0x43a   : > { %v3197_v53 = vpop.f32.mrf.mxu3  ;;  %v2959_v46 = vadd.f32 %v8374_v39, %v2958_v49 }
 0x43b   : > { %v3198_v0 = vadd.f32 %v3197_v53, %v3100_v52  ;;  %v3315_v44 = vpop.f32.mrf.mxu0  ;;  %v2952_v52 = vadd.f32 %v8374_v39, %v8416_v24 }
 0x43c   : > { %v2976_v4 = vpack.c.bf16 %v2959_v46, %v2957_v16  ;;  %v6141_v46 = vld [vmem:[%s9287_s10 + $0x28] sm:$0xff]  ;;  %v6140_v16 = vld [vmem:[%s9287_s10 + $0x20] sm:$0xff] }
 0x43d   : > { %v3331_v63 = vadd.f32 %v3310_v15, %v3198_v0  ;;  %v2954_v15 = vadd.f32 %v8374_v39, %v2953_v2 }
 0x43f   : > { %v3351_v28 = vadd.f32 %v8367_v40, %v3331_v63  ;;  %v2975_v53 = vpack.c.bf16 %v2954_v15, %v2952_v52  ;;  %v6163_v15 = vld [vmem:[%s9285_s6 + $0x18] sm:$0xff] }
 0x440   : > { %v6139_v52 = vld [vmem:[%s9287_s10 + $0x18] sm:$0xff] }
 0x441   : > { %v2961_v5 = vpop.f32.mrf.mxu1  ;;  %v3103_v59 = vpop.f32.mrf.mxu2  ;;  %v3367_v22 = vmax.f32 %v3351_v28, 0.0 }
 0x442   : > { %v3200_v33 = vpop.f32.mrf.mxu3  ;;  %v2962_v50 = vadd.f32 %v8374_v39, %v2961_v5 }
 0x443   : > { %v3376_v1 = vpack.c.bf16 %v3367_v22, %v3366_v30  ;;  %v3201_v13 = vadd.f32 %v3200_v33, %v3103_v59 }
 0x445   : > { %3484 = vmatmul.bf16.gmra.mxu1 %v3376_v1  ;;  %v3332_v14 = vadd.f32 %v3313_v10, %v3201_v13 }
 0x447   : > { %v3352_v43 = vadd.f32 %v8367_v40, %v3332_v14 }
 0x449   : > { %v2963_v18 = vpop.f32.mrf.mxu1  ;;  %v3105_v19 = vpop.f32.mrf.mxu2  ;;  %v3368_v7 = vmax.f32 %v3352_v43, 0.0 }
 0x44a   : > { %v3202_v25 = vpop.f32.mrf.mxu3  ;;  %v2964_v41 = vadd.f32 %v8374_v39, %v2963_v18 }
 0x44b   : > { %v3203_v26 = vadd.f32 %v3202_v25, %v3105_v19 }
 0x44c   : > { %v2977_v48 = vpack.c.bf16 %v2964_v41, %v2962_v50  ;;  %v6142_v41 = vld [vmem:[%s9287_s10 + $0x30] sm:$0xff]  ;;  %v6149_v50 = vld [vmem:[%s9286_s23 + $0x28] sm:$0xff] }
 0x44d   : > { %v3333_v29 = vadd.f32 %v3315_v44, %v3203_v26 }
 0x44f   : > { %v3353_v32 = vadd.f32 %v8367_v40, %v3333_v29 }
 0x451   : > { %v2966_v34 = vpop.f32.mrf.mxu1  ;;  %v3369_v35 = vmax.f32 %v3353_v32, 0.0 }
 0x452   : > { %v2967_v37 = vadd.f32 %v8374_v39, %v2966_v34 }
 0x453   : > { %v3377_v38 = vpack.c.bf16 %v3369_v35, %v3368_v7  ;;  %v6167_v35 = vld [vmem:[%s9285_s6 + $0x38] sm:$0xff] }
 0x455   : > { %3489 = vmatmul.bf16.gmra.mxu1 %v3377_v38  ;;  %v6151_v38 = vld [vmem:[%s9286_s23 + $0x38] sm:$0xff] }
 0x456   : > { %3721 = vmatpush.bf16.msrb.mxu0 %v6151_v38 }
 0x459   : > { %v2968_v36 = vpop.f32.mrf.mxu1 }
 0x45a   : > { %v2969_v9 = vadd.f32 %v8374_v39, %v2968_v36  ;;  %v6143_v36 = vld [vmem:[%s9287_s10 + $0x38] sm:$0xff] }
 0x45b   : > { %3818 = vmatpush.bf16.msrb.mxu1 %v6143_v36  ;;  %v6172_v36 = vld [vmem:[%s9288_s22 + $0x20] sm:$0xff] }
 0x45c   : > { %v2978_v45 = vpack.c.bf16 %v2969_v9, %v2967_v37  ;;  %v6166_v37 = vld [vmem:[%s9285_s6 + $0x30] sm:$0xff] }
 0x45d   : > { %v6150_v9 = vld [vmem:[%s9286_s23 + $0x30] sm:$0xff] }
 0x45e   : > { %3584 = vmatpush.bf16.msra.mxu3 %v2978_v45  ;;  %3722 = vmatpush.bf16.msrb.mxu0 %v6150_v9  ;;  %v6165_v45 = vld [vmem:[%s9285_s6 + $0x28] sm:$0xff] }
 0x45f   : > { %3819 = vmatpush.bf16.msrb.mxu1 %v6142_v41 }
 0x461   : > { %v8429_v40 = vpop.f32.mrf.mxu1 }
 0x462   : > { %3585 = vmatpush.bf16.msra.mxu3 %v2977_v48  ;;  %v3456_v7 = vadd.f32 %v6656_v51, %v8429_v40  ;;  %3723 = vmatpush.bf16.msrb.mxu0 %v6149_v50  ;;  %v6164_v48 = vld [vmem:[%s9285_s6 + $0x20] sm:$0xff] }
 0x463   : > { %3820 = vmatpush.bf16.msrb.mxu1 %v6141_v46  ;;  %v6148_v40 = vld [vmem:[%s9286_s23 + $0x20] sm:$0xff] }
 0x464   : > { %v6157_v50 = vld [vmem:[#allocation2 + $0x20] sm:$0xff] }
 0x466   : > { %3586 = vmatpush.bf16.msra.mxu3 %v2976_v4  ;;  %3724 = vmatpush.bf16.msrb.mxu0 %v6148_v40  ;;  %v6147_v4 = vld [vmem:[%s9286_s23 + $0x18] sm:$0xff] }
 0x467   : > { %3821 = vmatpush.bf16.msrb.mxu1 %v6140_v16  ;;  %v6171_v40 = vld [vmem:[%s9288_s22 + $0x18] sm:$0xff] }
 0x469   : > { %v3457_v0 = vpop.f32.mrf.mxu1 }
 0x46a   : > { %3587 = vmatpush.bf16.msra.mxu3 %v2975_v53  ;;  %v3458_v29 = vadd.f32 %v6656_v51, %v3457_v0  ;;  %3725 = vmatpush.bf16.msrb.mxu0 %v6147_v4  ;;  %v6162_v53 = vld [vmem:[%s9285_s6 + $0x10] sm:$0xff] }
 0x46b   : > { %3822 = vmatpush.bf16.msrb.mxu1 %v6139_v52  ;;  %v6146_v0 = vld [vmem:[%s9286_s23 + $0x10] sm:$0xff] }
 0x46c   : > { %v3495_v34 = vpack.c.bf16 %v3458_v29, %v3456_v7 }
 0x46e   : > { %3588 = vmatpush.bf16.msra.mxu3 %v2974_v60  ;;  %3726 = vmatpush.bf16.msrb.mxu0 %v6146_v0  ;;  %v6170_v0 = vld [vmem:[%s9288_s22 + $0x10] sm:$0xff] }
 0x472   : > { %v3460_v49 = vpop.f32.mrf.mxu1  ;;  %3589 = vmatpush.bf16.msra.mxu3 %v2973_v47 }
 0x473   : > { %v3461_v43 = vadd.f32 %v6656_v51, %v3460_v49  ;;  %v6138_v49 = vld [vmem:[%s9287_s10 + $0x10] sm:$0xff] }
 0x474   : > { %3823 = vmatpush.bf16.msrb.mxu1 %v6138_v49 }
 0x476   : > { %3590 = vmatpush.bf16.msra.mxu3 %v2972_v31 }
 0x47a   : > { %v3462_v2 = vpop.f32.mrf.mxu1  ;;  %3591 = vmatpush.bf16.msra.mxu3 %v2971_v27 }
 0x47b   : > { %v3463_v26 = vadd.f32 %v6656_v51, %v3462_v2  ;;  %v6161_v2 = vld [vmem:[%s9285_s6 + $0x8] sm:$0xff] }
 0x47d   : > { %6407 = vmatmul.lmr.bf16.vlgmr.msra.gmra.16.mxu3  ;;  %v3496_v32 = vpack.c.bf16 %v3463_v26, %v3461_v43  ;;  %v6173_v43 = vld [vmem:[%s9288_s22 + $0x28] sm:$0xff] }
 0x482   : > { %v3465_v39 = vpop.f32.mrf.mxu1 }
 0x483   : > { %v3466_v25 = vadd.f32 %v6656_v51, %v3465_v39  ;;  %v6145_v39 = vld [vmem:[%s9286_s23 + $0x8] sm:$0xff] }
 0x484   : > { %3727 = vmatpush.bf16.msrb.mxu0 %v6145_v39 }
 0x485   : > { %6408 = vmatmul.lmr.bf16.gmra.16.mxu3 }
 0x48a   : > { %v3467_v24 = vpop.f32.mrf.mxu1 }
 0x48b   : > { %v3468_v18 = vadd.f32 %v6656_v51, %v3467_v24  ;;  %v6160_v24 = vld [vmem:[%s9285_s6] sm:$0xff] }
 0x48d   : > { %6409 = vmatmul.lmr.bf16.gmra.16.mxu3  ;;  %v3497_v44 = vpack.c.bf16 %v3468_v18, %v3466_v25  ;;  %v6155_v25 = vld [vmem:[#allocation2 + $0x10] sm:$0xff] }
 0x492   : > { %v3470_v57 = vpop.f32.mrf.mxu1 }
 0x493   : > { %v3471_v14 = vadd.f32 %v6656_v51, %v3470_v57 }
 0x495   : > { %6410 = vmatmul.lmr.bf16.gmra.16.mxu3 }
 0x49a   : > { %v3472_v23 = vpop.f32.mrf.mxu1 }
 0x49b   : > { %v3473_v1 = vadd.f32 %v6656_v51, %v3472_v23  ;;  %v6144_v23 = vld [vmem:[%s9286_s23] sm:$0xff] }
 0x49c   : > { %3728 = vmatpush.bf16.msrb.mxu0 %v6144_v23  ;;  %v6159_v23 = vld [vmem:[#allocation2 + $0x38] sm:$0xff] }
 0x49d   : > { %6411 = vmatmul.lmr.bf16.gmra.16.mxu3  ;;  %v3498_v19 = vpack.c.bf16 %v3473_v1, %v3471_v14  ;;  %v6174_v1 = vld [vmem:[%s9288_s22 + $0x30] sm:$0xff] }
 0x49f   : > { %3729 = vmatmul.bf16.vlgmr.msrb.gmra.mxu0 %v8151_v11  ;;  %v6153_v11 = vld [vmem:[#allocation2] sm:$0xff] }
 0x4a2   : > { %v3475_v12 = vpop.f32.mrf.mxu1 }
 0x4a3   : > { %v3476_v33 = vadd.f32 %v6656_v51, %v3475_v12  ;;  %v6137_v12 = vld [vmem:[%s9287_s10 + $0x8] sm:$0xff] }
 0x4a4   : > { %3824 = vmatpush.bf16.msrb.mxu1 %v6137_v12 }
 0x4a5   : > { %6412 = vmatmul.lmr.bf16.gmra.16.mxu3 }
 0x4aa   : > { %v3477_v20 = vpop.f32.mrf.mxu1 }
 0x4ab   : > { %v3478_v22 = vadd.f32 %v6656_v51, %v3477_v20  ;;  %v6136_v20 = vld [vmem:[%s9287_s10] sm:$0xff] }
 0x4ac   : > { %3825 = vmatpush.bf16.msrb.mxu1 %v6136_v20 }
 0x4ad   : > { %6413 = vmatmul.lmr.bf16.gmra.16.mxu3  ;;  %v3499_v13 = vpack.c.bf16 %v3478_v22, %v3476_v33  ;;  %v6154_v22 = vld [vmem:[#allocation2 + $0x18] sm:$0xff] }
 0x4af   : > { %3734 = vmatmul.bf16.gmra.mxu0 %v8145_v8 }
 0x4b2   : > { %v3480_v21 = vpop.f32.mrf.mxu1 }
 0x4b3   : > { %v3481_v59 = vadd.f32 %v6656_v51, %v3480_v21 }
 0x4b5   : > { %6414 = vmatmul.lmr.bf16.gmra.16.mxu3 }
 0x4ba   : > { %v3482_v31 = vpop.f32.mrf.mxu1 }
 0x4bb   : > { %v3483_v30 = vadd.f32 %v6656_v51, %v3482_v31 }
 0x4bd   : > { %6415 = vmatmul.lmr.bf16.gmra.16.mxu3  ;;  %v3500_v10 = vpack.c.bf16 %v3483_v30, %v3481_v59 }
 0x4bf   : > { %3739 = vmatmul.bf16.gmra.mxu0 %v8139_v6 }
 0x4c2   : > { %v3485_v17 = vpop.f32.mrf.mxu1 }
 0x4c3   : > { %v3486_v28 = vadd.f32 %v6656_v51, %v3485_v17  ;;  %v6152_v17 = vld [vmem:[#allocation2 + $0x30] sm:$0xff] }
 0x4c5   : > { %6416 = vmatmul.lmr.bf16.gmra.16.mxu3 }
 0x4ca   : > { %v3487_v62 = vpop.f32.mrf.mxu1 }
 0x4cb   : > { %v3488_v56 = vadd.f32 %v6656_v51, %v3487_v62 }
 0x4cd   : > { %6417 = vmatmul.lmr.bf16.gmra.16.mxu3  ;;  %v3501_v5 = vpack.c.bf16 %v3488_v56, %v3486_v28  ;;  %v6175_v28 = vld [vmem:[%s9288_s22 + $0x38] sm:$0xff] }
 0x4ce   : > { %4172 = vmatpush.bf16.msra.mxu3 %v6175_v28 }
 0x4cf   : > { %3744 = vmatmul.bf16.gmra.mxu0 %v8133_v3 }
 0x4d2   : > { %v3490_v27 = vpop.f32.mrf.mxu1  ;;  %4173 = vmatpush.bf16.msra.mxu3 %v6174_v1 }
 0x4d3   : > { %v3491_v60 = vadd.f32 %v6656_v51, %v3490_v27 }
 0x4d5   : > { %6418 = vmatmul.lmr.bf16.gmra.16.mxu3 }
 0x4d6   : > { %4174 = vmatpush.bf16.msra.mxu3 %v6173_v43 }
 0x4da   : > { %v3492_v47 = vpop.f32.mrf.mxu1  ;;  %4175 = vmatpush.bf16.msra.mxu3 %v6172_v36 }
 0x4db   : > { %v3493_v42 = vadd.f32 %v6656_v51, %v3492_v47 }
 0x4dd   : > { %v3502_v63 = vpack.c.bf16 %v3493_v42, %v3491_v60  ;;  %6419 = vmatmul.lmr.bf16.gmra.16.mxu3 }
 0x4de   : > { %4176 = vmatpush.bf16.msra.mxu3 %v6171_v40 }
 0x4df   : > { %3519 = vmatpush.bf16.msra.mxu2 %v3502_v63  ;;  %3749 = vmatmul.bf16.gmra.mxu0 %v8127_v61 }
 0x4e2   : > { %4177 = vmatpush.bf16.msra.mxu3 %v6170_v0 }
 0x4e3   : > { %3520 = vmatpush.bf16.msra.mxu2 %v3501_v5 }
 0x4e5   : > { %6420 = vmatmul.lmr.bf16.gmra.16.mxu3 }
 0x4e7   : > { %3521 = vmatpush.bf16.msra.mxu2 %v3500_v10 }
 0x4eb   : > { %3522 = vmatpush.bf16.msra.mxu2 %v3499_v13 }
 0x4ed   : > { %6421 = vmatmul.lmr.bf16.gmra.16.mxu3 }
 0x4ef   : > { %3523 = vmatpush.bf16.msra.mxu2 %v3498_v19  ;;  %3754 = vmatmul.bf16.gmra.mxu0 %v8121_v58 }
 0x4f3   : > { %3524 = vmatpush.bf16.msra.mxu2 %v3497_v44 }
 0x4f5   : > { %6422 = vmatmul.lmr.bf16.gmra.16.mxu3 }
 0x4f7   : > { %3525 = vmatpush.bf16.msra.mxu2 %v3496_v32 }
 0x4fb   : > { %3526 = vmatpush.bf16.msra.mxu2 %v3495_v34  ;;  %v6156_v34 = vld [vmem:[#allocation2 + $0x8] sm:$0xff] }
 0x4fe   : > { %6379 = vmatmul.lmr.bf16.vlgmr.msra.gmra.16.mxu2 }
 0x4ff   : > { %3995 = vmatpush.bf16.msra.mxu2 %v6167_v35  ;;  %3759 = vmatmul.bf16.gmra.mxu0 %v8115_v55 }
 0x500   : > { %v3593_v57 = vpop.f32.mrf.mxu3 }
 0x503   : > { %3996 = vmatpush.bf16.msra.mxu2 %v6166_v37 }
 0x506   : > { %6380 = vmatmul.lmr.bf16.gmra.16.mxu2 }
 0x507   : > { %3997 = vmatpush.bf16.msra.mxu2 %v6165_v45 }
 0x508   : > { %v3595_v21 = vpop.f32.mrf.mxu3 }
 0x50b   : > { %3998 = vmatpush.bf16.msra.mxu2 %v6164_v48 }
 0x50e   : > { %6381 = vmatmul.lmr.bf16.gmra.16.mxu2 }
 0x50f   : > { %3999 = vmatpush.bf16.msra.mxu2 %v6163_v15  ;;  %3764 = vmatmul.bf16.gmra.mxu0 %v8110_v54 }
 0x510   : > { %v3598_v31 = vpop.f32.mrf.mxu3 }
 0x513   : > { %4000 = vmatpush.bf16.msra.mxu2 %v6162_v53  ;;  %v6158_v53 = vld [vmem:[#allocation2 + $0x28] sm:$0xff] }
 0x516   : > { %6382 = vmatmul.lmr.bf16.gmra.16.mxu2 }
 0x517   : > { %4001 = vmatpush.bf16.msra.mxu2 %v6161_v2 }
 0x518   : > { %v3600_v62 = vpop.f32.mrf.mxu3 }
 0x51b   : > { %4002 = vmatpush.bf16.msra.mxu2 %v6160_v24 }
 0x51c   : > { %v3730_v20 = vpop.f32.mrf.mxu0 }
 0x51e   : > { %6383 = vmatmul.lmr.bf16.gmra.16.mxu2 }
 0x520   : > { %v3603_v47 = vpop.f32.mrf.mxu3 }
 0x526   : > { %6384 = vmatmul.lmr.bf16.gmra.16.mxu2 }
 0x528   : > { %v3605_v30 = vpop.f32.mrf.mxu3 }
 0x52e   : > { %6385 = vmatmul.lmr.bf16.gmra.16.mxu2 }
 0x530   : > { %v3608_v10 = vpop.f32.mrf.mxu3 }
 0x536   : > { %6386 = vmatmul.lmr.bf16.gmra.16.mxu2 }
 0x538   : > { %v3610_v13 = vpop.f32.mrf.mxu3 }
 0x53e   : > { %6387 = vmatmul.lmr.bf16.gmra.16.mxu2 }
 0x540   : > { %v3613_v44 = vpop.f32.mrf.mxu3 }
 0x546   : > { %6388 = vmatmul.lmr.bf16.gmra.16.mxu2 }
 0x548   : > { %v3615_v61 = vpop.f32.mrf.mxu3 }
 0x54e   : > { %6389 = vmatmul.lmr.bf16.gmra.16.mxu2 }
 0x550   : > { %v3618_v37 = vpop.f32.mrf.mxu3 }
 0x556   : > { %6390 = vmatmul.lmr.bf16.gmra.16.mxu2 }
 0x558   : > { %v3620_v46 = vpop.f32.mrf.mxu3 }
 0x55e   : > { %6391 = vmatmul.lmr.bf16.gmra.16.mxu2 }
 0x560   : > { %v3623_v15 = vpop.f32.mrf.mxu3 }
 0x566   : > { %6392 = vmatmul.lmr.bf16.gmra.16.mxu2 }
 0x568   : > { %v3625_v2 = vpop.f32.mrf.mxu3 }
 0x56e   : > { %6393 = vmatmul.lmr.bf16.gmra.16.mxu2 }
 0x570   : > { %v3628_v54 = vpop.f32.mrf.mxu3 }
 0x576   : > { %6394 = vmatmul.lmr.bf16.gmra.16.mxu2 }
 0x57e   : > { %4003 = vmatmul.bf16.vlgmr.msra.gmra.mxu2 %v6152_v17  ;;  %v3630_v17 = vpop.f32.mrf.mxu3 }
 0x581   : > { %v3528_v27 = vpop.f32.mrf.mxu2 }
 0x582   : > { %v3594_v60 = vadd.f32 %v3593_v57, %v3528_v27 }
 0x589   : > { %v3530_v51 = vpop.f32.mrf.mxu2 }
 0x58a   : > { %v3596_v42 = vadd.f32 %v3595_v21, %v3530_v51  ;;  %v6168_v51 = vld [vmem:[%s9288_s22] sm:$0xff] }
 0x58c   : > { %v3633_v56 = vpack.c.bf16 %v3596_v42, %v3594_v60 }
 0x58e   : > { %3826 = vmatmul.bf16.vlgmr.msrb.gmra.mxu1 %v3633_v56  ;;  %4008 = vmatmul.bf16.gmra.mxu2 %v6153_v11 }
 0x591   : > { %v3533_v63 = vpop.f32.mrf.mxu2 }
 0x592   : > { %v3599_v5 = vadd.f32 %v3598_v31, %v3533_v63  ;;  %v6169_v31 = vld [vmem:[%s9288_s22 + $0x8] sm:$0xff] }
 0x593   : > { %4178 = vmatpush.bf16.msra.mxu3 %v6169_v31 }
 0x597   : > { %4179 = vmatpush.bf16.msra.mxu3 %v6168_v51 }
 0x599   : > { %v3535_v8 = vpop.f32.mrf.mxu2 }
 0x59a   : > { %v3601_v59 = vadd.f32 %v3600_v62, %v3535_v8  ;;  %v3732_v62 = vpop.f32.mrf.mxu0 }
 0x59c   : > { %v3634_v6 = vpack.c.bf16 %v3601_v59, %v3599_v5 }
 0x59e   : > { %3831 = vmatmul.bf16.gmra.mxu1 %v3634_v6  ;;  %4013 = vmatmul.bf16.gmra.mxu2 %v6154_v22  ;;  %v8494_v22 = vld [vmem:[%s1569_s5] ss:$0 sm:$0xff] }
 0x5a1   : > { %v3538_v33 = vpop.f32.mrf.mxu2 }
 0x5a2   : > { %v3604_v18 = vadd.f32 %v3603_v47, %v3538_v33  ;;  %v3735_v56 = vpop.f32.mrf.mxu0 }
 0x5a9   : > { %v3540_v14 = vpop.f32.mrf.mxu2 }
 0x5aa   : > { %v3606_v19 = vadd.f32 %v3605_v30, %v3540_v14  ;;  %v3737_v30 = vpop.f32.mrf.mxu0 }
 0x5ac   : > { %v3635_v3 = vpack.c.bf16 %v3606_v19, %v3604_v18 }
 0x5ae   : > { %3836 = vmatmul.bf16.gmra.mxu1 %v3635_v3  ;;  %4018 = vmatmul.bf16.gmra.mxu2 %v6155_v25 }
 0x5b1   : > { %v3543_v26 = vpop.f32.mrf.mxu2 }
 0x5b2   : > { %v3609_v32 = vadd.f32 %v3608_v10, %v3543_v26  ;;  %v3740_v33 = vpop.f32.mrf.mxu0 }
 0x5b9   : > { %v3545_v29 = vpop.f32.mrf.mxu2 }
 0x5ba   : > { %v3611_v7 = vadd.f32 %v3610_v13, %v3545_v29  ;;  %v3742_v43 = vpop.f32.mrf.mxu0 }
 0x5bc   : > { %v3636_v35 = vpack.c.bf16 %v3611_v7, %v3609_v32 }
 0x5be   : > { %3841 = vmatmul.bf16.gmra.mxu1 %v3636_v35  ;;  %4023 = vmatmul.bf16.gmra.mxu2 %v6156_v34 }
 0x5c1   : > { %v3548_v38 = vpop.f32.mrf.mxu2 }
 0x5c2   : > { %v3614_v41 = vadd.f32 %v3613_v44, %v3548_v38 }
 0x5c9   : > { %v3550_v9 = vpop.f32.mrf.mxu2 }
 0x5ca   : > { %v3616_v45 = vadd.f32 %v3615_v61, %v3550_v9 }
 0x5cc   : > { %v3637_v58 = vpack.c.bf16 %v3616_v45, %v3614_v41 }
 0x5ce   : > { %3846 = vmatmul.bf16.gmra.mxu1 %v3637_v58  ;;  %4028 = vmatmul.bf16.gmra.mxu2 %v6157_v50 }
 0x5d1   : > { %v3553_v48 = vpop.f32.mrf.mxu2 }
 0x5d2   : > { %v3619_v4 = vadd.f32 %v3618_v37, %v3553_v48  ;;  %v3745_v37 = vpop.f32.mrf.mxu0 }
 0x5d9   : > { %v3555_v16 = vpop.f32.mrf.mxu2 }
 0x5da   : > { %v3621_v52 = vadd.f32 %v3620_v46, %v3555_v16  ;;  %v3747_v16 = vpop.f32.mrf.mxu0 }
 0x5dc   : > { %v3638_v55 = vpack.c.bf16 %v3621_v52, %v3619_v4 }
 0x5de   : > { %3851 = vmatmul.bf16.gmra.mxu1 %v3638_v55  ;;  %4033 = vmatmul.bf16.gmra.mxu2 %v6158_v53 }
 0x5e1   : > { %v3558_v49 = vpop.f32.mrf.mxu2 }
 0x5e2   : > { %v3624_v24 = vadd.f32 %v3623_v15, %v3558_v49 }
 0x5e9   : > { %v3560_v39 = vpop.f32.mrf.mxu2 }
 0x5ea   : > { %v3626_v57 = vadd.f32 %v3625_v2, %v3560_v39 }
 0x5ec   : > { %v3639_v12 = vpack.c.bf16 %v3626_v57, %v3624_v24  ;;  %v3750_v24 = vpop.f32.mrf.mxu0 }
 0x5ee   : > { %3856 = vmatmul.bf16.gmra.mxu1 %v3639_v12  ;;  %4038 = vmatmul.bf16.gmra.mxu2 %v6159_v23 }
 0x5f1   : > { %v3563_v21 = vpop.f32.mrf.mxu2 }
 0x5f2   : > { %v3629_v47 = vadd.f32 %v3628_v54, %v3563_v21 }
 0x5f9   : > { %v3565_v27 = vpop.f32.mrf.mxu2 }
 0x5fa   : > { %v3631_v60 = vadd.f32 %v3630_v17, %v3565_v27  ;;  %v3752_v17 = vpop.f32.mrf.mxu0 }
 0x5fc   : > { %v3640_v42 = vpack.c.bf16 %v3631_v60, %v3629_v47 }
 0x5fe   : > { %3861 = vmatmul.bf16.gmra.mxu1 %v3640_v42 }
 0x601   : > { %v4004_v11 = vpop.f32.mrf.mxu2 }
 0x609   : > { %v4006_v63 = vpop.f32.mrf.mxu2 }
 0x60b   : > { %v3827_v28 = vpop.f32.mrf.mxu1 }
 0x60c   : > { %v3828_v8 = vadd.f32 %v3827_v28, %v3730_v20 }
 0x60e   : > { %v4044_v59 = vadd.f32 %v4004_v11, %v3828_v8 }
 0x610   : > { %v4064_v1 = vadd.f32 %v8494_v22, %v4044_v59 }
 0x611   : > { %v4009_v5 = vpop.f32.mrf.mxu2 }
 0x612   : > { %v4080_v19 = vmax.f32 %v4064_v1, 0.0 }
 0x613   : > { %v3829_v6 = vpop.f32.mrf.mxu1 }
 0x614   : > { %v3830_v10 = vadd.f32 %v3829_v6, %v3732_v62 }
 0x616   : > { %v4045_v13 = vadd.f32 %v4006_v63, %v3830_v10 }
 0x618   : > { %v4065_v14 = vadd.f32 %v8494_v22, %v4045_v13 }
 0x619   : > { %v4011_v18 = vpop.f32.mrf.mxu2 }
 0x61a   : > { %v4081_v25 = vmax.f32 %v4065_v14, 0.0 }
 0x61b   : > { %v3832_v3 = vpop.f32.mrf.mxu1 }
 0x61c   : > { %v4096_v26 = vpack.c.bf16 %v4081_v25, %v4080_v19  ;;  %v3833_v44 = vadd.f32 %v3832_v3, %v3735_v56  ;;  %v3755_v56 = vpop.f32.mrf.mxu0 }
 0x61e   : > { %4180 = vmatmul.bf16.vlgmr.msra.gmra.mxu3 %v4096_v26  ;;  %v4046_v32 = vadd.f32 %v4009_v5, %v3833_v44 }
 0x620   : > { %v4066_v61 = vadd.f32 %v8494_v22, %v4046_v32 }
 0x621   : > { %v4014_v29 = vpop.f32.mrf.mxu2 }
 0x622   : > { %v4082_v9 = vmax.f32 %v4066_v61, 0.0 }
 0x623   : > { %v3834_v7 = vpop.f32.mrf.mxu1 }
 0x624   : > { %v3835_v34 = vadd.f32 %v3834_v7, %v3737_v30  ;;  %v3757_v13 = vpop.f32.mrf.mxu0 }
 0x626   : > { %v4047_v35 = vadd.f32 %v4011_v18, %v3835_v34 }
 0x628   : > { %v4067_v38 = vadd.f32 %v8494_v22, %v4047_v35 }
 0x629   : > { %v4016_v36 = vpop.f32.mrf.mxu2 }
 0x62a   : > { %v4083_v41 = vmax.f32 %v4067_v38, 0.0 }
 0x62b   : > { %v3837_v45 = vpop.f32.mrf.mxu1 }
 0x62c   : > { %v4097_v50 = vpack.c.bf16 %v4083_v41, %v4082_v9  ;;  %v3838_v58 = vadd.f32 %v3837_v45, %v3740_v33  ;;  %v3760_v44 = vpop.f32.mrf.mxu0 }
 0x62e   : > { %4185 = vmatmul.bf16.gmra.mxu3 %v4097_v50  ;;  %v4048_v48 = vadd.f32 %v4014_v29, %v3838_v58 }
 0x630   : > { %v4068_v4 = vadd.f32 %v8494_v22, %v4048_v48 }
 0x631   : > { %v4019_v46 = vpop.f32.mrf.mxu2 }
 0x632   : > { %v4084_v0 = vmax.f32 %v4068_v4, 0.0 }
 0x633   : > { %v3839_v40 = vpop.f32.mrf.mxu1 }
 0x634   : > { %v3840_v15 = vadd.f32 %v3839_v40, %v3742_v43 }
 0x636   : > { %v4049_v52 = vadd.f32 %v4016_v36, %v3840_v15 }
 0x638   : > { %v4069_v53 = vadd.f32 %v8494_v22, %v4049_v52 }
 0x639   : > { %v4021_v55 = vpop.f32.mrf.mxu2 }
 0x63a   : > { %v4085_v49 = vmax.f32 %v4069_v53, 0.0 }
 0x63b   : > { %v3842_v2 = vpop.f32.mrf.mxu1 }
 0x63c   : > { %v4098_v39 = vpack.c.bf16 %v4085_v49, %v4084_v0  ;;  %v3843_v57 = vadd.f32 %v3842_v2, %v3745_v37  ;;  %v3762_v37 = vpop.f32.mrf.mxu0 }
 0x63e   : > { %4190 = vmatmul.bf16.gmra.mxu3 %v4098_v39  ;;  %v4050_v12 = vadd.f32 %v4019_v46, %v3843_v57 }
 0x640   : > { %v4070_v21 = vadd.f32 %v8494_v22, %v4050_v12 }
 0x641   : > { %v4024_v23 = vpop.f32.mrf.mxu2 }
 0x642   : > { %v4086_v51 = vmax.f32 %v4070_v21, 0.0 }
 0x643   : > { %v3844_v54 = vpop.f32.mrf.mxu1 }
 0x644   : > { %v3845_v20 = vadd.f32 %v3844_v54, %v3747_v16  ;;  %v3765_v40 = vpop.f32.mrf.mxu0 }
 0x646   : > { %v4051_v31 = vadd.f32 %v4021_v55, %v3845_v20 }
 0x648   : > { %v4071_v62 = vadd.f32 %v8494_v22, %v4051_v31  ;;  %v8515_v31 = vld [vmem:[%s1572_s15] ss:$0 sm:$0xff]  ;;  %s9291_s15 = sld [smem:[#allocation70_spill]] }
 0x649   : > { %v4026_v27 = vpop.f32.mrf.mxu2 }
 0x64a   : > { %v4087_v47 = vmax.f32 %v4071_v62, 0.0 }
 0x64b   : > { %v3847_v60 = vpop.f32.mrf.mxu1 }
 0x64c   : > { %v4099_v42 = vpack.c.bf16 %v4087_v47, %v4086_v51  ;;  %v3848_v11 = vadd.f32 %v3847_v60, %v3750_v24  ;;  %v3767_v49 = vpop.f32.mrf.mxu0  ;;  %v6660_v60 = vld [vmem:[%s7858_s26 + $0x8] sm:$0xff] }
 0x64e   : > { %4195 = vmatmul.bf16.gmra.mxu3 %v4099_v42  ;;  %v4052_v63 = vadd.f32 %v4024_v23, %v3848_v11  ;;  %p5944_p12 = scmp.ne.s32.totalorder %s9291_s15, 2 }
 0x64f   : > { %s9292_s14 = sld [smem:[#allocation60_spill]] (!%p5944_p12) }
 0x650   : > { %v4072_v5 = vadd.f32 %v8494_v22, %v4052_v63  ;;  %v6661_v63 = vld [vmem:[%s7858_s26 + $0x10] sm:$0xff]  ;;  %s9293_s28 = sld [smem:[#allocation62_spill]] (!%p5944_p12) }
 0x651   : > { %v4029_v30 = vpop.f32.mrf.mxu2 }
 0x652   : > { %v4088_v10 = vmax.f32 %v4072_v5, 0.0  ;;  %v6662_v5 = vld [vmem:[%s7858_s26 + $0x18] sm:$0xff] }
 0x653   : > { %v3849_v28 = vpop.f32.mrf.mxu1 }
 0x654   : > { %v3850_v8 = vadd.f32 %v3849_v28, %v3752_v17 }
 0x656   : > { %v4053_v59 = vadd.f32 %v4026_v27, %v3850_v8  ;;  %v6659_v27 = vld [vmem:[%s7858_s26] sm:$0xff] }
 0x658   : > { %v4073_v6 = vadd.f32 %v8494_v22, %v4053_v59 }
 0x659   : > { %v4031_v18 = vpop.f32.mrf.mxu2 }
 0x65a   : > { %v4089_v33 = vmax.f32 %v4073_v6, 0.0 }
 0x65b   : > { %v3852_v1 = vpop.f32.mrf.mxu1 }
 0x65c   : > { %v4100_v14 = vpack.c.bf16 %v4089_v33, %v4088_v10  ;;  %v3853_v19 = vadd.f32 %v3852_v1, %v3755_v56  ;;  %v6663_v33 = vld [vmem:[%s7858_s26 + $0x20] sm:$0xff] }
 0x65e   : > { %4200 = vmatmul.bf16.gmra.mxu3 %v4100_v14  ;;  %v4054_v25 = vadd.f32 %v4029_v30, %v3853_v19 }
 0x660   : > { %v4074_v43 = vadd.f32 %v8494_v22, %v4054_v25 }
 0x661   : > { %v4034_v32 = vpop.f32.mrf.mxu2 }
 0x662   : > { %v4090_v34 = vmax.f32 %v4074_v43, 0.0 }
 0x663   : > { %v3854_v3 = vpop.f32.mrf.mxu1 }
 0x664   : > { %v3855_v26 = vadd.f32 %v3854_v3, %v3757_v13 }
 0x666   : > { %v4055_v29 = vadd.f32 %v4031_v18, %v3855_v26  ;;  %v6664_v18 = vld [vmem:[%s7858_s26 + $0x28] sm:$0xff]  ;;  %v6665_v26 = vld [vmem:[%s7858_s26 + $0x30] sm:$0xff] }
 0x668   : > { %v4075_v7 = vadd.f32 %v8494_v22, %v4055_v29 }
 0x669   : > { %v4036_v9 = vpop.f32.mrf.mxu2 }
 0x66a   : > { %v4091_v61 = vmax.f32 %v4075_v7, 0.0 }
 0x66b   : > { %v3857_v35 = vpop.f32.mrf.mxu1 }
 0x66c   : > { %v4101_v38 = vpack.c.bf16 %v4091_v61, %v4090_v34  ;;  %v3858_v36 = vadd.f32 %v3857_v35, %v3760_v44  ;;  %v6667_v35 = vld [vmem:[%s7858_s26 + $0x40] sm:$0xff] }
 0x66e   : > { %4205 = vmatmul.bf16.gmra.mxu3 %v4101_v38  ;;  %v4056_v41 = vadd.f32 %v4034_v32, %v3858_v36  ;;  %v6666_v32 = vld [vmem:[%s7858_s26 + $0x38] sm:$0xff] }
 0x670   : > { %v4076_v58 = vadd.f32 %v8494_v22, %v4056_v41 }
 0x671   : > { %v4039_v52 = vpop.f32.mrf.mxu2 }
 0x672   : > { %v4092_v16 = vmax.f32 %v4076_v58, 0.0  ;;  %v6669_v58 = vld [vmem:[%s7858_s26 + $0x50] sm:$0xff] }
 0x673   : > { %v3859_v45 = vpop.f32.mrf.mxu1 }
 0x674   : > { %v3860_v50 = vadd.f32 %v3859_v45, %v3762_v37 }
 0x676   : > { %v4057_v46 = vadd.f32 %v4036_v9, %v3860_v50  ;;  %v6668_v9 = vld [vmem:[%s7858_s26 + $0x48] sm:$0xff] }
 0x678   : > { %v4077_v48 = vadd.f32 %v8494_v22, %v4057_v46 }
 0x679   : > { %v4041_v24 = vpop.f32.mrf.mxu2 }
 0x67a   : > { %v4093_v15 = vmax.f32 %v4077_v48, 0.0 }
 0x67b   : > { %v3862_v4 = vpop.f32.mrf.mxu1 }
 0x67c   : > { %v4102_v53 = vpack.c.bf16 %v4093_v15, %v4092_v16  ;;  %v3863_v55 = vadd.f32 %v3862_v4, %v3765_v40  ;;  %v6670_v16 = vld [vmem:[%s7858_s26 + $0x58] sm:$0xff] }
 0x67e   : > { %4210 = vmatmul.bf16.gmra.mxu3 %v4102_v53  ;;  %v4058_v0 = vadd.f32 %v4039_v52, %v3863_v55  ;;  %v6671_v53 = vld [vmem:[%s7858_s26 + $0x60] sm:$0xff] }
 0x680   : > { %v4078_v57 = vadd.f32 %v8494_v22, %v4058_v0 }
 0x682   : > { %v4094_v54 = vmax.f32 %v4078_v57, 0.0 }
 0x683   : > { %v3864_v2 = vpop.f32.mrf.mxu1 }
 0x684   : > { %v3865_v39 = vadd.f32 %v3864_v2, %v3767_v49  ;;  %v6672_v2 = vld [vmem:[%s7858_s26 + $0x68] sm:$0xff] }
 0x686   : > { %v4059_v23 = vadd.f32 %v4041_v24, %v3865_v39 }
 0x688   : > { %v4079_v12 = vadd.f32 %v8494_v22, %v4059_v23  ;;  %v6673_v23 = vld [vmem:[%s7858_s26 + $0x70] sm:$0xff] }
 0x68a   : > { %v4095_v20 = vmax.f32 %v4079_v12, 0.0 }
 0x68c   : > { %v4103_v21 = vpack.c.bf16 %v4095_v20, %v4094_v54 }
 0x68e   : > { %4215 = vmatmul.bf16.gmra.mxu3 %v4103_v21  ;;  %v6674_v21 = vld [vmem:[%s7858_s26 + $0x78] sm:$0xff] }
 0x6a1   : > { %v4181_v17 = vpop.f32.mrf.mxu3 }
 0x6a2   : > { %v4182_v62 = vadd.f32 %v8515_v31, %v4181_v17 }
 0x6a4   : > { %v8519_v51 = vadd.f32 %v6659_v27, %v4182_v62 }
 0x6a6   : > { %4237 = vst [vmem:[%s7858_s26] sm:$0xff] %v8519_v51 }
 0x6a9   : > { %v4183_v22 = vpop.f32.mrf.mxu3 }
 0x6aa   : > { %v4184_v47 = vadd.f32 %v8515_v31, %v4183_v22 }
 0x6ac   : > { %v8525_v42 = vadd.f32 %v6660_v60, %v4184_v47 }
 0x6ae   : > { %4238 = vst [vmem:[%s7858_s26 + $0x8] sm:$0xff] %v8525_v42 }
 0x6b1   : > { %v4186_v11 = vpop.f32.mrf.mxu3 }
 0x6b2   : > { %v4187_v56 = vadd.f32 %v8515_v31, %v4186_v11 }
 0x6b4   : > { %v8531_v28 = vadd.f32 %v6661_v63, %v4187_v56 }
 0x6b6   : > { %4239 = vst [vmem:[%s7858_s26 + $0x10] sm:$0xff] %v8531_v28 }
 0x6b9   : > { %v4188_v30 = vpop.f32.mrf.mxu3 }
 0x6ba   : > { %v4189_v8 = vadd.f32 %v8515_v31, %v4188_v30 }
 0x6bc   : > { %v8537_v59 = vadd.f32 %v6662_v5, %v4189_v8 }
 0x6be   : > { %4240 = vst [vmem:[%s7858_s26 + $0x18] sm:$0xff] %v8537_v59 }
 0x6c1   : > { %v4191_v6 = vpop.f32.mrf.mxu3 }
 0x6c2   : > { %v4192_v10 = vadd.f32 %v8515_v31, %v4191_v6 }
 0x6c4   : > { %v8543_v1 = vadd.f32 %v6663_v33, %v4192_v10 }
 0x6c6   : > { %4241 = vst [vmem:[%s7858_s26 + $0x20] sm:$0xff] %v8543_v1 }
 0x6c9   : > { %v4193_v13 = vpop.f32.mrf.mxu3 }
 0x6ca   : > { %v4194_v14 = vadd.f32 %v8515_v31, %v4193_v13 }
 0x6cc   : > { %v8549_v19 = vadd.f32 %v6664_v18, %v4194_v14 }
 0x6ce   : > { %4242 = vst [vmem:[%s7858_s26 + $0x28] sm:$0xff] %v8549_v19 }
 0x6d1   : > { %v4196_v25 = vpop.f32.mrf.mxu3 }
 0x6d2   : > { %v4197_v3 = vadd.f32 %v8515_v31, %v4196_v25 }
 0x6d4   : > { %v8555_v44 = vadd.f32 %v6665_v26, %v4197_v3 }
 0x6d6   : > { %4243 = vst [vmem:[%s7858_s26 + $0x30] sm:$0xff] %v8555_v44 }
 0x6d9   : > { %v4198_v43 = vpop.f32.mrf.mxu3 }
 0x6da   : > { %v4199_v29 = vadd.f32 %v8515_v31, %v4198_v43 }
 0x6dc   : > { %v8561_v7 = vadd.f32 %v6666_v32, %v4199_v29 }
 0x6de   : > { %4244 = vst [vmem:[%s7858_s26 + $0x38] sm:$0xff] %v8561_v7 }
 0x6e1   : > { %v4201_v34 = vpop.f32.mrf.mxu3 }
 0x6e2   : > { %v4202_v61 = vadd.f32 %v8515_v31, %v4201_v34 }
 0x6e4   : > { %v8567_v38 = vadd.f32 %v6667_v35, %v4202_v61 }
 0x6e6   : > { %4245 = vst [vmem:[%s7858_s26 + $0x40] sm:$0xff] %v8567_v38 }
 0x6e9   : > { %v4203_v36 = vpop.f32.mrf.mxu3 }
 0x6ea   : > { %v4204_v37 = vadd.f32 %v8515_v31, %v4203_v36 }
 0x6ec   : > { %v8573_v41 = vadd.f32 %v6668_v9, %v4204_v37 }
 0x6ee   : > { %4246 = vst [vmem:[%s7858_s26 + $0x48] sm:$0xff] %v8573_v41 }
 0x6f1   : > { %v4206_v45 = vpop.f32.mrf.mxu3 }
 0x6f2   : > { %v4207_v50 = vadd.f32 %v8515_v31, %v4206_v45 }
 0x6f4   : > { %v8579_v46 = vadd.f32 %v6669_v58, %v4207_v50 }
 0x6f6   : > { %4247 = vst [vmem:[%s7858_s26 + $0x50] sm:$0xff] %v8579_v46 }
 0x6f9   : > { %v4208_v48 = vpop.f32.mrf.mxu3 }
 0x6fa   : > { %v4209_v40 = vadd.f32 %v8515_v31, %v4208_v48 }
 0x6fc   : > { %v8585_v15 = vadd.f32 %v6670_v16, %v4209_v40 }
 0x6fe   : > { %4248 = vst [vmem:[%s7858_s26 + $0x58] sm:$0xff] %v8585_v15 }
 0x701   : > { %v4211_v4 = vpop.f32.mrf.mxu3 }
 0x702   : > { %v4212_v52 = vadd.f32 %v8515_v31, %v4211_v4 }
 0x704   : > { %v8591_v55 = vadd.f32 %v6671_v53, %v4212_v52 }
 0x706   : > { %4249 = vst [vmem:[%s7858_s26 + $0x60] sm:$0xff] %v8591_v55 }
 0x709   : > { %v4213_v0 = vpop.f32.mrf.mxu3 }
 0x70a   : > { %v4214_v49 = vadd.f32 %v8515_v31, %v4213_v0 }
 0x70c   : > { %v8597_v39 = vadd.f32 %v6672_v2, %v4214_v49 }
 0x70e   : > { %4250 = vst [vmem:[%s7858_s26 + $0x68] sm:$0xff] %v8597_v39 }
 0x711   : > { %v4216_v24 = vpop.f32.mrf.mxu3 }
 0x712   : > { %v4217_v57 = vadd.f32 %v8515_v31, %v4216_v24 }
 0x714   : > { %v8603_v12 = vadd.f32 %v6673_v23, %v4217_v57 }
 0x716   : > { %4251 = vst [vmem:[%s7858_s26 + $0x70] sm:$0xff] %v8603_v12 }
 0x719   : > { %v4218_v54 = vpop.f32.mrf.mxu3 }
 0x71a   : > { %v4219_v20 = vadd.f32 %v8515_v31, %v4218_v54  ;;  %4256 = sbr.rel (%p5944_p12) target bundleno = 2248 (0x8c8), region = 196 }
 0x71c   : > { %v8609_v17 = vadd.f32 %v6674_v21, %v4219_v20 }
 0x71e   : > { %4252 = vst [vmem:[%s7858_s26 + $0x78] sm:$0xff] %v8609_v17 }
 0x71f   : > { %v6183_v62 = vld [vmem:[#allocation20 + $0x38] sm:$0xff]  ;;  %v6182_v27 = vld [vmem:[#allocation20 + $0x30] sm:$0xff]  ;;  %v6181_v60 = vld [vmem:[#allocation20 + $0x28] sm:$0xff]  ;;  %v4257_v14 = vpack.c.bf16 %v8525_v42, %v8519_v51  ;;  %v4262_v18 = vpack.c.bf16 %v8585_v15, %v8579_v46  ;;  %v4258_v25 = vpack.c.bf16 %v8537_v59, %v8531_v28  ;;  %v4263_v3 = vpack.c.bf16 %v8597_v39, %v8591_v55 }
 0x720   : > { %4333 = vmatpush.bf16.msra.mxu0 %v6183_v62  ;;  %6351 = vmatpush.bf16.msra.mxu3 %v6183_v62  ;;  %v6191_v22 = vld [vmem:[#allocation21 + $0x38] sm:$0xff]  ;;  %v6190_v47 = vld [vmem:[#allocation21 + $0x30] sm:$0xff]  ;;  %v6189_v31 = vld [vmem:[#allocation21 + $0x28] sm:$0xff]  ;;  %v4259_v51 = vpack.c.bf16 %v8549_v19, %v8543_v1  ;;  %v4264_v42 = vpack.c.bf16 %v8609_v17, %v8603_v12  ;;  %v4260_v28 = vpack.c.bf16 %v8561_v7, %v8555_v44 }
 0x721   : > { %4754 = vmatpush.bf16.msra.mxu1 %v6191_v22  ;;  %6359 = vmatpush.bf16.msra.mxu2 %v6191_v22  ;;  %v6180_v11 = vld [vmem:[#allocation20 + $0x20] sm:$0xff]  ;;  %v6179_v63 = vld [vmem:[#allocation20 + $0x18] sm:$0xff]  ;;  %v6178_v8 = vld [vmem:[#allocation20 + $0x10] sm:$0xff]  ;;  %v4261_v59 = vpack.c.bf16 %v8573_v41, %v8567_v38 }
 0x722   : > { %v6188_v56 = vld [vmem:[#allocation21 + $0x20] sm:$0xff]  ;;  %v6187_v30 = vld [vmem:[#allocation21 + $0x18] sm:$0xff]  ;;  %v6186_v5 = vld [vmem:[#allocation21 + $0x10] sm:$0xff] }
 0x723   : > { %v6177_v6 = vld [vmem:[#allocation20 + $0x8] sm:$0xff]  ;;  %v6176_v33 = vld [vmem:[#allocation20] sm:$0xff]  ;;  %v8631_v26 = vld [vmem:[%s9292_s14] ss:$0 sm:$0xff] }
 0x724   : > { %4334 = vmatpush.bf16.msra.mxu0 %v6182_v27  ;;  %6352 = vmatpush.bf16.msra.mxu3 %v6182_v27  ;;  %v6185_v10 = vld [vmem:[#allocation21 + $0x8] sm:$0xff]  ;;  %v6184_v13 = vld [vmem:[#allocation21] sm:$0xff]  ;;  %v8638_v40 = vld [vmem:[%s9293_s28] ss:$0 sm:$0xff] }
 0x725   : > { %4755 = vmatpush.bf16.msra.mxu1 %v6190_v47  ;;  %6360 = vmatpush.bf16.msra.mxu2 %v6190_v47 }
 0x728   : > { %4335 = vmatpush.bf16.msra.mxu0 %v6181_v60  ;;  %6353 = vmatpush.bf16.msra.mxu3 %v6181_v60 }
 0x729   : > { %4756 = vmatpush.bf16.msra.mxu1 %v6189_v31  ;;  %6361 = vmatpush.bf16.msra.mxu2 %v6189_v31 }
 0x72c   : > { %4336 = vmatpush.bf16.msra.mxu0 %v6180_v11  ;;  %6354 = vmatpush.bf16.msra.mxu3 %v6180_v11 }
 0x72d   : > { %4757 = vmatpush.bf16.msra.mxu1 %v6188_v56  ;;  %6362 = vmatpush.bf16.msra.mxu2 %v6188_v56 }
 0x730   : > { %4337 = vmatpush.bf16.msra.mxu0 %v6179_v63  ;;  %6355 = vmatpush.bf16.msra.mxu3 %v6179_v63 }
 0x731   : > { %4758 = vmatpush.bf16.msra.mxu1 %v6187_v30  ;;  %6363 = vmatpush.bf16.msra.mxu2 %v6187_v30 }
 0x734   : > { %4338 = vmatpush.bf16.msra.mxu0 %v6178_v8  ;;  %6356 = vmatpush.bf16.msra.mxu3 %v6178_v8 }
 0x735   : > { %4759 = vmatpush.bf16.msra.mxu1 %v6186_v5  ;;  %6364 = vmatpush.bf16.msra.mxu2 %v6186_v5 }
 0x738   : > { %4339 = vmatpush.bf16.msra.mxu0 %v6177_v6  ;;  %6357 = vmatpush.bf16.msra.mxu3 %v6177_v6 }
 0x739   : > { %4760 = vmatpush.bf16.msra.mxu1 %v6185_v10  ;;  %6365 = vmatpush.bf16.msra.mxu2 %v6185_v10 }
 0x73c   : > { %4340 = vmatpush.bf16.msra.mxu0 %v6176_v33  ;;  %6358 = vmatpush.bf16.msra.mxu3 %v6176_v33 }
 0x73d   : > { %4761 = vmatpush.bf16.msra.mxu1 %v6184_v13  ;;  %6366 = vmatpush.bf16.msra.mxu2 %v6184_v13 }
 0x73f   : > { %4341 = vmatmul.bf16.vlgmr.msra.gmra.mxu0 %v4257_v14  ;;  %4366 = vmatmul.bf16.vlgmr.msra.gmra.mxu3 %v4262_v18 }
 0x740   : > { %4762 = vmatmul.bf16.vlgmr.msra.gmra.mxu1 %v4257_v14  ;;  %4787 = vmatmul.bf16.vlgmr.msra.gmra.mxu2 %v4262_v18 }
 0x74f   : > { %4346 = vmatmul.bf16.gmra.mxu0 %v4258_v25  ;;  %4371 = vmatmul.bf16.gmra.mxu3 %v4263_v3 }
 0x750   : > { %4767 = vmatmul.bf16.gmra.mxu1 %v4258_v25  ;;  %4792 = vmatmul.bf16.gmra.mxu2 %v4263_v3 }
 0x75f   : > { %4351 = vmatmul.bf16.gmra.mxu0 %v4259_v51  ;;  %4376 = vmatmul.bf16.gmra.mxu3 %v4264_v42 }
 0x760   : > { %4772 = vmatmul.bf16.gmra.mxu1 %v4259_v51  ;;  %4797 = vmatmul.bf16.gmra.mxu2 %v4264_v42 }
 0x76f   : > { %4356 = vmatmul.bf16.gmra.mxu0 %v4260_v28 }
 0x770   : > { %4777 = vmatmul.bf16.gmra.mxu1 %v4260_v28 }
 0x77f   : > { %4361 = vmatmul.bf16.gmra.mxu0 %v4261_v59 }
 0x780   : > { %4782 = vmatmul.bf16.gmra.mxu1 %v4261_v59 }
 0x7bc   : > { %v4342_v1 = vpop.f32.mrf.mxu0 }
 0x7bd   : > { %v4343_v19 = vadd.f32 %v8631_v26, %v4342_v1  ;;  %v4763_v61 = vpop.f32.mrf.mxu1 }
 0x7be   : > { %v4764_v39 = vadd.f32 %v8638_v40, %v4763_v61 }
 0x7bf   : > { %v5977_v43 = vmul.f32 -1.442695, %v4343_v19 }
 0x7c1   : > { %6677 = vpow2.f32 %v5977_v43 }
 0x7c2   : > { %v4367_v29 = vpop.f32.mrf.mxu3 }
 0x7c3   : > { %v4368_v15 = vadd.f32 %v8631_v26, %v4367_v29  ;;  %v8641_v2 = vpop.f32.mrf.mxu2 }
 0x7c4   : > { %v4344_v32 = vpop.f32.mrf.mxu0 }
 0x7c5   : > { %v4345_v34 = vadd.f32 %v8631_v26, %v4344_v32  ;;  %v4765_v46 = vpop.f32.mrf.mxu1  ;;  %v5987_v57 = vmul.f32 -1.442695, %v4368_v15 }
 0x7c6   : > { %v4766_v3 = vadd.f32 %v8638_v40, %v4765_v46 }
 0x7c7   : > { %v6678_v44 = vpop.eup %6677  ;;  %v5978_v7 = vmul.f32 -1.442695, %v4345_v34 }
 0x7c8   : > { %v4430_v35 = vadd.f32 1.0, %v6678_v44 }
 0x7c9   : > { %6679 = vpow2.f32 %v5978_v7 }
 0x7ca   : > { %6681 = vrcp.f32 %v4430_v35  ;;  %v4369_v38 = vpop.f32.mrf.mxu3  ;;  %v4457_v53 = vand.u32 2147483648, %v4430_v35  ;;  %v4455_v49 = vand.u32 2147483647, %v4430_v35  ;;  %vm4451_vm5 = vweird.f32 %v4430_v35 }
 0x7cb   : > { %v4370_v41 = vadd.f32 %v8631_v26, %v4369_v38  ;;  %v8651_v13 = vpop.f32.mrf.mxu2 }
 0x7cc   : > { %v4347_v36 = vpop.f32.mrf.mxu0  ;;  %v4458_v20 = vor.u32 1.1754944e-38, %v4457_v53  ;;  %vm4456_vm7 = vcmp.eq.f32.partialorder %v4455_v49, 8.507059e+37 }
 0x7cd   : > { %v4348_v37 = vadd.f32 %v8631_v26, %v4347_v36  ;;  %v5988_v4 = vmul.f32 -1.442695, %v4370_v41  ;;  %v4768_v47 = vpop.f32.mrf.mxu1 }
 0x7cf   : > { %v6680_v9 = vpop.eup %6679  ;;  %v5979_v45 = vmul.f32 -1.442695, %v4348_v37 }
 0x7d0   : > { %v6682_v50 = vpop.eup %6681  ;;  %v4431_v58 = vadd.f32 1.0, %v6680_v9  ;;  %v4769_v9 = vadd.f32 %v8638_v40, %v4768_v47 }
 0x7d1   : > { %6683 = vpow2.f32 %v5979_v45  ;;  %v4447_v48 = vmul.f32 %v6682_v50, %v4430_v35  ;;  %vm4452_vm4 = vweird.f32 %v6682_v50 }
 0x7d2   : > { %6685 = vrcp.f32 %v4431_v58  ;;  %v4372_v16 = vpop.f32.mrf.mxu3  ;;  %vm4453_vm6 = vmor %vm4451_vm5, %vm4452_vm4  ;;  %v4472_v63 = vand.u32 2147483648, %v4431_v58  ;;  %v4470_v6 = vand.u32 2147483647, %v4431_v58  ;;  %vm4466_vm9 = vweird.f32 %v4431_v58 }
 0x7d3   : > { %v4448_v52 = vsub.f32 1.0, %v4447_v48  ;;  %6687 = vpow2.f32 %v5988_v4  ;;  %v4373_v21 = vadd.f32 %v8631_v26, %v4372_v16  ;;  %v8673_v16 = vpop.f32.mrf.mxu2 }
 0x7d4   : > { %v4349_v55 = vpop.f32.mrf.mxu0  ;;  %v4473_v25 = vor.u32 1.1754944e-38, %v4472_v63  ;;  %vm4471_vm11 = vcmp.eq.f32.partialorder %v4470_v6, 8.507059e+37 }
 0x7d5   : > { %v4449_v0 = vmul.f32 %v6682_v50, %v4448_v52  ;;  %v5989_v56 = vmul.f32 -1.442695, %v4373_v21  ;;  %v4350_v19 = vadd.f32 %v8631_v26, %v4349_v55  ;;  %v8665_v7 = vpop.f32.mrf.mxu1 }
 0x7d7   : > { %v6684_v24 = vpop.eup %6683  ;;  %v4450_v23 = vadd.f32 %v6682_v50, %v4449_v0  ;;  %v5980_v45 = vmul.f32 -1.442695, %v4350_v19 }
 0x7d8   : > { %v6686_v12 = vpop.eup %6685  ;;  %v8644_v54 = vadd.f32 1.0, %v6684_v24 }
 0x7d9   : > { %v4454_v17 = vsel %vm4453_vm6, %v6682_v50, %v4450_v23  ;;  %v4462_v62 = vmul.f32 %v6686_v12, %v4431_v58  ;;  %v6688_v8 = vpop.eup %6687  ;;  %vm4467_vm8 = vweird.f32 %v6686_v12 }
 0x7da   : > { %6689 = vrcp.f32 %v8644_v54  ;;  %v4459_v27 = vsel %vm4456_vm7, %v4458_v20, %v4454_v17  ;;  %v4374_v22 = vpop.f32.mrf.mxu3  ;;  %v8653_v18 = vadd.f32 1.0, %v6688_v8  ;;  %vm4468_vm10 = vmor %vm4466_vm9, %vm4467_vm8  ;;  %v4487_v61 = vand.u32 2147483648, %v8644_v54 }
 0x7db   : > { %6691 = vpow2.f32 %v5987_v57  ;;  %v8648_v60 = vmul.f32 %v4764_v39, %v4459_v27  ;;  %v4463_v31 = vsub.f32 1.0, %v4462_v62  ;;  %v4375_v11 = vadd.f32 %v8631_v26, %v4374_v22  ;;  %v8700_v63 = vpop.f32.mrf.mxu2 }
 0x7dc   : > { %v4352_v30 = vpop.f32.mrf.mxu0  ;;  %6693 = vpow2.f32 %v5989_v56  ;;  %v4485_v38 = vand.u32 2147483647, %v8644_v54  ;;  %vm4481_vm13 = vweird.f32 %v8644_v54  ;;  %v4488_v58 = vor.u32 1.1754944e-38, %v4487_v61 }
 0x7dd   : > { %v4464_v5 = vmul.f32 %v6686_v12, %v4463_v31  ;;  %v5990_v10 = vmul.f32 -1.442695, %v4375_v11  ;;  %v4353_v52 = vadd.f32 %v8631_v26, %v4352_v30  ;;  %v8688_v20 = vpop.f32.mrf.mxu1  ;;  %vm4616_vm0 = vweird.f32 %v8653_v18 }
 0x7de   : > { %vm4486_vm15 = vcmp.eq.f32.partialorder %v4485_v38, 8.507059e+37 }
 0x7df   : > { %v4465_v33 = vadd.f32 %v6686_v12, %v4464_v5  ;;  %6695 = vpow2.f32 %v5990_v10 }
 0x7e0   : > { %v6690_v14 = vpop.eup %6689  ;;  %6697 = vrcp.f32 %v8653_v18 }
 0x7e1   : > { %v6692_v51 = vpop.eup %6691  ;;  %v4469_v42 = vsel %vm4468_vm10, %v6686_v12, %v4465_v33  ;;  %v4477_v28 = vmul.f32 %v6690_v14, %v8644_v54  ;;  %vm4482_vm12 = vweird.f32 %v6690_v14  ;;  %v5981_v12 = vmul.f32 -1.442695, %v4353_v52 }
 0x7e2   : > { %v4474_v59 = vsel %vm4471_vm11, %v4473_v25, %v4469_v42  ;;  %v4377_v1 = vpop.f32.mrf.mxu3  ;;  %v8661_v34 = vadd.f32 1.0, %v6692_v51  ;;  %v6694_v37 = vpop.eup %6693  ;;  %vm4483_vm14 = vmor %vm4481_vm13, %vm4482_vm12 }
 0x7e3   : > { %v8658_v43 = vmul.f32 %v4766_v3, %v4474_v59  ;;  %v4478_v29 = vsub.f32 1.0, %v4477_v28  ;;  %v4378_v32 = vadd.f32 %v8631_v26, %v4377_v1  ;;  %v8671_v46 = vadd.f32 1.0, %v6694_v37 }
 0x7e4   : > { %v4354_v44 = vpop.f32.mrf.mxu0  ;;  %v4607_v19 = vand.u32 2147483648, %v8661_v34  ;;  %v4605_v38 = vand.u32 2147483647, %v8661_v34  ;;  %vm4601_vm4 = vweird.f32 %v8661_v34 }
 0x7e5   : > { %v4479_v35 = vmul.f32 %v6690_v14, %v4478_v29  ;;  %v5991_v36 = vmul.f32 -1.442695, %v4378_v32  ;;  %v6696_v41 = vpop.eup %6695  ;;  %v4355_v57 = vadd.f32 %v8631_v26, %v4354_v44  ;;  %v8715_v59 = vpop.f32.mrf.mxu1  ;;  %vm4631_vm3 = vweird.f32 %v8671_v46 }
 0x7e6   : > { %v8675_v15 = vpop.eup %6697  ;;  %v8677_v4 = vadd.f32 1.0, %v6696_v41 }
 0x7e7   : > { %v4480_v50 = vadd.f32 %v6690_v14, %v4479_v35  ;;  %6699 = vpow2.f32 %v5991_v36  ;;  %v4612_v54 = vmul.f32 %v8675_v15, %v8653_v18  ;;  %v5982_v22 = vmul.f32 -1.442695, %v4355_v57 }
 0x7e8   : > { %6701 = vrcp.f32 %v8661_v34  ;;  %vm4617_vm1 = vweird.f32 %v8675_v15  ;;  %v8732_v36 = vadd.f32 %v8638_v40, %v8651_v13  ;;  %vm4646_vm10 = vweird.f32 %v8677_v4 }
 0x7e9   : > { %v4484_v48 = vsel %vm4483_vm14, %v6690_v14, %v4480_v50  ;;  %6703 = vpow2.f32 %v5980_v45  ;;  %v4613_v31 = vsub.f32 1.0, %v4612_v54  ;;  %v8736_v50 = vor.u32 1.1754944e-38, %v4607_v19  ;;  %vm8754_vm2 = vmor %vm4616_vm0, %vm4617_vm1 }
 0x7ea   : > { %v4489_v53 = vsel %vm4486_vm15, %v4488_v58, %v4484_v48  ;;  %v4379_v55 = vpop.f32.mrf.mxu3  ;;  %6705 = vrcp.f32 %v8671_v46  ;;  %v4620_v58 = vand.u32 2147483647, %v8653_v18  ;;  %v4622_v48 = vand.u32 2147483648, %v8653_v18 }
 0x7eb   : > { %v8680_v0 = vmul.f32 %v4769_v9, %v4489_v53  ;;  %v4380_v49 = vadd.f32 %v8631_v26, %v4379_v55  ;;  %6707 = vrcp.f32 %v8677_v4  ;;  %v4614_v14 = vmul.f32 %v8675_v15, %v4613_v31  ;;  %v8741_v53 = vpop.f32.mrf.mxu2 }
 0x7ec   : > { %v4357_v39 = vpop.f32.mrf.mxu0  ;;  %vm8839_vm1 = vcmp.eq.f32.partialorder %v4605_v38, 8.507059e+37 }
 0x7ed   : > { %v6700_v24 = vpop.eup %6699  ;;  %v5992_v23 = vmul.f32 -1.442695, %v4380_v49  ;;  %v4358_v62 = vadd.f32 %v8631_v26, %v4357_v39  ;;  %v8726_v44 = vadd.f32 %v8675_v15, %v4614_v14 }
 0x7ee   : > { %v8690_v21 = vpop.eup %6701  ;;  %v8692_v17 = vadd.f32 1.0, %v6700_v24 }
 0x7ef   : > { %6709 = vpow2.f32 %v5992_v23  ;;  %v6704_v27 = vpop.eup %6703  ;;  %v4597_v47 = vmul.f32 %v8690_v21, %v8661_v34  ;;  %v5983_v56 = vmul.f32 -1.442695, %v4358_v62  ;;  %v4619_v23 = vsel %vm8754_vm2, %v8675_v15, %v8726_v44 }
 0x7f0   : > { %6711 = vpow2.f32 %v5981_v12  ;;  %v8697_v11 = vpop.eup %6705  ;;  %v8704_v8 = vadd.f32 1.0, %v6704_v27  ;;  %v4635_v27 = vand.u32 2147483647, %v8671_v46  ;;  %vm4602_vm5 = vweird.f32 %v8690_v21 }
 0x7f1   : > { %6713 = vrcp.f32 %v8692_v17  ;;  %v8702_v30 = vpop.eup %6707  ;;  %v4598_v33 = vsub.f32 1.0, %v4597_v47  ;;  %v4627_v3 = vmul.f32 %v8697_v11, %v8671_v46  ;;  %vm4661_vm6 = vweird.f32 %v8692_v17 }
 0x7f2   : > { %6715 = vpow2.f32 %v5982_v22  ;;  %v4642_v28 = vmul.f32 %v8702_v30, %v8677_v4  ;;  %vm4632_vm8 = vweird.f32 %v8697_v11  ;;  %vm8793_vm9 = vcmp.eq.f32.partialorder %v4635_v27, 8.507059e+37 }
 0x7f3   : > { %6717 = vpow2.f32 %v5983_v56  ;;  %v4599_v29 = vmul.f32 %v8690_v21, %v4598_v33  ;;  %v4628_v35 = vsub.f32 1.0, %v4627_v3  ;;  %v4665_v56 = vand.u32 2147483647, %v8692_v17  ;;  %v8785_v33 = vpop.f32.mrf.mxu1  ;;  %vm8823_vm14 = vmor %vm4631_vm3, %vm4632_vm8 }
 0x7f4   : > { %v4359_v5 = vpop.f32.mrf.mxu0  ;;  %6719 = vrcp.f32 %v8704_v8  ;;  %v4643_v37 = vsub.f32 1.0, %v4642_v28  ;;  %v4637_v3 = vand.u32 2147483648, %v8671_v46  ;;  %vm4647_vm11 = vweird.f32 %v8702_v30 }
 0x7f5   : > { %v6710_v6 = vpop.eup %6709  ;;  %v4360_v10 = vadd.f32 %v8631_v26, %v4359_v5  ;;  %v8746_v13 = vadd.f32 %v8690_v21, %v4599_v29  ;;  %v4629_v12 = vmul.f32 %v8697_v11, %v4628_v35  ;;  %v4650_v28 = vand.u32 2147483647, %v8677_v4  ;;  %vm8847_vm3 = vmor %vm4646_vm10, %vm4647_vm11 }
 0x7f6   : > { %v8708_v25 = vadd.f32 1.0, %v6710_v6  ;;  %v6712_v42 = vpop.eup %6711  ;;  %v4644_v22 = vmul.f32 %v8702_v30, %v4643_v37  ;;  %vm8815_vm13 = vcmp.eq.f32.partialorder %v4665_v56, 8.507059e+37 }
 0x7f7   : > { %v5984_v51 = vmul.f32 -1.442695, %v4360_v10  ;;  %v8717_v1 = vpop.eup %6713  ;;  %v8723_v61 = vadd.f32 1.0, %v6712_v42  ;;  %v4667_v10 = vand.u32 2147483648, %v8692_v17  ;;  %v8788_v14 = vadd.f32 %v8697_v11, %v4629_v12 }
 0x7f8   : > { %v6716_v32 = vpop.eup %6715  ;;  %v4657_v41 = vmul.f32 %v8717_v1, %v8692_v17  ;;  %vm4662_vm7 = vweird.f32 %v8717_v1  ;;  %v4645_v37 = vadd.f32 %v8702_v30, %v4644_v22  ;;  %vm4676_vm15 = vweird.f32 %v8708_v25 }
 0x7f9   : > { %6721 = vpow2.f32 %v5984_v51  ;;  %v6718_v45 = vpop.eup %6717  ;;  %v8748_v49 = vadd.f32 1.0, %v6716_v32  ;;  %vm8804_vm12 = vmor %vm4661_vm6, %vm4662_vm7  ;;  %v4682_v46 = vand.u32 2147483648, %v8708_v25  ;;  %v4634_v38 = vsel %vm8823_vm14, %v8697_v11, %v8788_v14 }
 0x7fa   : > { %6723 = vrcp.f32 %v8708_v25  ;;  %v8743_v55 = vpop.eup %6719  ;;  %v4658_v24 = vsub.f32 1.0, %v4657_v41  ;;  %v8765_v62 = vadd.f32 1.0, %v6718_v45  ;;  %v4668_v45 = vor.u32 1.1754944e-38, %v4667_v10  ;;  %vm8883_vm7 = vmor %vm4601_vm4, %vm4602_vm5 }
 0x7fb   : > { %6725 = vrcp.f32 %v8723_v61  ;;  %v8780_v5 = vmul.f32 %v8743_v55, %v8704_v8  ;;  %v4680_v10 = vand.u32 2147483647, %v8708_v25  ;;  %vm4651_vm8 = vcmp.eq.f32.partialorder %v4650_v28, 8.507059e+37 }
 0x7fc   : > { %v4362_v9 = vpop.f32.mrf.mxu0  ;;  %v4659_v47 = vmul.f32 %v8717_v1, %v4658_v24  ;;  %v4623_v41 = vor.u32 1.1754944e-38, %v4622_v48  ;;  %v4794_v17 = vadd.f32 %v8638_v40, %v8673_v16  ;;  %vm4621_vm4 = vcmp.eq.f32.partialorder %v4620_v58, 8.507059e+37 }
 0x7fd   : > { %v4363_v52 = vadd.f32 %v8631_v26, %v4362_v9  ;;  %v4652_v9 = vand.u32 2147483648, %v8677_v4  ;;  %v4649_v4 = vsel %vm8847_vm3, %v8702_v30, %v4645_v37  ;;  %v4683_v30 = vor.u32 1.1754944e-38, %v4682_v46 }
 0x7fe   : > { %v4660_v51 = vadd.f32 %v8717_v1, %v4659_v47  ;;  %v4796_v37 = vadd.f32 %v8638_v40, %v8700_v63  ;;  %vm4681_vm10 = vcmp.eq.f32.partialorder %v4680_v10, 8.507059e+37  ;;  %v4624_v16 = vsel %vm4621_vm4, %v4623_v41, %v4619_v23 }
 0x7ff   : > { %v6722_v57 = vpop.eup %6721  ;;  %v5985_v54 = vmul.f32 -1.442695, %v4363_v52  ;;  %v4653_v19 = vor.u32 1.1754944e-38, %v4652_v9  ;;  %vm4526_vm5 = vweird.f32 %v8748_v49  ;;  %vm4541_vm11 = vweird.f32 %v8765_v62 }
 0x800   : > { %v8770_v31 = vpop.eup %6723  ;;  %v8782_v6 = vadd.f32 1.0, %v6722_v57  ;;  %v4664_v12 = vsel %vm8804_vm12, %v8717_v1, %v4660_v51  ;;  %v4638_v51 = vor.u32 1.1754944e-38, %v4637_v3  ;;  %v4517_v3 = vand.u32 2147483648, %v8723_v61 }
 0x801   : > { %6727 = vpow2.f32 %v5985_v54  ;;  %v4672_v32 = vmul.f32 %v8770_v31, %v8708_v25  ;;  %v8810_v35 = vpop.eup %6725  ;;  %vm4677_vm0 = vweird.f32 %v8770_v31  ;;  %v4800_v54 = vpop.f32.mrf.mxu2  ;;  %v4669_v14 = vsel %vm8815_vm13, %v4668_v45, %v4664_v12 }
 0x802   : > { %6729 = vrcp.f32 %v8748_v49  ;;  %vm4678_vm6 = vmor %vm4676_vm15, %vm4677_vm0  ;;  %v8890_v25 = vpop.f32.mrf.mxu1  ;;  %v4654_v34 = vsel %vm4651_vm8, %v4653_v19, %v4649_v4  ;;  %v4507_v28 = vmul.f32 %v8810_v35, %v8723_v61  ;;  %v4639_v18 = vsel %vm8793_vm9, %v4638_v51, %v4634_v38 }
 0x803   : > { %6731 = vrcp.f32 %v8765_v62  ;;  %v4673_v24 = vsub.f32 1.0, %v4672_v32  ;;  %v4493_v12 = vsub.f32 1.0, %v8780_v5  ;;  %v4816_v46 = vmul.f32 %v4796_v37, %v4654_v34 }
 0x804   : > { %v4364_v29 = vpop.f32.mrf.mxu0  ;;  %6733 = vrcp.f32 %v8782_v6  ;;  %v4815_v39 = vmul.f32 %v4794_v17, %v4639_v18  ;;  %v4508_v23 = vsub.f32 1.0, %v4507_v28  ;;  %v4819_v5 = vpack.c.bf16 %v8658_v43, %v8648_v60 }
 0x805   : > { %v4365_v52 = vadd.f32 %v8631_v26, %v4364_v29  ;;  %v4674_v56 = vmul.f32 %v8770_v31, %v4673_v24  ;;  %v4799_v29 = vadd.f32 %v8638_v40, %v8741_v53  ;;  %v4494_v38 = vmul.f32 %v8743_v55, %v4493_v12 }
 0x806   : > { %v4825_v4 = vpack.c.bf16 %v4816_v46, %v4815_v39  ;;  %v4530_v34 = vand.u32 2147483647, %v8748_v49  ;;  %vm4512_vm12 = vweird.f32 %v8810_v35  ;;  %vm4497_vm14 = vweird.f32 %v8743_v55 }
 0x807   : > { %v6728_v57 = vpop.eup %6727  ;;  %v5986_v47 = vmul.f32 -1.442695, %v4365_v52  ;;  %v4675_v32 = vadd.f32 %v8770_v31, %v4674_v56  ;;  %v4801_v52 = vadd.f32 %v8638_v40, %v4800_v54  ;;  %v4817_v63 = vmul.f32 %v4799_v29, %v4669_v14 }
 0x808   : > { %v8835_v27 = vpop.eup %6729  ;;  %v8851_v1 = vadd.f32 1.0, %v6728_v57  ;;  %v4560_v46 = vand.u32 2147483647, %v8782_v6 }
 0x809   : > { %v8867_v24 = vpop.eup %6731  ;;  %v4522_v11 = vmul.f32 %v8835_v27, %v8748_v49  ;;  %v4679_v9 = vsel %vm4678_vm6, %v8770_v31, %v4675_v32  ;;  %v4604_v31 = vsel %vm8883_vm7, %v8690_v21, %v8746_v13  ;;  %v4789_v13 = vadd.f32 %v8638_v40, %v8641_v2 }
 0x80a   : > { %6735 = vrcp.f32 %v8851_v1  ;;  %v8877_v53 = vpop.eup %6733  ;;  %v4684_v45 = vsel %vm4681_vm10, %v4683_v30, %v4679_v9  ;;  %v4537_v54 = vmul.f32 %v8867_v24, %v8765_v62  ;;  %v4814_v2 = vmul.f32 %v8732_v36, %v4624_v16 }
 0x80b   : > { %6737 = vpow2.f32 %v5986_v47  ;;  %v4818_v57 = vmul.f32 %v4801_v52, %v4684_v45  ;;  %v4523_v58 = vsub.f32 1.0, %v4522_v11  ;;  %v4552_v15 = vmul.f32 %v8877_v53, %v8782_v6  ;;  %v4783_v52 = vpop.f32.mrf.mxu1 }
 0x80c   : > { %v4609_v47 = vsel %vm8839_vm1, %v8736_v50, %v4604_v31  ;;  %v4538_v51 = vsub.f32 1.0, %v4537_v54  ;;  %v4509_v32 = vmul.f32 %v8810_v35, %v4508_v23  ;;  %vm4527_vm2 = vweird.f32 %v8835_v27 }
 0x80d   : > { %v4826_v26 = vpack.c.bf16 %v4818_v57, %v4817_v63  ;;  %v4524_v56 = vmul.f32 %v8835_v27, %v4523_v58  ;;  %v4553_v19 = vsub.f32 1.0, %v4552_v15  ;;  %v4813_v29 = vmul.f32 %v4789_v13, %v4609_v47  ;;  %vm8950_vm9 = vmor %vm4526_vm5, %vm4527_vm2 }
 0x80e   : > { %v8940_v50 = vadd.f32 %v8743_v55, %v4494_v38  ;;  %v4539_v11 = vmul.f32 %v8867_v24, %v4538_v51  ;;  %v4515_v30 = vand.u32 2147483647, %v8723_v61  ;;  %v8948_v41 = vadd.f32 %v8810_v35, %v4509_v32 }
 0x80f   : > { %4828 = vmatpush.bf16.msrb.mxu2 %v4826_v26  ;;  %v8935_v22 = vadd.f32 %v8835_v27, %v4524_v56  ;;  %v4824_v14 = vpack.c.bf16 %v4814_v2, %v4813_v29  ;;  %v4554_v37 = vmul.f32 %v8877_v53, %v4553_v19  ;;  %v4532_v45 = vand.u32 2147483648, %v8748_v49 }
 0x810   : > { %v8911_v48 = vpop.eup %6735  ;;  %v4540_v31 = vadd.f32 %v8867_v24, %v4539_v11  ;;  %vm4542_vm15 = vweird.f32 %v8867_v24  ;;  %vm4557_vm0 = vweird.f32 %v8877_v53  ;;  %v4577_v16 = vand.u32 2147483648, %v8851_v1 }
 0x811   : > { %v6738_v21 = vpop.eup %6737  ;;  %v4567_v44 = vmul.f32 %v8911_v48, %v8851_v1  ;;  %v4529_v28 = vsel %vm8950_vm9, %v8835_v27, %v8935_v22  ;;  %vm4572_vm13 = vweird.f32 %v8911_v48  ;;  %vm4511_vm1 = vweird.f32 %v8723_v61  ;;  %vm9002_vm2 = vmor %vm4541_vm11, %vm4542_vm15 }
 0x812   : > { %v8922_v42 = vadd.f32 1.0, %v6738_v21  ;;  %v4555_v18 = vadd.f32 %v8877_v53, %v4554_v37  ;;  %vm4571_vm3 = vweird.f32 %v8851_v1  ;;  %v4575_v58 = vand.u32 2147483647, %v8851_v1 }
 0x813   : > { %v4568_v10 = vsub.f32 1.0, %v4567_v44  ;;  %4829 = vmatpush.bf16.msrb.mxu2 %v4825_v4  ;;  %vm4496_vm6 = vweird.f32 %v8704_v8  ;;  %vm4556_vm7 = vweird.f32 %v8782_v6  ;;  %v4562_v54 = vand.u32 2147483648, %v8782_v6  ;;  %vm8980_vm8 = vmor %vm4571_vm3, %vm4572_vm13  ;;  %v4785_v2 = vpop.f32.mrf.mxu1 }
 0x814   : > { %6739 = vrcp.f32 %v8922_v42  ;;  %v4592_v21 = vand.u32 2147483648, %v8922_v42  ;;  %v4590_v15 = vand.u32 2147483647, %v8922_v42  ;;  %v4545_v44 = vand.u32 2147483647, %v8765_v62  ;;  %vm8993_vm4 = vmor %vm4556_vm7, %vm4557_vm0 }
 0x815   : > { %v4569_v36 = vmul.f32 %v8911_v48, %v4568_v10  ;;  %v4547_v6 = vand.u32 2147483648, %v8765_v62  ;;  %v4578_v23 = vor.u32 1.1754944e-38, %v4577_v16  ;;  %v4784_v47 = vadd.f32 %v8638_v40, %v4783_v52  ;;  %vm9025_vm7 = vmor %vm4511_vm1, %vm4512_vm12 }
 0x816   : > { %v4559_v56 = vsel %vm8993_vm4, %v8877_v53, %v4555_v18  ;;  %vm4576_vm5 = vcmp.eq.f32.partialorder %v4575_v58, 8.507059e+37  ;;  %vm4586_vm13 = vweird.f32 %v8922_v42  ;;  %v4544_v38 = vsel %vm9002_vm2, %v8867_v24, %v4540_v31 }
 0x817   : > { %4830 = vmatpush.bf16.msrb.mxu2 %v4824_v14  ;;  %v4570_v63 = vadd.f32 %v8911_v48, %v4569_v36  ;;  %v4563_v51 = vor.u32 1.1754944e-38, %v4562_v54  ;;  %v4593_v62 = vor.u32 1.1754944e-38, %v4592_v21  ;;  %vm4561_vm11 = vcmp.eq.f32.partialorder %v4560_v46, 8.507059e+37 }
 0x818   : > { %vm4591_vm15 = vcmp.eq.f32.partialorder %v4590_v15, 8.507059e+37  ;;  %v4786_v29 = vadd.f32 %v8638_v40, %v4785_v2  ;;  %v4548_v32 = vor.u32 1.1754944e-38, %v4547_v6  ;;  %v4779_v53 = vadd.f32 %v8638_v40, %v8785_v33 }
 0x819   : > { %v4574_v1 = vsel %vm8980_vm8, %v8911_v48, %v4570_v63  ;;  %v4564_v52 = vsel %vm4561_vm11, %v4563_v51, %v4559_v56  ;;  %vm4546_vm3 = vcmp.eq.f32.partialorder %v4545_v44, 8.507059e+37  ;;  %v4781_v24 = vadd.f32 %v8638_v40, %v8890_v25  ;;  %vm9033_vm8 = vmor %vm4496_vm6, %vm4497_vm14 }
 0x81a   : > { %v6740_v9 = vpop.eup %6739  ;;  %v4579_v4 = vsel %vm4576_vm5, %v4578_v23, %v4574_v1  ;;  %v4500_v14 = vand.u32 2147483647, %v8704_v8  ;;  %v4502_v37 = vand.u32 2147483648, %v8704_v8  ;;  %v4533_v33 = vor.u32 1.1754944e-38, %v4532_v45 }
 0x81b   : > { %v4582_v57 = vmul.f32 %v6740_v9, %v8922_v42  ;;  %vm4587_vm10 = vweird.f32 %v6740_v9  ;;  %v4811_v36 = vmul.f32 %v4784_v47, %v4579_v4  ;;  %v4549_v63 = vsel %vm4546_vm3, %v4548_v32, %v4544_v38 }
 0x81c   : > { %vm4588_vm0 = vmor %vm4586_vm13, %vm4587_vm10  ;;  %vm4531_vm12 = vcmp.eq.f32.partialorder %v4530_v34, 8.507059e+37  ;;  %v4810_v31 = vmul.f32 %v4781_v24, %v4564_v52  ;;  %v4499_v45 = vsel %vm9033_vm8, %v8743_v55, %v8940_v50  ;;  %v4518_v8 = vor.u32 1.1754944e-38, %v4517_v3 }
 0x81d   : > { %v4583_v12 = vsub.f32 1.0, %v4582_v57  ;;  %v4514_v57 = vsel %vm9025_vm7, %v8810_v35, %v8948_v41  ;;  %v4534_v18 = vsel %vm4531_vm12, %v4533_v33, %v4529_v28  ;;  %vm4516_vm14 = vcmp.eq.f32.partialorder %v4515_v30, 8.507059e+37 }
 0x81e   : > { %v4774_v49 = vadd.f32 %v8638_v40, %v8688_v20  ;;  %v4776_v35 = vadd.f32 %v8638_v40, %v8715_v59  ;;  %v4809_v41 = vmul.f32 %v4779_v53, %v4549_v63  ;;  %v4503_v55 = vor.u32 1.1754944e-38, %v4502_v37  ;;  %v4827_v59 = vld [vmem:[#allocation6] sm:$0x1] }
 0x81f   : > { %v4584_v13 = vmul.f32 %v6740_v9, %v4583_v12  ;;  %v4519_v50 = vsel %vm4516_vm14, %v4518_v8, %v4514_v57  ;;  %vm4501_vm1 = vcmp.eq.f32.partialorder %v4500_v14, 8.507059e+37  ;;  %v4771_v27 = vadd.f32 %v8638_v40, %v8665_v7 }
 0x820   : > { %v4808_v3 = vmul.f32 %v4776_v35, %v4534_v18  ;;  %v4822_v17 = vpack.c.bf16 %v4810_v31, %v4809_v41  ;;  %v4504_v34 = vsel %vm4501_vm1, %v4503_v55, %v4499_v45  ;;  %v4807_v61 = vmul.f32 %v4774_v49, %v4519_v50 }
 0x821   : > { %v4585_v10 = vadd.f32 %v6740_v9, %v4584_v13  ;;  %v4806_v22 = vmul.f32 %v4771_v27, %v4504_v34 }
 0x822   : > { %v4821_v30 = vpack.c.bf16 %v4808_v3, %v4807_v61 }
 0x823   : > { %v4589_v19 = vsel %vm4588_vm0, %v6740_v9, %v4585_v10  ;;  %v4820_v20 = vpack.c.bf16 %v4806_v22, %v8680_v0 }
 0x824   : > { %v4594_v42 = vsel %vm4591_vm15, %v4593_v62, %v4589_v19 }
 0x825   : > { %v4812_v11 = vmul.f32 %v4786_v29, %v4594_v42 }
 0x827   : > { %v4823_v16 = vpack.c.bf16 %v4812_v11, %v4811_v36 }
 0x829   : > { %4831 = vmatpush.bf16.msrb.mxu2 %v4823_v16 }
 0x82d   : > { %4832 = vmatpush.bf16.msrb.mxu2 %v4822_v17 }
 0x831   : > { %4833 = vmatpush.bf16.msrb.mxu2 %v4821_v30 }
 0x835   : > { %4834 = vmatpush.bf16.msrb.mxu2 %v4820_v20 }
 0x839   : > { %4835 = vmatpush.bf16.msrb.mxu2 %v4819_v5 }
 0x83c   : > { %4836 = vmatmul.bf16.vlgmr.msrb.gmra.mxu2 %v4827_v59 }
 0x8bf   : > { %v4837_v28 = vpop.f32.mrf.mxu2 }
 0x8c0   : > { %4841 = vst [vmem:[%s7856_s17] sm:$0x3] %v4837_v28 }
 0x8c7   : > { %v4839_v58 = vpop.f32.mrf.mxu2 }
 0x8c8 PF: > { %s9322_s13 = sld [smem:[#allocation71_spill]]  ;;  %s4860_s24 = sshll.u32 %s7856_s17, 4  ;;  %s4861_s24 = int_to_ptr.vmem [resolvable:$true] %s4860_s24 }
 0x8c9   : > { %s9323_s16 = sld [smem:[#allocation63_spill]] }
 0x8ca   : > { %s9324_s29 = sld [smem:[#allocation89_spill]] }
 0x8cb   : > { %s9325_s0 = sld [smem:[#allocation79_spill]] }
 0x8ce   : > { %s6027_s7 = sshll.u32 %s9322_s13, 1 }
 0x8cf   : > { %s4858_s11 = scalar_lea.hbm %s9323_s16, %s6027_s7  ;;  %s7121_s3 = scalar_lea.hbm %s9323_s16, 4 }
 0x8d0   : > { %s4862_s12 = sshll.u32 %s4858_s11, 4  ;;  %s4843_s18 = scalar_lea.sflag [#allocation9], %s9324_s29  ;;  %s4863_s12 = int_to_ptr.hbm [resolvable:$true] %s4862_s12 }
 0x8d1   : > { %s7115_s2 = sshra.s32 %s4863_s12, 4  ;;  %p9326_p9 = scmp.ne.s32.totalorder %s9325_s0, 0  ;;  %s7116_s2 = int_to_ptr.hbm [resolvable:$true] %s7115_s2 }
 0x8d2   : > { %s7117_s21 = scalar_lea.hbm %s7116_s2, 2  ;;  %p7122_p13 = scmp.lt.s32.totalorder %s7116_s2, %s9323_s16 }
 0x8d3   : > { %p7118_p4 = scmp.ne.s32.totalorder %s7116_s2, %s7117_s21  ;;  %p7123_p1 = scmp.lt.s32.totalorder %s7121_s3, %s7117_s21 }
 0x8d5   : > { %p7119_p10 = pnand %p7118_p4, %p9326_p9  ;;  %p7124_p5 = por %p7123_p1, %p7122_p13 }
 0x8d7   : > { %p7120_p7 = pneg %p7119_p10 }
 0x8d9   : > { %p7125_p11 = pnand %p7124_p5, %p7120_p7 }
 0x8db   : > { %7128 = shalt.err (!%p7125_p11)
}
 0x8dc   : > { %s9327_s17 = sld [smem:[#allocation64_spill]]  ;;  %s6192_s8 = sshll.u32 %s9322_s13, 7 }
 0x8dd   : > { %6455 = dma.vmem_to_hbm [thread:$0]  (%p9326_p9), %s4861_s24, 32, %s4863_s12, %s4843_s18  }
 0x8de   : > { %s4874_s19 = sshll.u32 %s7858_s26, 4  ;;  %s4848_s27 = scalar_lea.sflag [#allocation25], %s9324_s29  ;;  %s4875_s19 = int_to_ptr.vmem [resolvable:$true] %s4874_s19 }
 0x8e2   : > { %s4873_s30 = scalar_lea.hbm %s9327_s17, %s6192_s8  ;;  %s7149_s25 = scalar_lea.hbm %s9327_s17, 256 }
 0x8e3   : > { %s4876_s20 = sshll.u32 %s4873_s30, 4  ;;  %s4877_s20 = int_to_ptr.hbm [resolvable:$true] %s4876_s20 }
 0x8e4   : > { %s7143_s4 = sshra.s32 %s4877_s20, 4  ;;  %s7144_s4 = int_to_ptr.hbm [resolvable:$true] %s7143_s4 }
 0x8e5   : > { %s7145_s1 = scalar_lea.hbm %s7144_s4, 128  ;;  %p7150_p6 = scmp.lt.s32.totalorder %s7144_s4, %s9327_s17 }
 0x8e6   : > { %p7146_p8 = scmp.ne.s32.totalorder %s7144_s4, %s7145_s1  ;;  %p7151_p3 = scmp.lt.s32.totalorder %s7149_s25, %s7145_s1 }
 0x8e8   : > { %p7147_p0 = pnand %p7146_p8, %p9326_p9  ;;  %p7152_p12 = por %p7151_p3, %p7150_p6 }
 0x8ea   : > { %p7148_p2 = pneg %p7147_p0 }
 0x8ec   : > { %p7153_p4 = pnand %p7152_p12, %p7148_p2 }
 0x8ee   : > { %7156 = shalt.err (!%p7153_p4)
}
 0x8ef   : > { %s7313_s6 = smov 128   ;;  %s7314_s26 = smov 8  }
 0x8f0   : > { %6456 = dma.vmem_to_hbm [thread:$0]  (%p9326_p9), %s4875_s19, 2048, %s4877_s20, %s4848_s27, %s7313_s6, %s7313_s6, %s7314_s26  }
 0x8f1 PF: > { %s9328_s23 = sld [smem:[#allocation74_spill]] }
 0x8f2   : > { %s9329_s10 = sld [smem:[#allocation65_spill]] }
 0x8f3   : > { %s9330_s22 = sld [smem:[#allocation80_spill]] }
 0x8f7   : > { %p6513_p10 = scmp.ge.s32.totalorder %s9328_s23, 2 }
 0x8f8   : > { %s4891_s9 = sand.u32 1, %s9329_s10  }
 0x8f9   : > { %p9331_p7 = scmp.ne.s32.totalorder %s9330_s22, 0  ;;  %s4892_s5 = scalar_lea.sflag [#allocation9], %s4891_s9 }
 0x8fb   : > { %p6498_p13 = pnand %p6513_p10, %p9331_p7 }
 0x8fd   : > { %p6499_p1 = pneg %p6498_p13 }
 0x8ff   : > { %7222 = dma.done.wait (%p6499_p1), %s4892_s5, 32  }
 0x900   : > { %7224 = vsyncadd (%p6499_p1), %s4892_s5, 4294967264  ;;  %s4902_s15 = scalar_lea.sflag [#allocation25], %s4891_s9 }
 0x901   : > { %7226 = dma.done.wait (%p6499_p1), %s4902_s15, 2048  }
 0x902   : > { %7228 = vsyncadd (%p6499_p1), %s4902_s15, 4294965248  ;;  %s83_s15 = sadd.s32 1, %s9328_s23   ;;  %s9332_s22 = sld [smem:[#allocation66_spill]] }
 0x903   : > { %p80_p5 = scmp.ge.s32.totalorder %s83_s15, 8   ;;  %s9333_s23 = sld [smem:[#allocation67_spill]] }
 0x904   : > { %s9334_s26 = sld [smem:[#allocation78_spill]] }
 0x905   : > { %s9335_s28 = sld [smem:[#allocation68_spill]] }
 0x906   : > { %s9336_s1 = sld [smem:[#allocation69_spill]] }
 0x907   : > { %s9337_s2 = sld [smem:[#allocation77_spill]]  ;;  %82 = sbr.rel (!%p80_p5) target bundleno = 81 (0x51), region = 375 }
 0x908   : > { %s9338_s0 = sld [smem:[#allocation72_spill]] }
 0x909   : > { %s9339_s7 = sld [smem:[#allocation73_spill]] }
 0x90a   : > { %s9340_s10 = sld [smem:[#allocation75_spill]] }
 0x90b   : > { %s9341_s11 = sld [smem:[#allocation76_spill]] }
 0x90c   :  { %4908 = vsyncpa [#allocation8], 1 }
 0x90d   :  { %4910 = vsyncpa [#allocation8 + $0x1], 1 }
 0x90e   :  { %4911 = vsyncpa [#allocation11], 1 }
 0x90f   :  { %4912 = vsyncpa [#allocation22], 1 }
 0x910   :  { %4913 = vsyncpa [#allocation9], 1 }
 0x911   :  { %4915 = vsyncpa [#allocation9 + $0x1], 1 }
 0x912   :  { %4916 = vsyncpa [#allocation25], 1 }
 0x913   :  { %4918 = vsyncpa [#allocation25 + $0x1], 1 }

</bundles_post_ra>
